<compile_context>
chip_gen: v6e
topology: v6e:2x2x1
jax: 0.10.0
libtpu: 0.0.40
codegen_flags: <defaults>
</compile_context>

<pallas_src>
import functools

import jax
import jax.numpy as jnp
from jax.experimental import pallas as pl
from jax.experimental.pallas import tpu as pltpu

_VMEM_LIMIT = 48 * 1024 * 1024   # leave headroom vs v7x's 64 MiB physical VMEM / TC


# ----------------------------------------------------------------------------
# Small helpers
# ----------------------------------------------------------------------------
def _round_up(v, m):
    return (v + m - 1) // m * m


def _pick_time_chunk(t, target):
    """Time chunk in [target//2, target]; exact divisor preferred, else minimal pad."""
    target = max(1, min(target, t))
    lo = max(target // 2, 1)
    for tc in range(target, lo - 1, -1):
        if t % tc == 0:
            return tc
    best_tc, best_pad = target, (-t) % target
    for tc in range(target, lo - 1, -1):
        pad = (-t) % tc
        if pad < best_pad:
            best_tc, best_pad = tc, pad
    return best_tc


def _row_tiled_call(kernel, row_inputs, const_inputs, out_cols, out_dtypes, *,
                    row_tile):
    """Run `kernel` over a 1-D grid of row tiles.

    row_inputs:   2-D arrays sharing row count M, tiled (TM, cols).
    const_inputs: 2-D arrays fully resident in VMEM (weights / (1, N) vectors).
    out_cols/out_dtypes: per-output column counts / dtypes (tiled (TM, n)).
    Returns a tuple of outputs.
    """
    M = row_inputs[0].shape[0]
    TM = min(row_tile, _round_up(M, 8))
    Mp = _round_up(M, TM)
    if Mp != M:
        row_inputs = [jnp.pad(r, ((0, Mp - M), (0, 0))) for r in row_inputs]

    in_specs = (
        [pl.BlockSpec((TM, r.shape[1]), lambda i: (i, 0)) for r in row_inputs]
        + [pl.BlockSpec(c.shape, lambda i: (0, 0)) for c in const_inputs]
    )
    out_shape = tuple(jax.ShapeDtypeStruct((Mp, n), dt)
                      for n, dt in zip(out_cols, out_dtypes))
    out_specs = tuple(pl.BlockSpec((TM, n), lambda i: (i, 0)) for n in out_cols)
    outs = pl.pallas_call(
        kernel,
        out_shape=out_shape,
        grid=(Mp // TM,),
        in_specs=in_specs,
        out_specs=out_specs,
        compiler_params=pltpu.CompilerParams(
            dimension_semantics=("parallel",),
            vmem_limit_bytes=_VMEM_LIMIT,
        ),
    )(*row_inputs, *const_inputs)
    if Mp != M:
        outs = tuple(o[:M] for o in outs)
    return outs


# ----------------------------------------------------------------------------
# Fused fully-connected kernels (bf16 operands, f32 accumulation)
# ----------------------------------------------------------------------------
def _fc1_kernel(x_ref, w_ref, bn_scale_ref, bn_shift_ref, o_ref):
    # fc1 (input affine pre-folded into w / shift) -> bn1 -> tanh, bf16 out
    y = jnp.dot(x_ref[...].astype(w_ref.dtype), w_ref[...],
                preferred_element_type=jnp.float32)
    o_ref[...] = jnp.tanh(y * bn_scale_ref[...] + bn_shift_ref[...]).astype(o_ref.dtype)


def _gates0_kernel(x_ref, wf_ref, wb_ref, bf_ref, bb_ref, gf_ref, gb_ref):
    # layer-0 LSTM input projection (both directions), f32 gates out
    x = x_ref[...].astype(wf_ref.dtype)
    gf_ref[...] = jnp.dot(x, wf_ref[...], preferred_element_type=jnp.float32) + bf_ref[...]
    gb_ref[...] = jnp.dot(x, wb_ref[...], preferred_element_type=jnp.float32) + bb_ref[...]


def _gates1_kernel(xf_ref, xb_ref, wff_ref, wfb_ref, wbf_ref, wbb_ref,
                   bf_ref, bb_ref, gf_ref, gb_ref):
    # layer>0 LSTM input projection: previous layer's (out_f | out_b) never concatenated
    xf = xf_ref[...].astype(wff_ref.dtype)
    xb = xb_ref[...].astype(wff_ref.dtype)
    gf_ref[...] = (jnp.dot(xf, wff_ref[...], preferred_element_type=jnp.float32)
                   + jnp.dot(xb, wfb_ref[...], preferred_element_type=jnp.float32)
                   + bf_ref[...])
    gb_ref[...] = (jnp.dot(xf, wbf_ref[...], preferred_element_type=jnp.float32)
                   + jnp.dot(xb, wbb_ref[...], preferred_element_type=jnp.float32)
                   + bb_ref[...])


def _fc23_mask_kernel(h1_ref, lf_ref, lb_ref, mix_ref,
                      wa_ref, wbf_ref, wbb_ref, bn2s_ref, bn2b_ref,
                      w3_ref, s3_ref, b3_ref, o_ref):
    # fc2 (skip concat split into 3 weights) -> bn2 -> relu
    # -> fc3 -> (bn3 + output scale/mean folded) -> relu -> * mix
    # h2 stays in VMEM/vregs (no HBM round trip).
    y = jnp.dot(h1_ref[...].astype(wa_ref.dtype), wa_ref[...],
                preferred_element_type=jnp.float32)
    y += jnp.dot(lf_ref[...].astype(wbf_ref.dtype), wbf_ref[...],
                 preferred_element_type=jnp.float32)
    y += jnp.dot(lb_ref[...].astype(wbb_ref.dtype), wbb_ref[...],
                 preferred_element_type=jnp.float32)
    h2 = jnp.maximum(y * bn2s_ref[...] + bn2b_ref[...], 0.0)
    z = jnp.dot(h2.astype(w3_ref.dtype), w3_ref[...],
                preferred_element_type=jnp.float32)
    mask = jnp.maximum(z * s3_ref[...] + b3_ref[...], 0.0)
    o_ref[...] = mask * mix_ref[...].astype(jnp.float32)


# ----------------------------------------------------------------------------
# Bidirectional LSTM recurrence kernel (both directions fused per time step).
# gx_{f,b} already hold x @ W_ih + (b_ih + b_hh); the kernel only adds
# h @ W_hh and applies the cell.  Time is chunked; the backward direction
# reads gate blocks and writes output blocks in reverse time via the
# index_map (no jnp.flip in the wrapper).  PyTorch gate order (i, f, g, o).
# ----------------------------------------------------------------------------
def _bilstm_rec_kernel(gxf_ref, gxb_ref, whhf_ref, whhb_ref, of_ref, ob_ref,
                       hf_sc, cf_sc, hb_sc, cb_sc, *, chunk, hidden):
    H = hidden

    @pl.when(pl.program_id(0) == 0)
    def _():
        hf_sc[...] = jnp.zeros_like(hf_sc)
        cf_sc[...] = jnp.zeros_like(cf_sc)
        hb_sc[...] = jnp.zeros_like(hb_sc)
        cb_sc[...] = jnp.zeros_like(cb_sc)

    def cell(gates, c_prev):
        i_g = jax.nn.sigmoid(gates[:, 0 * H:1 * H])
        f_g = jax.nn.sigmoid(gates[:, 1 * H:2 * H])
        g_g = jnp.tanh(gates[:, 2 * H:3 * H])
        o_g = jax.nn.sigmoid(gates[:, 3 * H:4 * H])
        c = f_g * c_prev + i_g * g_g
        return o_g * jnp.tanh(c), c

    def step(t, carry):
        h_f, c_f, h_b, c_b = carry
        tb = chunk - 1 - t                              # backward in-chunk index
        g_f = gxf_ref[t] + jnp.dot(h_f.astype(whhf_ref.dtype), whhf_ref[...],
                                   preferred_element_type=jnp.float32)
        g_b = gxb_ref[tb] + jnp.dot(h_b.astype(whhb_ref.dtype), whhb_ref[...],
                                    preferred_element_type=jnp.float32)
        h_f, c_f = cell(g_f, c_f)
        h_b, c_b = cell(g_b, c_b)
        of_ref[pl.ds(t, 1)] = h_f[None].astype(of_ref.dtype)
        ob_ref[pl.ds(tb, 1)] = h_b[None].astype(ob_ref.dtype)
        return (h_f, c_f, h_b, c_b)

    # h/c live in the loop carry (vregs); scratch is touched once per chunk.
    carry0 = (hf_sc[...], cf_sc[...], hb_sc[...], cb_sc[...])
    unroll = True if chunk <= 16 else 8
    h_f, c_f, h_b, c_b = jax.lax.fori_loop(0, chunk, step, carry0, unroll=unroll)
    hf_sc[...] = h_f
    cf_sc[...] = c_f
    hb_sc[...] = h_b
    cb_sc[...] = c_b


def bilstm_recurrence(gx_f, gx_b, whh_f, whh_b, hidden, *, time_chunk=64):
    """gx_f/gx_b: (T, B, 4H) f32 gates in natural time order; returns
    (out_f, out_b): (T, B, H) bf16 hidden states, both in natural time order."""
    T, B, G4 = gx_f.shape
    H = hidden
    TC = _pick_time_chunk(T, time_chunk)
    Tp = _round_up(T, TC)
    P = Tp - T
    if P:
        # Forward stream: end-pad (padding processed after all real frames).
        # Backward stream: front-pad so that in its reverse-time processing the
        # padding is also only reached after all real frames.
        gx_f = jnp.pad(gx_f, ((0, P), (0, 0), (0, 0)))
        gx_b = jnp.pad(gx_b, ((P, 0), (0, 0), (0, 0)))
    n_chunks = Tp // TC

    kernel = functools.partial(_bilstm_rec_kernel, chunk=TC, hidden=H)
    out_f, out_b = pl.pallas_call(
        kernel,
        out_shape=(jax.ShapeDtypeStruct((Tp, B, H), jnp.bfloat16),
                   jax.ShapeDtypeStruct((Tp, B, H), jnp.bfloat16)),
        grid=(n_chunks,),
        in_specs=[
            pl.BlockSpec((TC, B, G4), lambda c: (c, 0, 0)),
            pl.BlockSpec((TC, B, G4), lambda c: (n_chunks - 1 - c, 0, 0)),
            pl.BlockSpec((H, G4), lambda c: (0, 0)),
            pl.BlockSpec((H, G4), lambda c: (0, 0)),
        ],
        out_specs=(
            pl.BlockSpec((TC, B, H), lambda c: (c, 0, 0)),
            pl.BlockSpec((TC, B, H), lambda c: (n_chunks - 1 - c, 0, 0)),
        ),
        scratch_shapes=[pltpu.VMEM((B, H), jnp.float32)] * 4,  # h_f, c_f, h_b, c_b
        compiler_params=pltpu.CompilerParams(
            dimension_semantics=("arbitrary",),
            vmem_limit_bytes=_VMEM_LIMIT,
        ),
    )(gx_f, gx_b, whh_f, whh_b)
    if P:
        out_f = out_f[:T]
        out_b = out_b[P:]
    return out_f, out_b


def bilstm_layer(inp, lp, H, *, row_tile=512, time_chunk=64):
    """One bidirectional LSTM layer.

    inp: (T, B, hidden) array for layer 0, or a tuple (x_f, x_b) of (T, B, H)
    per-direction outputs from the previous layer (never concatenated).
    Returns (out_f, out_b): (T, B, H) bf16 each.
    """
    if isinstance(inp, tuple):
        x_f, x_b = inp
        T, B, _ = x_f.shape
        gx_f, gx_b = _row_tiled_call(
            _gates1_kernel,
            [x_f.reshape(T * B, -1), x_b.reshape(T * B, -1)],
            [lp["wih_f_f"], lp["wih_f_b"], lp["wih_b_f"], lp["wih_b_b"],
             lp["b_f"], lp["b_b"]],
            [4 * H, 4 * H], [jnp.float32, jnp.float32], row_tile=row_tile)
    else:
        T, B, Din = inp.shape
        gx_f, gx_b = _row_tiled_call(
            _gates0_kernel,
            [inp.reshape(T * B, Din)],
            [lp["wih_f"], lp["wih_b"], lp["b_f"], lp["b_b"]],
            [4 * H, 4 * H], [jnp.float32, jnp.float32], row_tile=row_tile)
    gx_f = gx_f.reshape(T, B, 4 * H)
    gx_b = gx_b.reshape(T, B, 4 * H)
    return bilstm_recurrence(gx_f, gx_b, lp["whh_f"], lp["whh_b"], H,
                             time_chunk=time_chunk)


# ----------------------------------------------------------------------------
# Parameter initialization (deterministic; matches the torch module's shapes).
# All constant folds done in f32, matmul weights then cast to bf16.
# ----------------------------------------------------------------------------
def init_params(key, *, nb_bins, nb_channels, hidden_size, nb_layers):
    H = hidden_size // 2              # bidirectional LSTM hidden size
    nb_out = nb_bins                  # max_bin=None -> nb_output_bins == nb_bins
    C = nb_channels
    keys = jax.random.split(key, 256)
    k = iter(keys)

    def rnd(shape, scale=0.1):
        return jax.random.normal(next(k), shape, jnp.float32) * scale

    def bn(n, eps=1e-5):
        gamma = 1.0 + 0.1 * jax.random.normal(next(k), (n,), jnp.float32)
        beta = 0.1 * jax.random.normal(next(k), (n,), jnp.float32)
        rmean = 0.1 * jax.random.normal(next(k), (n,), jnp.float32)
        rvar = jnp.abs(1.0 + 0.1 * jax.random.normal(next(k), (n,), jnp.float32))
        scale = gamma / jnp.sqrt(rvar + eps)
        shift = beta - rmean * scale
        return scale, shift

    # torch defaults: input_mean=0, input_scale=1, output_scale=1, output_mean=1
    input_mean = jnp.zeros((nb_bins,), jnp.float32)
    input_scale = jnp.ones((nb_bins,), jnp.float32)
    output_scale = jnp.ones((nb_out,), jnp.float32)
    output_mean = jnp.ones((nb_out,), jnp.float32)

    bn1_scale, bn1_shift = bn(hidden_size)
    bn2_scale, bn2_shift = bn(hidden_size)
    bn3_scale, bn3_shift = bn(nb_out * C)

    # fc1: fold (x + input_mean) * input_scale into the weight rows / bn1 shift.
    fc1_w = rnd((C * nb_bins, hidden_size))
    in_scale_t = jnp.tile(input_scale, C)
    in_mean_t = jnp.tile(input_mean, C)
    fc1_w_folded = fc1_w * in_scale_t[:, None]
    fc1_offset = (in_mean_t * in_scale_t) @ fc1_w
    bn1_shift_folded = bn1_shift + fc1_offset * bn1_scale

    # fc3: fold bn3 + output scale/mean; pad columns to lane-dense multiple of 128.
    fc3_w = rnd((hidden_size, nb_out * C))
    out_scale_t = jnp.tile(output_scale, C)
    out_mean_t = jnp.tile(output_mean, C)
    comb_scale = bn3_scale * out_scale_t
    comb_shift = bn3_shift * out_scale_t + out_mean_t
    n_cols = nb_out * C
    pad = _round_up(n_cols, 128) - n_cols
    if pad:
        fc3_w = jnp.pad(fc3_w, ((0, 0), (0, pad)))
        comb_scale = jnp.pad(comb_scale, (0, pad))
        comb_shift = jnp.pad(comb_shift, (0, pad))

    p = {
        "fc1_w": fc1_w_folded.astype(jnp.bfloat16),
        "bn1_scale": bn1_scale[None, :],
        "bn1_shift": bn1_shift_folded[None, :],
        # fc2 weight split: wa acts on h1 (skip), wb_f / wb_b on the two LSTM directions.
        "fc2_wa": rnd((hidden_size, hidden_size)).astype(jnp.bfloat16),
        "fc2_wb_f": rnd((H, hidden_size)).astype(jnp.bfloat16),
        "fc2_wb_b": rnd((H, hidden_size)).astype(jnp.bfloat16),
        "bn2_scale": bn2_scale[None, :],
        "bn2_shift": bn2_shift[None, :],
        "fc3_w": fc3_w.astype(jnp.bfloat16),
        "fc3_scale": comb_scale[None, :],
        "fc3_shift": comb_shift[None, :],
    }

    lstm = []
    for layer in range(nb_layers):
        if layer == 0:
            lp = {
                "wih_f": rnd((hidden_size, 4 * H)).astype(jnp.bfloat16),
                "wih_b": rnd((hidden_size, 4 * H)).astype(jnp.bfloat16),
            }
        else:
            # W_ih split by which half (direction) of the previous output it acts on.
            lp = {
                "wih_f_f": rnd((H, 4 * H)).astype(jnp.bfloat16),
                "wih_f_b": rnd((H, 4 * H)).astype(jnp.bfloat16),
                "wih_b_f": rnd((H, 4 * H)).astype(jnp.bfloat16),
                "wih_b_b": rnd((H, 4 * H)).astype(jnp.bfloat16),
            }
        lp["whh_f"] = rnd((H, 4 * H)).astype(jnp.bfloat16)
        lp["whh_b"] = rnd((H, 4 * H)).astype(jnp.bfloat16)
        lp["b_f"] = rnd((1, 4 * H))      # b_ih + b_hh combined, f32
        lp["b_b"] = rnd((1, 4 * H))
        lstm.append(lp)
    p["lstm"] = lstm
    return p


# ----------------------------------------------------------------------------
# Full forward pass (glue in JAX, compute in Pallas kernels).
# ----------------------------------------------------------------------------
def openunmix_forward(x, p, cfg):
    """x: (nb_samples, nb_channels, nb_bins, nb_frames) -> same shape."""
    S, C, FB, T = x.shape
    nb_bins = cfg["nb_bins"]
    nb_out = cfg["nb_output_bins"]
    hidden = cfg["hidden_size"]
    H = cfg["lstm_hidden"]

    # torch working layout (frames, samples, channels, bins)
    xt = jnp.transpose(x, (3, 0, 1, 2)).astype(jnp.float32)         # (T,S,C,FB)
    n_cols = C * nb_out
    n_cols_pad = p["fc3_w"].shape[1]
    mix2d = xt.reshape(T * S, n_cols).astype(jnp.bfloat16)          # mask target
    if n_cols_pad != n_cols:
        mix2d = jnp.pad(mix2d, ((0, 0), (0, n_cols_pad - n_cols)))
    # crop high bins; bf16 activations (input affine already folded into fc1_w)
    x2d = xt[..., :nb_bins].reshape(T * S, C * nb_bins).astype(jnp.bfloat16)

    # fc1 + bn1 + tanh
    (h1,) = _row_tiled_call(
        _fc1_kernel, [x2d],
        [p["fc1_w"], p["bn1_scale"], p["bn1_shift"]],
        [hidden], [jnp.bfloat16], row_tile=512)                     # (T*S, hidden) bf16

    # 3-layer bidirectional LSTM (eval mode: no dropout)
    layer_in = h1.reshape(T, S, hidden)
    for layer in range(cfg["nb_layers"]):
        layer_in = bilstm_layer(layer_in, p["lstm"][layer], H)
    out_f, out_b = layer_in                                         # (T,S,H) bf16 each

    # skip + fc2 + bn2 + relu + fc3 + bn3/output-affine + relu + mask, one kernel
    (out2d,) = _row_tiled_call(
        _fc23_mask_kernel,
        [h1, out_f.reshape(T * S, H), out_b.reshape(T * S, H), mix2d],
        [p["fc2_wa"], p["fc2_wb_f"], p["fc2_wb_b"],
         p["bn2_scale"], p["bn2_shift"],
         p["fc3_w"], p["fc3_scale"], p["fc3_shift"]],
        [n_cols_pad], [jnp.float32], row_tile=256)                  # (T*S, Npad) f32
    if n_cols_pad != n_cols:
        out2d = out2d[:, :n_cols]

    out = out2d.reshape(T, S, C, nb_out)
    return jnp.transpose(out, (1, 2, 3, 0))                         # (S, C, nb_out, T)


# ----------------------------------------------------------------------------
if __name__ == "__main__":
    # Small, shape-consistent configuration.
    nb_samples = 2
    nb_channels = 2
    nb_bins = 16
    nb_frames = 8
    hidden_size = 64          # -> LSTM hidden 32 per direction
    nb_layers = 3

    cfg = {
        "nb_bins": nb_bins,
        "nb_output_bins": nb_bins,
        "nb_channels": nb_channels,
        "hidden_size": hidden_size,
        "lstm_hidden": hidden_size // 2,
        "nb_layers": nb_layers,
    }

    key = jax.random.PRNGKey(0)
    k_param, k_x = jax.random.split(key)
    params = init_params(k_param, nb_bins=nb_bins, nb_channels=nb_channels,
                         hidden_size=hidden_size, nb_layers=nb_layers)

    # spectrogram magnitudes are non-negative
    x = jnp.abs(jax.random.normal(
        k_x, (nb_samples, nb_channels, nb_bins, nb_frames), jnp.float32))

    forward = jax.jit(functools.partial(openunmix_forward, cfg=cfg))
    out = forward(x, params)
    out = jax.block_until_ready(out)
    assert out.shape == (nb_samples, nb_channels, nb_bins, nb_frames)
    assert bool(jnp.all(jnp.isfinite(out)))
    print("KERNEL_OK")
</pallas_src>

<mosaic_0001>
module attributes {stable_mosaic.version = 11 : i64} {
  func.func @_fc1_kernel(%arg0: i32, %arg1: memref<16x32xbf16, #tpu.memory_space<vmem>>, %arg2: memref<32x64xbf16, #tpu.memory_space<vmem>>, %arg3: memref<1x64xf32, #tpu.memory_space<vmem>>, %arg4: memref<1x64xf32, #tpu.memory_space<vmem>>, %arg5: memref<16x64xbf16, #tpu.memory_space<vmem>>) attributes {dimension_semantics = [#tpu.dimension_semantics<parallel>], iteration_bounds = array<i64: 1>, scalar_prefetch = 0 : i64, scratch_operands = 0 : i64, tpu.core_type = #tpu.core_type<tc>, window_params = [{transform_indices = @transform_0, window_bounds = array<i64: 16, 32>}, {pipeline_mode = #tpu.pipeline_mode<synchronous>, transform_indices = @transform_1, window_bounds = array<i64: 32, 64>}, {pipeline_mode = #tpu.pipeline_mode<synchronous>, transform_indices = @transform_2, window_bounds = array<i64: 1, 64>}, {pipeline_mode = #tpu.pipeline_mode<synchronous>, transform_indices = @transform_3, window_bounds = array<i64: 1, 64>}, {transform_indices = @transform_4, window_bounds = array<i64: 16, 64>}]} {
    %c0 = arith.constant 0 : index
    %c0_0 = arith.constant 0 : index
    %0 = vector.load %arg1[%c0, %c0_0] : memref<16x32xbf16, #tpu.memory_space<vmem>>, vector<16x32xbf16>
    %c0_1 = arith.constant 0 : index
    %c0_2 = arith.constant 0 : index
    %1 = vector.load %arg2[%c0_1, %c0_2] : memref<32x64xbf16, #tpu.memory_space<vmem>>, vector<32x64xbf16>
    %cst = arith.constant dense<0.000000e+00> : vector<16x64xf32>
    %2 = tpu.matmul %0, %1, %cst {dimension_numbers = #tpu.dot_dimension_numbers<[1], [0], [0], [1], [0, 0, 1, 1], [], []>} : vector<16x32xbf16>, vector<32x64xbf16>, vector<16x64xf32> -> vector<16x64xf32>
    %c0_3 = arith.constant 0 : index
    %c0_4 = arith.constant 0 : index
    %3 = vector.load %arg3[%c0_3, %c0_4] : memref<1x64xf32, #tpu.memory_space<vmem>>, vector<1x64xf32>
    %4 = vector.broadcast %3 : vector<1x64xf32> to vector<16x64xf32>
    %5 = arith.mulf %2, %4 : vector<16x64xf32>
    %c0_5 = arith.constant 0 : index
    %c0_6 = arith.constant 0 : index
    %6 = vector.load %arg4[%c0_5, %c0_6] : memref<1x64xf32, #tpu.memory_space<vmem>>, vector<1x64xf32>
    %7 = vector.broadcast %6 : vector<1x64xf32> to vector<16x64xf32>
    %8 = arith.addf %5, %7 : vector<16x64xf32>
    %9 = math.tanh %8 : vector<16x64xf32>
    %10 = arith.truncf %9 : vector<16x64xf32> to vector<16x64xbf16>
    %c0_7 = arith.constant 0 : index
    %c0_8 = arith.constant 0 : index
    %11 = vector.load %arg5[%c0_7, %c0_8] : memref<16x64xbf16, #tpu.memory_space<vmem>>, vector<16x64xbf16>
    tpu.vector_store %arg5[%c0_7, %c0_8], %10 {strides = array<i32>} : memref<16x64xbf16, #tpu.memory_space<vmem>>, vector<16x64xbf16>,
    return
  }
  func.func @transform_0(%arg0: i32) -> (i32, i32) {
    %c0_i32 = arith.constant 0 : i32
    %c0_i32_0 = arith.constant 0 : i32
    return %arg0, %c0_i32 : i32, i32
  }
  func.func @transform_1(%arg0: i32) -> (i32, i32) {
    %c0_i32 = arith.constant 0 : i32
    %c0_i32_0 = arith.constant 0 : i32
    %c0_i32_1 = arith.constant 0 : i32
    return %c0_i32, %c0_i32_0 : i32, i32
  }
  func.func @transform_2(%arg0: i32) -> (i32, i32) {
    %c0_i32 = arith.constant 0 : i32
    %c0_i32_0 = arith.constant 0 : i32
    %c0_i32_1 = arith.constant 0 : i32
    return %c0_i32, %c0_i32_0 : i32, i32
  }
  func.func @transform_3(%arg0: i32) -> (i32, i32) {
    %c0_i32 = arith.constant 0 : i32
    %c0_i32_0 = arith.constant 0 : i32
    %c0_i32_1 = arith.constant 0 : i32
    return %c0_i32, %c0_i32_0 : i32, i32
  }
  func.func @transform_4(%arg0: i32) -> (i32, i32) {
    %c0_i32 = arith.constant 0 : i32
    %c0_i32_0 = arith.constant 0 : i32
    return %arg0, %c0_i32 : i32, i32
  }
}

module attributes {stable_mosaic.version = 11 : i64} {
  func.func @_gates0_kernel(%arg0: i32, %arg1: memref<16x64xbf16, #tpu.memory_space<vmem>>, %arg2: memref<64x128xbf16, #tpu.memory_space<vmem>>, %arg3: memref<64x128xbf16, #tpu.memory_space<vmem>>, %arg4: memref<1x128xf32, #tpu.memory_space<vmem>>, %arg5: memref<1x128xf32, #tpu.memory_space<vmem>>, %arg6: memref<16x128xf32, #tpu.memory_space<vmem>>, %arg7: memref<16x128xf32, #tpu.memory_space<vmem>>) attributes {dimension_semantics = [#tpu.dimension_semantics<parallel>], iteration_bounds = array<i64: 1>, scalar_prefetch = 0 : i64, scratch_operands = 0 : i64, tpu.core_type = #tpu.core_type<tc>, window_params = [{transform_indices = @transform_0, window_bounds = array<i64: 16, 64>}, {pipeline_mode = #tpu.pipeline_mode<synchronous>, transform_indices = @transform_1, window_bounds = array<i64: 64, 128>}, {pipeline_mode = #tpu.pipeline_mode<synchronous>, transform_indices = @transform_2, window_bounds = array<i64: 64, 128>}, {pipeline_mode = #tpu.pipeline_mode<synchronous>, transform_indices = @transform_3, window_bounds = array<i64: 1, 128>}, {pipeline_mode = #tpu.pipeline_mode<synchronous>, transform_indices = @transform_4, window_bounds = array<i64: 1, 128>}, {transform_indices = @transform_5, window_bounds = array<i64: 16, 128>}, {transform_indices = @transform_6, window_bounds = array<i64: 16, 128>}]} {
    %c0 = arith.constant 0 : index
    %c0_0 = arith.constant 0 : index
    %0 = vector.load %arg1[%c0, %c0_0] : memref<16x64xbf16, #tpu.memory_space<vmem>>, vector<16x64xbf16>
    %c0_1 = arith.constant 0 : index
    %c0_2 = arith.constant 0 : index
    %1 = vector.load %arg2[%c0_1, %c0_2] : memref<64x128xbf16, #tpu.memory_space<vmem>>, vector<64x128xbf16>
    %cst = arith.constant dense<0.000000e+00> : vector<16x128xf32>
    %2 = tpu.matmul %0, %1, %cst {dimension_numbers = #tpu.dot_dimension_numbers<[1], [0], [0], [1], [0, 0, 1, 1], [], []>} : vector<16x64xbf16>, vector<64x128xbf16>, vector<16x128xf32> -> vector<16x128xf32>
    %c0_3 = arith.constant 0 : index
    %c0_4 = arith.constant 0 : index
    %3 = vector.load %arg4[%c0_3, %c0_4] : memref<1x128xf32, #tpu.memory_space<vmem>>, vector<1x128xf32>
    %4 = vector.broadcast %3 : vector<1x128xf32> to vector<16x128xf32>
    %5 = arith.addf %2, %4 : vector<16x128xf32>
    %c0_5 = arith.constant 0 : index
    %c0_6 = arith.constant 0 : index
    %6 = vector.load %arg6[%c0_5, %c0_6] : memref<16x128xf32, #tpu.memory_space<vmem>>, vector<16x128xf32>
    tpu.vector_store %arg6[%c0_5, %c0_6], %5 {strides = array<i32>} : memref<16x128xf32, #tpu.memory_space<vmem>>, vector<16x128xf32>,
    %c0_7 = arith.constant 0 : index
    %c0_8 = arith.constant 0 : index
    %7 = vector.load %arg3[%c0_7, %c0_8] : memref<64x128xbf16, #tpu.memory_space<vmem>>, vector<64x128xbf16>
    %cst_9 = arith.constant dense<0.000000e+00> : vector<16x128xf32>
    %8 = tpu.matmul %0, %7, %cst_9 {dimension_numbers = #tpu.dot_dimension_numbers<[1], [0], [0], [1], [0, 0, 1, 1], [], []>} : vector<16x64xbf16>, vector<64x128xbf16>, vector<16x128xf32> -> vector<16x128xf32>
    %c0_10 = arith.constant 0 : index
    %c0_11 = arith.constant 0 : index
    %9 = vector.load %arg5[%c0_10, %c0_11] : memref<1x128xf32, #tpu.memory_space<vmem>>, vector<1x128xf32>
    %10 = vector.broadcast %9 : vector<1x128xf32> to vector<16x128xf32>
    %11 = arith.addf %8, %10 : vector<16x128xf32>
    %c0_12 = arith.constant 0 : index
    %c0_13 = arith.constant 0 : index
    %12 = vector.load %arg7[%c0_12, %c0_13] : memref<16x128xf32, #tpu.memory_space<vmem>>, vector<16x128xf32>
    tpu.vector_store %arg7[%c0_12, %c0_13], %11 {strides = array<i32>} : memref<16x128xf32, #tpu.memory_space<vmem>>, vector<16x128xf32>,
    return
  }
  func.func @transform_0(%arg0: i32) -> (i32, i32) {
    %c0_i32 = arith.constant 0 : i32
    %c0_i32_0 = arith.constant 0 : i32
    return %arg0, %c0_i32 : i32, i32
  }
  func.func @transform_1(%arg0: i32) -> (i32, i32) {
    %c0_i32 = arith.constant 0 : i32
    %c0_i32_0 = arith.constant 0 : i32
    %c0_i32_1 = arith.constant 0 : i32
    return %c0_i32, %c0_i32_0 : i32, i32
  }
  func.func @transform_2(%arg0: i32) -> (i32, i32) {
    %c0_i32 = arith.constant 0 : i32
    %c0_i32_0 = arith.constant 0 : i32
    %c0_i32_1 = arith.constant 0 : i32
    return %c0_i32, %c0_i32_0 : i32, i32
  }
  func.func @transform_3(%arg0: i32) -> (i32, i32) {
    %c0_i32 = arith.constant 0 : i32
    %c0_i32_0 = arith.constant 0 : i32
    %c0_i32_1 = arith.constant 0 : i32
    return %c0_i32, %c0_i32_0 : i32, i32
  }
  func.func @transform_4(%arg0: i32) -> (i32, i32) {
    %c0_i32 = arith.constant 0 : i32
    %c0_i32_0 = arith.constant 0 : i32
    %c0_i32_1 = arith.constant 0 : i32
    return %c0_i32, %c0_i32_0 : i32, i32
  }
  func.func @transform_5(%arg0: i32) -> (i32, i32) {
    %c0_i32 = arith.constant 0 : i32
    %c0_i32_0 = arith.constant 0 : i32
    return %arg0, %c0_i32 : i32, i32
  }
  func.func @transform_6(%arg0: i32) -> (i32, i32) {
    %c0_i32 = arith.constant 0 : i32
    %c0_i32_0 = arith.constant 0 : i32
    return %arg0, %c0_i32 : i32, i32
  }
}

module attributes {stable_mosaic.version = 11 : i64} {
  func.func @_bilstm_rec_kernel(%arg0: i32, %arg1: memref<8x2x128xf32, #tpu.memory_space<vmem>>, %arg2: memref<8x2x128xf32, #tpu.memory_space<vmem>>, %arg3: memref<32x128xbf16, #tpu.memory_space<vmem>>, %arg4: memref<32x128xbf16, #tpu.memory_space<vmem>>, %arg5: memref<8x2x32xbf16, #tpu.memory_space<vmem>>, %arg6: memref<8x2x32xbf16, #tpu.memory_space<vmem>>, %arg7: memref<2x32xf32, #tpu.memory_space<vmem>>, %arg8: memref<2x32xf32, #tpu.memory_space<vmem>>, %arg9: memref<2x32xf32, #tpu.memory_space<vmem>>, %arg10: memref<2x32xf32, #tpu.memory_space<vmem>>) attributes {dimension_semantics = [#tpu.dimension_semantics<arbitrary>], iteration_bounds = array<i64: 1>, scalar_prefetch = 0 : i64, scratch_operands = 4 : i64, tpu.core_type = #tpu.core_type<tc>, window_params = [{transform_indices = @transform_0, window_bounds = array<i64: 8, 2, 128>}, {transform_indices = @transform_1, window_bounds = array<i64: 8, 2, 128>}, {pipeline_mode = #tpu.pipeline_mode<synchronous>, transform_indices = @transform_2, window_bounds = array<i64: 32, 128>}, {pipeline_mode = #tpu.pipeline_mode<synchronous>, transform_indices = @transform_3, window_bounds = array<i64: 32, 128>}, {transform_indices = @transform_4, window_bounds = array<i64: 8, 2, 32>}, {transform_indices = @transform_5, window_bounds = array<i64: 8, 2, 32>}]} {
    %c0_i32 = arith.constant 0 : i32
    %0 = arith.cmpi eq, %arg0, %c0_i32 : i32
    %1 = arith.extui %0 : i1 to i32
    %c0_i32_0 = arith.constant 0 : i32
    %2 = arith.cmpi ne, %1, %c0_i32_0 : i32
    scf.if %2 {
      %cst_184 = arith.constant 0.000000e+00 : f32
      %595 = vector.broadcast %cst_184 : f32 to vector<2x32xf32>
      %c0_185 = arith.constant 0 : index
      %c0_186 = arith.constant 0 : index
      %596 = vector.load %arg7[%c0_185, %c0_186] : memref<2x32xf32, #tpu.memory_space<vmem>>, vector<2x32xf32>
      tpu.vector_store %arg7[%c0_185, %c0_186], %595 {strides = array<i32>} : memref<2x32xf32, #tpu.memory_space<vmem>>, vector<2x32xf32>,
      %cst_187 = arith.constant 0.000000e+00 : f32
      %597 = vector.broadcast %cst_187 : f32 to vector<2x32xf32>
      %c0_188 = arith.constant 0 : index
      %c0_189 = arith.constant 0 : index
      %598 = vector.load %arg8[%c0_188, %c0_189] : memref<2x32xf32, #tpu.memory_space<vmem>>, vector<2x32xf32>
      tpu.vector_store %arg8[%c0_188, %c0_189], %597 {strides = array<i32>} : memref<2x32xf32, #tpu.memory_space<vmem>>, vector<2x32xf32>,
      %cst_190 = arith.constant 0.000000e+00 : f32
      %599 = vector.broadcast %cst_190 : f32 to vector<2x32xf32>
      %c0_191 = arith.constant 0 : index
      %c0_192 = arith.constant 0 : index
      %600 = vector.load %arg9[%c0_191, %c0_192] : memref<2x32xf32, #tpu.memory_space<vmem>>, vector<2x32xf32>
      tpu.vector_store %arg9[%c0_191, %c0_192], %599 {strides = array<i32>} : memref<2x32xf32, #tpu.memory_space<vmem>>, vector<2x32xf32>,
      %cst_193 = arith.constant 0.000000e+00 : f32
      %601 = vector.broadcast %cst_193 : f32 to vector<2x32xf32>
      %c0_194 = arith.constant 0 : index
      %c0_195 = arith.constant 0 : index
      %602 = vector.load %arg10[%c0_194, %c0_195] : memref<2x32xf32, #tpu.memory_space<vmem>>, vector<2x32xf32>
      tpu.vector_store %arg10[%c0_194, %c0_195], %601 {strides = array<i32>} : memref<2x32xf32, #tpu.memory_space<vmem>>, vector<2x32xf32>,
    } else {
    }
    %c0 = arith.constant 0 : index
    %c0_1 = arith.constant 0 : index
    %3 = vector.load %arg7[%c0, %c0_1] : memref<2x32xf32, #tpu.memory_space<vmem>>, vector<2x32xf32>
    %c0_2 = arith.constant 0 : index
    %c0_3 = arith.constant 0 : index
    %4 = vector.load %arg8[%c0_2, %c0_3] : memref<2x32xf32, #tpu.memory_space<vmem>>, vector<2x32xf32>
    %c0_4 = arith.constant 0 : index
    %c0_5 = arith.constant 0 : index
    %5 = vector.load %arg9[%c0_4, %c0_5] : memref<2x32xf32, #tpu.memory_space<vmem>>, vector<2x32xf32>
    %c0_6 = arith.constant 0 : index
    %c0_7 = arith.constant 0 : index
    %6 = vector.load %arg10[%c0_6, %c0_7] : memref<2x32xf32, #tpu.memory_space<vmem>>, vector<2x32xf32>
    %c0_i32_8 = arith.constant 0 : i32
    %c7_i32 = arith.constant 7 : i32
    %7 = arith.subi %c7_i32, %c0_i32_8 : i32
    %8 = arith.index_cast %c0_i32_8 : i32 to index
    %c0_9 = arith.constant 0 : index
    %c0_10 = arith.constant 0 : index
    %9 = vector.load %arg1[%8, %c0_9, %c0_10] : memref<8x2x128xf32, #tpu.memory_space<vmem>>, vector<1x2x128xf32>
    %10 = vector.shape_cast %9 : vector<1x2x128xf32> to vector<2x128xf32>
    %11 = arith.truncf %3 : vector<2x32xf32> to vector<2x32xbf16>
    %c0_11 = arith.constant 0 : index
    %c0_12 = arith.constant 0 : index
    %12 = vector.load %arg3[%c0_11, %c0_12] : memref<32x128xbf16, #tpu.memory_space<vmem>>, vector<32x128xbf16>
    %cst = arith.constant dense<0.000000e+00> : vector<2x128xf32>
    %13 = tpu.matmul %11, %12, %cst {dimension_numbers = #tpu.dot_dimension_numbers<[1], [0], [0], [1], [0, 0, 1, 1], [], []>} : vector<2x32xbf16>, vector<32x128xbf16>, vector<2x128xf32> -> vector<2x128xf32>
    %14 = arith.addf %10, %13 : vector<2x128xf32>
    %15 = arith.index_cast %7 : i32 to index
    %c0_13 = arith.constant 0 : index
    %c0_14 = arith.constant 0 : index
    %16 = vector.load %arg2[%15, %c0_13, %c0_14] : memref<8x2x128xf32, #tpu.memory_space<vmem>>, vector<1x2x128xf32>
    %17 = vector.shape_cast %16 : vector<1x2x128xf32> to vector<2x128xf32>
    %18 = arith.truncf %5 : vector<2x32xf32> to vector<2x32xbf16>
    %c0_15 = arith.constant 0 : index
    %c0_16 = arith.constant 0 : index
    %19 = vector.load %arg4[%c0_15, %c0_16] : memref<32x128xbf16, #tpu.memory_space<vmem>>, vector<32x128xbf16>
    %cst_17 = arith.constant dense<0.000000e+00> : vector<2x128xf32>
    %20 = tpu.matmul %18, %19, %cst_17 {dimension_numbers = #tpu.dot_dimension_numbers<[1], [0], [0], [1], [0, 0, 1, 1], [], []>} : vector<2x32xbf16>, vector<32x128xbf16>, vector<2x128xf32> -> vector<2x128xf32>
    %21 = arith.addf %17, %20 : vector<2x128xf32>
    %22 = vector.extract_strided_slice %14 {offsets = [0, 0], sizes = [2, 32], strides = [1, 1]} : vector<2x128xf32> to vector<2x32xf32>
    %23 = arith.negf %22 : vector<2x32xf32>
    %24 = math.exp %23 : vector<2x32xf32>
    %cst_18 = arith.constant 1.000000e+00 : f32
    %25 = vector.broadcast %cst_18 : f32 to vector<2x32xf32>
    %26 = arith.addf %25, %24 : vector<2x32xf32>
    %27 = arith.divf %25, %26 : vector<2x32xf32>
    %28 = vector.extract_strided_slice %14 {offsets = [0, 32], sizes = [2, 32], strides = [1, 1]} : vector<2x128xf32> to vector<2x32xf32>
    %29 = arith.negf %28 : vector<2x32xf32>
    %30 = math.exp %29 : vector<2x32xf32>
    %cst_19 = arith.constant 1.000000e+00 : f32
    %31 = vector.broadcast %cst_19 : f32 to vector<2x32xf32>
    %32 = arith.addf %31, %30 : vector<2x32xf32>
    %33 = arith.divf %31, %32 : vector<2x32xf32>
    %34 = vector.extract_strided_slice %14 {offsets = [0, 64], sizes = [2, 32], strides = [1, 1]} : vector<2x128xf32> to vector<2x32xf32>
    %35 = math.tanh %34 : vector<2x32xf32>
    %36 = vector.extract_strided_slice %14 {offsets = [0, 96], sizes = [2, 32], strides = [1, 1]} : vector<2x128xf32> to vector<2x32xf32>
    %37 = arith.negf %36 : vector<2x32xf32>
    %38 = math.exp %37 : vector<2x32xf32>
    %cst_20 = arith.constant 1.000000e+00 : f32
    %39 = vector.broadcast %cst_20 : f32 to vector<2x32xf32>
    %40 = arith.addf %39, %38 : vector<2x32xf32>
    %41 = arith.divf %39, %40 : vector<2x32xf32>
    %42 = arith.mulf %33, %4 : vector<2x32xf32>
    %43 = arith.mulf %27, %35 : vector<2x32xf32>
    %44 = arith.addf %42, %43 : vector<2x32xf32>
    %45 = math.tanh %44 : vector<2x32xf32>
    %46 = arith.mulf %41, %45 : vector<2x32xf32>
    %47 = vector.extract_strided_slice %21 {offsets = [0, 0], sizes = [2, 32], strides = [1, 1]} : vector<2x128xf32> to vector<2x32xf32>
    %48 = arith.negf %47 : vector<2x32xf32>
    %49 = math.exp %48 : vector<2x32xf32>
    %cst_21 = arith.constant 1.000000e+00 : f32
    %50 = vector.broadcast %cst_21 : f32 to vector<2x32xf32>
    %51 = arith.addf %50, %49 : vector<2x32xf32>
    %52 = arith.divf %50, %51 : vector<2x32xf32>
    %53 = vector.extract_strided_slice %21 {offsets = [0, 32], sizes = [2, 32], strides = [1, 1]} : vector<2x128xf32> to vector<2x32xf32>
    %54 = arith.negf %53 : vector<2x32xf32>
    %55 = math.exp %54 : vector<2x32xf32>
    %cst_22 = arith.constant 1.000000e+00 : f32
    %56 = vector.broadcast %cst_22 : f32 to vector<2x32xf32>
    %57 = arith.addf %56, %55 : vector<2x32xf32>
    %58 = arith.divf %56, %57 : vector<2x32xf32>
    %59 = vector.extract_strided_slice %21 {offsets = [0, 64], sizes = [2, 32], strides = [1, 1]} : vector<2x128xf32> to vector<2x32xf32>
    %60 = math.tanh %59 : vector<2x32xf32>
    %61 = vector.extract_strided_slice %21 {offsets = [0, 96], sizes = [2, 32], strides = [1, 1]} : vector<2x128xf32> to vector<2x32xf32>
    %62 = arith.negf %61 : vector<2x32xf32>
    %63 = math.exp %62 : vector<2x32xf32>
    %cst_23 = arith.constant 1.000000e+00 : f32
    %64 = vector.broadcast %cst_23 : f32 to vector<2x32xf32>
    %65 = arith.addf %64, %63 : vector<2x32xf32>
    %66 = arith.divf %64, %65 : vector<2x32xf32>
    %67 = arith.mulf %58, %6 : vector<2x32xf32>
    %68 = arith.mulf %52, %60 : vector<2x32xf32>
    %69 = arith.addf %67, %68 : vector<2x32xf32>
    %70 = math.tanh %69 : vector<2x32xf32>
    %71 = arith.mulf %66, %70 : vector<2x32xf32>
    %72 = vector.shape_cast %46 : vector<2x32xf32> to vector<1x2x32xf32>
    %73 = arith.truncf %72 : vector<1x2x32xf32> to vector<1x2x32xbf16>
    %74 = arith.index_cast %c0_i32_8 : i32 to index
    %c0_24 = arith.constant 0 : index
    %c0_25 = arith.constant 0 : index
    %75 = vector.load %arg5[%74, %c0_24, %c0_25] : memref<8x2x32xbf16, #tpu.memory_space<vmem>>, vector<1x2x32xbf16>
    tpu.vector_store %arg5[%74, %c0_24, %c0_25], %73 {strides = array<i32>} : memref<8x2x32xbf16, #tpu.memory_space<vmem>>, vector<1x2x32xbf16>,
    %76 = vector.shape_cast %71 : vector<2x32xf32> to vector<1x2x32xf32>
    %77 = arith.truncf %76 : vector<1x2x32xf32> to vector<1x2x32xbf16>
    %78 = arith.index_cast %7 : i32 to index
    %c0_26 = arith.constant 0 : index
    %c0_27 = arith.constant 0 : index
    %79 = vector.load %arg6[%78, %c0_26, %c0_27] : memref<8x2x32xbf16, #tpu.memory_space<vmem>>, vector<1x2x32xbf16>
    tpu.vector_store %arg6[%78, %c0_26, %c0_27], %77 {strides = array<i32>} : memref<8x2x32xbf16, #tpu.memory_space<vmem>>, vector<1x2x32xbf16>,
    %c1_i32 = arith.constant 1 : i32
    %c7_i32_28 = arith.constant 7 : i32
    %80 = arith.subi %c7_i32_28, %c1_i32 : i32
    %81 = arith.index_cast %c1_i32 : i32 to index
    %c0_29 = arith.constant 0 : index
    %c0_30 = arith.constant 0 : index
    %82 = vector.load %arg1[%81, %c0_29, %c0_30] : memref<8x2x128xf32, #tpu.memory_space<vmem>>, vector<1x2x128xf32>
    %83 = vector.shape_cast %82 : vector<1x2x128xf32> to vector<2x128xf32>
    %84 = arith.truncf %46 : vector<2x32xf32> to vector<2x32xbf16>
    %c0_31 = arith.constant 0 : index
    %c0_32 = arith.constant 0 : index
    %85 = vector.load %arg3[%c0_31, %c0_32] : memref<32x128xbf16, #tpu.memory_space<vmem>>, vector<32x128xbf16>
    %cst_33 = arith.constant dense<0.000000e+00> : vector<2x128xf32>
    %86 = tpu.matmul %84, %85, %cst_33 {dimension_numbers = #tpu.dot_dimension_numbers<[1], [0], [0], [1], [0, 0, 1, 1], [], []>} : vector<2x32xbf16>, vector<32x128xbf16>, vector<2x128xf32> -> vector<2x128xf32>
    %87 = arith.addf %83, %86 : vector<2x128xf32>
    %88 = arith.index_cast %80 : i32 to index
    %c0_34 = arith.constant 0 : index
    %c0_35 = arith.constant 0 : index
    %89 = vector.load %arg2[%88, %c0_34, %c0_35] : memref<8x2x128xf32, #tpu.memory_space<vmem>>, vector<1x2x128xf32>
    %90 = vector.shape_cast %89 : vector<1x2x128xf32> to vector<2x128xf32>
    %91 = arith.truncf %71 : vector<2x32xf32> to vector<2x32xbf16>
    %c0_36 = arith.constant 0 : index
    %c0_37 = arith.constant 0 : index
    %92 = vector.load %arg4[%c0_36, %c0_37] : memref<32x128xbf16, #tpu.memory_space<vmem>>, vector<32x128xbf16>
    %cst_38 = arith.constant dense<0.000000e+00> : vector<2x128xf32>
    %93 = tpu.matmul %91, %92, %cst_38 {dimension_numbers = #tpu.dot_dimension_numbers<[1], [0], [0], [1], [0, 0, 1, 1], [], []>} : vector<2x32xbf16>, vector<32x128xbf16>, vector<2x128xf32> -> vector<2x128xf32>
    %94 = arith.addf %90, %93 : vector<2x128xf32>
    %95 = vector.extract_strided_slice %87 {offsets = [0, 0], sizes = [2, 32], strides = [1, 1]} : vector<2x128xf32> to vector<2x32xf32>
    %96 = arith.negf %95 : vector<2x32xf32>
    %97 = math.exp %96 : vector<2x32xf32>
    %cst_39 = arith.constant 1.000000e+00 : f32
    %98 = vector.broadcast %cst_39 : f32 to vector<2x32xf32>
    %99 = arith.addf %98, %97 : vector<2x32xf32>
    %100 = arith.divf %98, %99 : vector<2x32xf32>
    %101 = vector.extract_strided_slice %87 {offsets = [0, 32], sizes = [2, 32], strides = [1, 1]} : vector<2x128xf32> to vector<2x32xf32>
    %102 = arith.negf %101 : vector<2x32xf32>
    %103 = math.exp %102 : vector<2x32xf32>
    %cst_40 = arith.constant 1.000000e+00 : f32
    %104 = vector.broadcast %cst_40 : f32 to vector<2x32xf32>
    %105 = arith.addf %104, %103 : vector<2x32xf32>
    %106 = arith.divf %104, %105 : vector<2x32xf32>
    %107 = vector.extract_strided_slice %87 {offsets = [0, 64], sizes = [2, 32], strides = [1, 1]} : vector<2x128xf32> to vector<2x32xf32>
    %108 = math.tanh %107 : vector<2x32xf32>
    %109 = vector.extract_strided_slice %87 {offsets = [0, 96], sizes = [2, 32], strides = [1, 1]} : vector<2x128xf32> to vector<2x32xf32>
    %110 = arith.negf %109 : vector<2x32xf32>
    %111 = math.exp %110 : vector<2x32xf32>
    %cst_41 = arith.constant 1.000000e+00 : f32
    %112 = vector.broadcast %cst_41 : f32 to vector<2x32xf32>
    %113 = arith.addf %112, %111 : vector<2x32xf32>
    %114 = arith.divf %112, %113 : vector<2x32xf32>
    %115 = arith.mulf %106, %44 : vector<2x32xf32>
    %116 = arith.mulf %100, %108 : vector<2x32xf32>
    %117 = arith.addf %115, %116 : vector<2x32xf32>
    %118 = math.tanh %117 : vector<2x32xf32>
    %119 = arith.mulf %114, %118 : vector<2x32xf32>
    %120 = vector.extract_strided_slice %94 {offsets = [0, 0], sizes = [2, 32], strides = [1, 1]} : vector<2x128xf32> to vector<2x32xf32>
    %121 = arith.negf %120 : vector<2x32xf32>
    %122 = math.exp %121 : vector<2x32xf32>
    %cst_42 = arith.constant 1.000000e+00 : f32
    %123 = vector.broadcast %cst_42 : f32 to vector<2x32xf32>
    %124 = arith.addf %123, %122 : vector<2x32xf32>
    %125 = arith.divf %123, %124 : vector<2x32xf32>
    %126 = vector.extract_strided_slice %94 {offsets = [0, 32], sizes = [2, 32], strides = [1, 1]} : vector<2x128xf32> to vector<2x32xf32>
    %127 = arith.negf %126 : vector<2x32xf32>
    %128 = math.exp %127 : vector<2x32xf32>
    %cst_43 = arith.constant 1.000000e+00 : f32
    %129 = vector.broadcast %cst_43 : f32 to vector<2x32xf32>
    %130 = arith.addf %129, %128 : vector<2x32xf32>
    %131 = arith.divf %129, %130 : vector<2x32xf32>
    %132 = vector.extract_strided_slice %94 {offsets = [0, 64], sizes = [2, 32], strides = [1, 1]} : vector<2x128xf32> to vector<2x32xf32>
    %133 = math.tanh %132 : vector<2x32xf32>
    %134 = vector.extract_strided_slice %94 {offsets = [0, 96], sizes = [2, 32], strides = [1, 1]} : vector<2x128xf32> to vector<2x32xf32>
    %135 = arith.negf %134 : vector<2x32xf32>
    %136 = math.exp %135 : vector<2x32xf32>
    %cst_44 = arith.constant 1.000000e+00 : f32
    %137 = vector.broadcast %cst_44 : f32 to vector<2x32xf32>
    %138 = arith.addf %137, %136 : vector<2x32xf32>
    %139 = arith.divf %137, %138 : vector<2x32xf32>
    %140 = arith.mulf %131, %69 : vector<2x32xf32>
    %141 = arith.mulf %125, %133 : vector<2x32xf32>
    %142 = arith.addf %140, %141 : vector<2x32xf32>
    %143 = math.tanh %142 : vector<2x32xf32>
    %144 = arith.mulf %139, %143 : vector<2x32xf32>
    %145 = vector.shape_cast %119 : vector<2x32xf32> to vector<1x2x32xf32>
    %146 = arith.truncf %145 : vector<1x2x32xf32> to vector<1x2x32xbf16>
    %147 = arith.index_cast %c1_i32 : i32 to index
    %c0_45 = arith.constant 0 : index
    %c0_46 = arith.constant 0 : index
    %148 = vector.load %arg5[%147, %c0_45, %c0_46] : memref<8x2x32xbf16, #tpu.memory_space<vmem>>, vector<1x2x32xbf16>
    tpu.vector_store %arg5[%147, %c0_45, %c0_46], %146 {strides = array<i32>} : memref<8x2x32xbf16, #tpu.memory_space<vmem>>, vector<1x2x32xbf16>,
    %149 = vector.shape_cast %144 : vector<2x32xf32> to vector<1x2x32xf32>
    %150 = arith.truncf %149 : vector<1x2x32xf32> to vector<1x2x32xbf16>
    %151 = arith.index_cast %80 : i32 to index
    %c0_47 = arith.constant 0 : index
    %c0_48 = arith.constant 0 : index
    %152 = vector.load %arg6[%151, %c0_47, %c0_48] : memref<8x2x32xbf16, #tpu.memory_space<vmem>>, vector<1x2x32xbf16>
    tpu.vector_store %arg6[%151, %c0_47, %c0_48], %150 {strides = array<i32>} : memref<8x2x32xbf16, #tpu.memory_space<vmem>>, vector<1x2x32xbf16>,
    %c2_i32 = arith.constant 2 : i32
    %c7_i32_49 = arith.constant 7 : i32
    %153 = arith.subi %c7_i32_49, %c2_i32 : i32
    %154 = arith.index_cast %c2_i32 : i32 to index
    %c0_50 = arith.constant 0 : index
    %c0_51 = arith.constant 0 : index
    %155 = vector.load %arg1[%154, %c0_50, %c0_51] : memref<8x2x128xf32, #tpu.memory_space<vmem>>, vector<1x2x128xf32>
    %156 = vector.shape_cast %155 : vector<1x2x128xf32> to vector<2x128xf32>
    %157 = arith.truncf %119 : vector<2x32xf32> to vector<2x32xbf16>
    %c0_52 = arith.constant 0 : index
    %c0_53 = arith.constant 0 : index
    %158 = vector.load %arg3[%c0_52, %c0_53] : memref<32x128xbf16, #tpu.memory_space<vmem>>, vector<32x128xbf16>
    %cst_54 = arith.constant dense<0.000000e+00> : vector<2x128xf32>
    %159 = tpu.matmul %157, %158, %cst_54 {dimension_numbers = #tpu.dot_dimension_numbers<[1], [0], [0], [1], [0, 0, 1, 1], [], []>} : vector<2x32xbf16>, vector<32x128xbf16>, vector<2x128xf32> -> vector<2x128xf32>
    %160 = arith.addf %156, %159 : vector<2x128xf32>
    %161 = arith.index_cast %153 : i32 to index
    %c0_55 = arith.constant 0 : index
    %c0_56 = arith.constant 0 : index
    %162 = vector.load %arg2[%161, %c0_55, %c0_56] : memref<8x2x128xf32, #tpu.memory_space<vmem>>, vector<1x2x128xf32>
    %163 = vector.shape_cast %162 : vector<1x2x128xf32> to vector<2x128xf32>
    %164 = arith.truncf %144 : vector<2x32xf32> to vector<2x32xbf16>
    %c0_57 = arith.constant 0 : index
    %c0_58 = arith.constant 0 : index
    %165 = vector.load %arg4[%c0_57, %c0_58] : memref<32x128xbf16, #tpu.memory_space<vmem>>, vector<32x128xbf16>
    %cst_59 = arith.constant dense<0.000000e+00> : vector<2x128xf32>
    %166 = tpu.matmul %164, %165, %cst_59 {dimension_numbers = #tpu.dot_dimension_numbers<[1], [0], [0], [1], [0, 0, 1, 1], [], []>} : vector<2x32xbf16>, vector<32x128xbf16>, vector<2x128xf32> -> vector<2x128xf32>
    %167 = arith.addf %163, %166 : vector<2x128xf32>
    %168 = vector.extract_strided_slice %160 {offsets = [0, 0], sizes = [2, 32], strides = [1, 1]} : vector<2x128xf32> to vector<2x32xf32>
    %169 = arith.negf %168 : vector<2x32xf32>
    %170 = math.exp %169 : vector<2x32xf32>
    %cst_60 = arith.constant 1.000000e+00 : f32
    %171 = vector.broadcast %cst_60 : f32 to vector<2x32xf32>
    %172 = arith.addf %171, %170 : vector<2x32xf32>
    %173 = arith.divf %171, %172 : vector<2x32xf32>
    %174 = vector.extract_strided_slice %160 {offsets = [0, 32], sizes = [2, 32], strides = [1, 1]} : vector<2x128xf32> to vector<2x32xf32>
    %175 = arith.negf %174 : vector<2x32xf32>
    %176 = math.exp %175 : vector<2x32xf32>
    %cst_61 = arith.constant 1.000000e+00 : f32
    %177 = vector.broadcast %cst_61 : f32 to vector<2x32xf32>
    %178 = arith.addf %177, %176 : vector<2x32xf32>
    %179 = arith.divf %177, %178 : vector<2x32xf32>
    %180 = vector.extract_strided_slice %160 {offsets = [0, 64], sizes = [2, 32], strides = [1, 1]} : vector<2x128xf32> to vector<2x32xf32>
    %181 = math.tanh %180 : vector<2x32xf32>
    %182 = vector.extract_strided_slice %160 {offsets = [0, 96], sizes = [2, 32], strides = [1, 1]} : vector<2x128xf32> to vector<2x32xf32>
    %183 = arith.negf %182 : vector<2x32xf32>
    %184 = math.exp %183 : vector<2x32xf32>
    %cst_62 = arith.constant 1.000000e+00 : f32
    %185 = vector.broadcast %cst_62 : f32 to vector<2x32xf32>
    %186 = arith.addf %185, %184 : vector<2x32xf32>
    %187 = arith.divf %185, %186 : vector<2x32xf32>
    %188 = arith.mulf %179, %117 : vector<2x32xf32>
    %189 = arith.mulf %173, %181 : vector<2x32xf32>
    %190 = arith.addf %188, %189 : vector<2x32xf32>
    %191 = math.tanh %190 : vector<2x32xf32>
    %192 = arith.mulf %187, %191 : vector<2x32xf32>
    %193 = vector.extract_strided_slice %167 {offsets = [0, 0], sizes = [2, 32], strides = [1, 1]} : vector<2x128xf32> to vector<2x32xf32>
    %194 = arith.negf %193 : vector<2x32xf32>
    %195 = math.exp %194 : vector<2x32xf32>
    %cst_63 = arith.constant 1.000000e+00 : f32
    %196 = vector.broadcast %cst_63 : f32 to vector<2x32xf32>
    %197 = arith.addf %196, %195 : vector<2x32xf32>
    %198 = arith.divf %196, %197 : vector<2x32xf32>
    %199 = vector.extract_strided_slice %167 {offsets = [0, 32], sizes = [2, 32], strides = [1, 1]} : vector<2x128xf32> to vector<2x32xf32>
    %200 = arith.negf %199 : vector<2x32xf32>
    %201 = math.exp %200 : vector<2x32xf32>
    %cst_64 = arith.constant 1.000000e+00 : f32
    %202 = vector.broadcast %cst_64 : f32 to vector<2x32xf32>
    %203 = arith.addf %202, %201 : vector<2x32xf32>
    %204 = arith.divf %202, %203 : vector<2x32xf32>
    %205 = vector.extract_strided_slice %167 {offsets = [0, 64], sizes = [2, 32], strides = [1, 1]} : vector<2x128xf32> to vector<2x32xf32>
    %206 = math.tanh %205 : vector<2x32xf32>
    %207 = vector.extract_strided_slice %167 {offsets = [0, 96], sizes = [2, 32], strides = [1, 1]} : vector<2x128xf32> to vector<2x32xf32>
    %208 = arith.negf %207 : vector<2x32xf32>
    %209 = math.exp %208 : vector<2x32xf32>
    %cst_65 = arith.constant 1.000000e+00 : f32
    %210 = vector.broadcast %cst_65 : f32 to vector<2x32xf32>
    %211 = arith.addf %210, %209 : vector<2x32xf32>
    %212 = arith.divf %210, %211 : vector<2x32xf32>
    %213 = arith.mulf %204, %142 : vector<2x32xf32>
    %214 = arith.mulf %198, %206 : vector<2x32xf32>
    %215 = arith.addf %213, %214 : vector<2x32xf32>
    %216 = math.tanh %215 : vector<2x32xf32>
    %217 = arith.mulf %212, %216 : vector<2x32xf32>
    %218 = vector.shape_cast %192 : vector<2x32xf32> to vector<1x2x32xf32>
    %219 = arith.truncf %218 : vector<1x2x32xf32> to vector<1x2x32xbf16>
    %220 = arith.index_cast %c2_i32 : i32 to index
    %c0_66 = arith.constant 0 : index
    %c0_67 = arith.constant 0 : index
    %221 = vector.load %arg5[%220, %c0_66, %c0_67] : memref<8x2x32xbf16, #tpu.memory_space<vmem>>, vector<1x2x32xbf16>
    tpu.vector_store %arg5[%220, %c0_66, %c0_67], %219 {strides = array<i32>} : memref<8x2x32xbf16, #tpu.memory_space<vmem>>, vector<1x2x32xbf16>,
    %222 = vector.shape_cast %217 : vector<2x32xf32> to vector<1x2x32xf32>
    %223 = arith.truncf %222 : vector<1x2x32xf32> to vector<1x2x32xbf16>
    %224 = arith.index_cast %153 : i32 to index
    %c0_68 = arith.constant 0 : index
    %c0_69 = arith.constant 0 : index
    %225 = vector.load %arg6[%224, %c0_68, %c0_69] : memref<8x2x32xbf16, #tpu.memory_space<vmem>>, vector<1x2x32xbf16>
    tpu.vector_store %arg6[%224, %c0_68, %c0_69], %223 {strides = array<i32>} : memref<8x2x32xbf16, #tpu.memory_space<vmem>>, vector<1x2x32xbf16>,
    %c3_i32 = arith.constant 3 : i32
    %c7_i32_70 = arith.constant 7 : i32
    %226 = arith.subi %c7_i32_70, %c3_i32 : i32
    %227 = arith.index_cast %c3_i32 : i32 to index
    %c0_71 = arith.constant 0 : index
    %c0_72 = arith.constant 0 : index
    %228 = vector.load %arg1[%227, %c0_71, %c0_72] : memref<8x2x128xf32, #tpu.memory_space<vmem>>, vector<1x2x128xf32>
    %229 = vector.shape_cast %228 : vector<1x2x128xf32> to vector<2x128xf32>
    %230 = arith.truncf %192 : vector<2x32xf32> to vector<2x32xbf16>
    %c0_73 = arith.constant 0 : index
    %c0_74 = arith.constant 0 : index
    %231 = vector.load %arg3[%c0_73, %c0_74] : memref<32x128xbf16, #tpu.memory_space<vmem>>, vector<32x128xbf16>
    %cst_75 = arith.constant dense<0.000000e+00> : vector<2x128xf32>
    %232 = tpu.matmul %230, %231, %cst_75 {dimension_numbers = #tpu.dot_dimension_numbers<[1], [0], [0], [1], [0, 0, 1, 1], [], []>} : vector<2x32xbf16>, vector<32x128xbf16>, vector<2x128xf32> -> vector<2x128xf32>
    %233 = arith.addf %229, %232 : vector<2x128xf32>
    %234 = arith.index_cast %226 : i32 to index
    %c0_76 = arith.constant 0 : index
    %c0_77 = arith.constant 0 : index
    %235 = vector.load %arg2[%234, %c0_76, %c0_77] : memref<8x2x128xf32, #tpu.memory_space<vmem>>, vector<1x2x128xf32>
    %236 = vector.shape_cast %235 : vector<1x2x128xf32> to vector<2x128xf32>
    %237 = arith.truncf %217 : vector<2x32xf32> to vector<2x32xbf16>
    %c0_78 = arith.constant 0 : index
    %c0_79 = arith.constant 0 : index
    %238 = vector.load %arg4[%c0_78, %c0_79] : memref<32x128xbf16, #tpu.memory_space<vmem>>, vector<32x128xbf16>
    %cst_80 = arith.constant dense<0.000000e+00> : vector<2x128xf32>
    %239 = tpu.matmul %237, %238, %cst_80 {dimension_numbers = #tpu.dot_dimension_numbers<[1], [0], [0], [1], [0, 0, 1, 1], [], []>} : vector<2x32xbf16>, vector<32x128xbf16>, vector<2x128xf32> -> vector<2x128xf32>
    %240 = arith.addf %236, %239 : vector<2x128xf32>
    %241 = vector.extract_strided_slice %233 {offsets = [0, 0], sizes = [2, 32], strides = [1, 1]} : vector<2x128xf32> to vector<2x32xf32>
    %242 = arith.negf %241 : vector<2x32xf32>
    %243 = math.exp %242 : vector<2x32xf32>
    %cst_81 = arith.constant 1.000000e+00 : f32
    %244 = vector.broadcast %cst_81 : f32 to vector<2x32xf32>
    %245 = arith.addf %244, %243 : vector<2x32xf32>
    %246 = arith.divf %244, %245 : vector<2x32xf32>
    %247 = vector.extract_strided_slice %233 {offsets = [0, 32], sizes = [2, 32], strides = [1, 1]} : vector<2x128xf32> to vector<2x32xf32>
    %248 = arith.negf %247 : vector<2x32xf32>
    %249 = math.exp %248 : vector<2x32xf32>
    %cst_82 = arith.constant 1.000000e+00 : f32
    %250 = vector.broadcast %cst_82 : f32 to vector<2x32xf32>
    %251 = arith.addf %250, %249 : vector<2x32xf32>
    %252 = arith.divf %250, %251 : vector<2x32xf32>
    %253 = vector.extract_strided_slice %233 {offsets = [0, 64], sizes = [2, 32], strides = [1, 1]} : vector<2x128xf32> to vector<2x32xf32>
    %254 = math.tanh %253 : vector<2x32xf32>
    %255 = vector.extract_strided_slice %233 {offsets = [0, 96], sizes = [2, 32], strides = [1, 1]} : vector<2x128xf32> to vector<2x32xf32>
    %256 = arith.negf %255 : vector<2x32xf32>
    %257 = math.exp %256 : vector<2x32xf32>
    %cst_83 = arith.constant 1.000000e+00 : f32
    %258 = vector.broadcast %cst_83 : f32 to vector<2x32xf32>
    %259 = arith.addf %258, %257 : vector<2x32xf32>
    %260 = arith.divf %258, %259 : vector<2x32xf32>
    %261 = arith.mulf %252, %190 : vector<2x32xf32>
    %262 = arith.mulf %246, %254 : vector<2x32xf32>
    %263 = arith.addf %261, %262 : vector<2x32xf32>
    %264 = math.tanh %263 : vector<2x32xf32>
    %265 = arith.mulf %260, %264 : vector<2x32xf32>
    %266 = vector.extract_strided_slice %240 {offsets = [0, 0], sizes = [2, 32], strides = [1, 1]} : vector<2x128xf32> to vector<2x32xf32>
    %267 = arith.negf %266 : vector<2x32xf32>
    %268 = math.exp %267 : vector<2x32xf32>
    %cst_84 = arith.constant 1.000000e+00 : f32
    %269 = vector.broadcast %cst_84 : f32 to vector<2x32xf32>
    %270 = arith.addf %269, %268 : vector<2x32xf32>
    %271 = arith.divf %269, %270 : vector<2x32xf32>
    %272 = vector.extract_strided_slice %240 {offsets = [0, 32], sizes = [2, 32], strides = [1, 1]} : vector<2x128xf32> to vector<2x32xf32>
    %273 = arith.negf %272 : vector<2x32xf32>
    %274 = math.exp %273 : vector<2x32xf32>
    %cst_85 = arith.constant 1.000000e+00 : f32
    %275 = vector.broadcast %cst_85 : f32 to vector<2x32xf32>
    %276 = arith.addf %275, %274 : vector<2x32xf32>
    %277 = arith.divf %275, %276 : vector<2x32xf32>
    %278 = vector.extract_strided_slice %240 {offsets = [0, 64], sizes = [2, 32], strides = [1, 1]} : vector<2x128xf32> to vector<2x32xf32>
    %279 = math.tanh %278 : vector<2x32xf32>
    %280 = vector.extract_strided_slice %240 {offsets = [0, 96], sizes = [2, 32], strides = [1, 1]} : vector<2x128xf32> to vector<2x32xf32>
    %281 = arith.negf %280 : vector<2x32xf32>
    %282 = math.exp %281 : vector<2x32xf32>
    %cst_86 = arith.constant 1.000000e+00 : f32
    %283 = vector.broadcast %cst_86 : f32 to vector<2x32xf32>
    %284 = arith.addf %283, %282 : vector<2x32xf32>
    %285 = arith.divf %283, %284 : vector<2x32xf32>
    %286 = arith.mulf %277, %215 : vector<2x32xf32>
    %287 = arith.mulf %271, %279 : vector<2x32xf32>
    %288 = arith.addf %286, %287 : vector<2x32xf32>
    %289 = math.tanh %288 : vector<2x32xf32>
    %290 = arith.mulf %285, %289 : vector<2x32xf32>
    %291 = vector.shape_cast %265 : vector<2x32xf32> to vector<1x2x32xf32>
    %292 = arith.truncf %291 : vector<1x2x32xf32> to vector<1x2x32xbf16>
    %293 = arith.index_cast %c3_i32 : i32 to index
    %c0_87 = arith.constant 0 : index
    %c0_88 = arith.constant 0 : index
    %294 = vector.load %arg5[%293, %c0_87, %c0_88] : memref<8x2x32xbf16, #tpu.memory_space<vmem>>, vector<1x2x32xbf16>
    tpu.vector_store %arg5[%293, %c0_87, %c0_88], %292 {strides = array<i32>} : memref<8x2x32xbf16, #tpu.memory_space<vmem>>, vector<1x2x32xbf16>,
    %295 = vector.shape_cast %290 : vector<2x32xf32> to vector<1x2x32xf32>
    %296 = arith.truncf %295 : vector<1x2x32xf32> to vector<1x2x32xbf16>
    %297 = arith.index_cast %226 : i32 to index
    %c0_89 = arith.constant 0 : index
    %c0_90 = arith.constant 0 : index
    %298 = vector.load %arg6[%297, %c0_89, %c0_90] : memref<8x2x32xbf16, #tpu.memory_space<vmem>>, vector<1x2x32xbf16>
    tpu.vector_store %arg6[%297, %c0_89, %c0_90], %296 {strides = array<i32>} : memref<8x2x32xbf16, #tpu.memory_space<vmem>>, vector<1x2x32xbf16>,
    %c4_i32 = arith.constant 4 : i32
    %c7_i32_91 = arith.constant 7 : i32
    %299 = arith.subi %c7_i32_91, %c4_i32 : i32
    %300 = arith.index_cast %c4_i32 : i32 to index
    %c0_92 = arith.constant 0 : index
    %c0_93 = arith.constant 0 : index
    %301 = vector.load %arg1[%300, %c0_92, %c0_93] : memref<8x2x128xf32, #tpu.memory_space<vmem>>, vector<1x2x128xf32>
    %302 = vector.shape_cast %301 : vector<1x2x128xf32> to vector<2x128xf32>
    %303 = arith.truncf %265 : vector<2x32xf32> to vector<2x32xbf16>
    %c0_94 = arith.constant 0 : index
    %c0_95 = arith.constant 0 : index
    %304 = vector.load %arg3[%c0_94, %c0_95] : memref<32x128xbf16, #tpu.memory_space<vmem>>, vector<32x128xbf16>
    %cst_96 = arith.constant dense<0.000000e+00> : vector<2x128xf32>
    %305 = tpu.matmul %303, %304, %cst_96 {dimension_numbers = #tpu.dot_dimension_numbers<[1], [0], [0], [1], [0, 0, 1, 1], [], []>} : vector<2x32xbf16>, vector<32x128xbf16>, vector<2x128xf32> -> vector<2x128xf32>
    %306 = arith.addf %302, %305 : vector<2x128xf32>
    %307 = arith.index_cast %299 : i32 to index
    %c0_97 = arith.constant 0 : index
    %c0_98 = arith.constant 0 : index
    %308 = vector.load %arg2[%307, %c0_97, %c0_98] : memref<8x2x128xf32, #tpu.memory_space<vmem>>, vector<1x2x128xf32>
    %309 = vector.shape_cast %308 : vector<1x2x128xf32> to vector<2x128xf32>
    %310 = arith.truncf %290 : vector<2x32xf32> to vector<2x32xbf16>
    %c0_99 = arith.constant 0 : index
    %c0_100 = arith.constant 0 : index
    %311 = vector.load %arg4[%c0_99, %c0_100] : memref<32x128xbf16, #tpu.memory_space<vmem>>, vector<32x128xbf16>
    %cst_101 = arith.constant dense<0.000000e+00> : vector<2x128xf32>
    %312 = tpu.matmul %310, %311, %cst_101 {dimension_numbers = #tpu.dot_dimension_numbers<[1], [0], [0], [1], [0, 0, 1, 1], [], []>} : vector<2x32xbf16>, vector<32x128xbf16>, vector<2x128xf32> -> vector<2x128xf32>
    %313 = arith.addf %309, %312 : vector<2x128xf32>
    %314 = vector.extract_strided_slice %306 {offsets = [0, 0], sizes = [2, 32], strides = [1, 1]} : vector<2x128xf32> to vector<2x32xf32>
    %315 = arith.negf %314 : vector<2x32xf32>
    %316 = math.exp %315 : vector<2x32xf32>
    %cst_102 = arith.constant 1.000000e+00 : f32
    %317 = vector.broadcast %cst_102 : f32 to vector<2x32xf32>
    %318 = arith.addf %317, %316 : vector<2x32xf32>
    %319 = arith.divf %317, %318 : vector<2x32xf32>
    %320 = vector.extract_strided_slice %306 {offsets = [0, 32], sizes = [2, 32], strides = [1, 1]} : vector<2x128xf32> to vector<2x32xf32>
    %321 = arith.negf %320 : vector<2x32xf32>
    %322 = math.exp %321 : vector<2x32xf32>
    %cst_103 = arith.constant 1.000000e+00 : f32
    %323 = vector.broadcast %cst_103 : f32 to vector<2x32xf32>
    %324 = arith.addf %323, %322 : vector<2x32xf32>
    %325 = arith.divf %323, %324 : vector<2x32xf32>
    %326 = vector.extract_strided_slice %306 {offsets = [0, 64], sizes = [2, 32], strides = [1, 1]} : vector<2x128xf32> to vector<2x32xf32>
    %327 = math.tanh %326 : vector<2x32xf32>
    %328 = vector.extract_strided_slice %306 {offsets = [0, 96], sizes = [2, 32], strides = [1, 1]} : vector<2x128xf32> to vector<2x32xf32>
    %329 = arith.negf %328 : vector<2x32xf32>
    %330 = math.exp %329 : vector<2x32xf32>
    %cst_104 = arith.constant 1.000000e+00 : f32
    %331 = vector.broadcast %cst_104 : f32 to vector<2x32xf32>
    %332 = arith.addf %331, %330 : vector<2x32xf32>
    %333 = arith.divf %331, %332 : vector<2x32xf32>
    %334 = arith.mulf %325, %263 : vector<2x32xf32>
    %335 = arith.mulf %319, %327 : vector<2x32xf32>
    %336 = arith.addf %334, %335 : vector<2x32xf32>
    %337 = math.tanh %336 : vector<2x32xf32>
    %338 = arith.mulf %333, %337 : vector<2x32xf32>
    %339 = vector.extract_strided_slice %313 {offsets = [0, 0], sizes = [2, 32], strides = [1, 1]} : vector<2x128xf32> to vector<2x32xf32>
    %340 = arith.negf %339 : vector<2x32xf32>
    %341 = math.exp %340 : vector<2x32xf32>
    %cst_105 = arith.constant 1.000000e+00 : f32
    %342 = vector.broadcast %cst_105 : f32 to vector<2x32xf32>
    %343 = arith.addf %342, %341 : vector<2x32xf32>
    %344 = arith.divf %342, %343 : vector<2x32xf32>
    %345 = vector.extract_strided_slice %313 {offsets = [0, 32], sizes = [2, 32], strides = [1, 1]} : vector<2x128xf32> to vector<2x32xf32>
    %346 = arith.negf %345 : vector<2x32xf32>
    %347 = math.exp %346 : vector<2x32xf32>
    %cst_106 = arith.constant 1.000000e+00 : f32
    %348 = vector.broadcast %cst_106 : f32 to vector<2x32xf32>
    %349 = arith.addf %348, %347 : vector<2x32xf32>
    %350 = arith.divf %348, %349 : vector<2x32xf32>
    %351 = vector.extract_strided_slice %313 {offsets = [0, 64], sizes = [2, 32], strides = [1, 1]} : vector<2x128xf32> to vector<2x32xf32>
    %352 = math.tanh %351 : vector<2x32xf32>
    %353 = vector.extract_strided_slice %313 {offsets = [0, 96], sizes = [2, 32], strides = [1, 1]} : vector<2x128xf32> to vector<2x32xf32>
    %354 = arith.negf %353 : vector<2x32xf32>
    %355 = math.exp %354 : vector<2x32xf32>
    %cst_107 = arith.constant 1.000000e+00 : f32
    %356 = vector.broadcast %cst_107 : f32 to vector<2x32xf32>
    %357 = arith.addf %356, %355 : vector<2x32xf32>
    %358 = arith.divf %356, %357 : vector<2x32xf32>
    %359 = arith.mulf %350, %288 : vector<2x32xf32>
    %360 = arith.mulf %344, %352 : vector<2x32xf32>
    %361 = arith.addf %359, %360 : vector<2x32xf32>
    %362 = math.tanh %361 : vector<2x32xf32>
    %363 = arith.mulf %358, %362 : vector<2x32xf32>
    %364 = vector.shape_cast %338 : vector<2x32xf32> to vector<1x2x32xf32>
    %365 = arith.truncf %364 : vector<1x2x32xf32> to vector<1x2x32xbf16>
    %366 = arith.index_cast %c4_i32 : i32 to index
    %c0_108 = arith.constant 0 : index
    %c0_109 = arith.constant 0 : index
    %367 = vector.load %arg5[%366, %c0_108, %c0_109] : memref<8x2x32xbf16, #tpu.memory_space<vmem>>, vector<1x2x32xbf16>
    tpu.vector_store %arg5[%366, %c0_108, %c0_109], %365 {strides = array<i32>} : memref<8x2x32xbf16, #tpu.memory_space<vmem>>, vector<1x2x32xbf16>,
    %368 = vector.shape_cast %363 : vector<2x32xf32> to vector<1x2x32xf32>
    %369 = arith.truncf %368 : vector<1x2x32xf32> to vector<1x2x32xbf16>
    %370 = arith.index_cast %299 : i32 to index
    %c0_110 = arith.constant 0 : index
    %c0_111 = arith.constant 0 : index
    %371 = vector.load %arg6[%370, %c0_110, %c0_111] : memref<8x2x32xbf16, #tpu.memory_space<vmem>>, vector<1x2x32xbf16>
    tpu.vector_store %arg6[%370, %c0_110, %c0_111], %369 {strides = array<i32>} : memref<8x2x32xbf16, #tpu.memory_space<vmem>>, vector<1x2x32xbf16>,
    %c5_i32 = arith.constant 5 : i32
    %c7_i32_112 = arith.constant 7 : i32
    %372 = arith.subi %c7_i32_112, %c5_i32 : i32
    %373 = arith.index_cast %c5_i32 : i32 to index
    %c0_113 = arith.constant 0 : index
    %c0_114 = arith.constant 0 : index
    %374 = vector.load %arg1[%373, %c0_113, %c0_114] : memref<8x2x128xf32, #tpu.memory_space<vmem>>, vector<1x2x128xf32>
    %375 = vector.shape_cast %374 : vector<1x2x128xf32> to vector<2x128xf32>
    %376 = arith.truncf %338 : vector<2x32xf32> to vector<2x32xbf16>
    %c0_115 = arith.constant 0 : index
    %c0_116 = arith.constant 0 : index
    %377 = vector.load %arg3[%c0_115, %c0_116] : memref<32x128xbf16, #tpu.memory_space<vmem>>, vector<32x128xbf16>
    %cst_117 = arith.constant dense<0.000000e+00> : vector<2x128xf32>
    %378 = tpu.matmul %376, %377, %cst_117 {dimension_numbers = #tpu.dot_dimension_numbers<[1], [0], [0], [1], [0, 0, 1, 1], [], []>} : vector<2x32xbf16>, vector<32x128xbf16>, vector<2x128xf32> -> vector<2x128xf32>
    %379 = arith.addf %375, %378 : vector<2x128xf32>
    %380 = arith.index_cast %372 : i32 to index
    %c0_118 = arith.constant 0 : index
    %c0_119 = arith.constant 0 : index
    %381 = vector.load %arg2[%380, %c0_118, %c0_119] : memref<8x2x128xf32, #tpu.memory_space<vmem>>, vector<1x2x128xf32>
    %382 = vector.shape_cast %381 : vector<1x2x128xf32> to vector<2x128xf32>
    %383 = arith.truncf %363 : vector<2x32xf32> to vector<2x32xbf16>
    %c0_120 = arith.constant 0 : index
    %c0_121 = arith.constant 0 : index
    %384 = vector.load %arg4[%c0_120, %c0_121] : memref<32x128xbf16, #tpu.memory_space<vmem>>, vector<32x128xbf16>
    %cst_122 = arith.constant dense<0.000000e+00> : vector<2x128xf32>
    %385 = tpu.matmul %383, %384, %cst_122 {dimension_numbers = #tpu.dot_dimension_numbers<[1], [0], [0], [1], [0, 0, 1, 1], [], []>} : vector<2x32xbf16>, vector<32x128xbf16>, vector<2x128xf32> -> vector<2x128xf32>
    %386 = arith.addf %382, %385 : vector<2x128xf32>
    %387 = vector.extract_strided_slice %379 {offsets = [0, 0], sizes = [2, 32], strides = [1, 1]} : vector<2x128xf32> to vector<2x32xf32>
    %388 = arith.negf %387 : vector<2x32xf32>
    %389 = math.exp %388 : vector<2x32xf32>
    %cst_123 = arith.constant 1.000000e+00 : f32
    %390 = vector.broadcast %cst_123 : f32 to vector<2x32xf32>
    %391 = arith.addf %390, %389 : vector<2x32xf32>
    %392 = arith.divf %390, %391 : vector<2x32xf32>
    %393 = vector.extract_strided_slice %379 {offsets = [0, 32], sizes = [2, 32], strides = [1, 1]} : vector<2x128xf32> to vector<2x32xf32>
    %394 = arith.negf %393 : vector<2x32xf32>
    %395 = math.exp %394 : vector<2x32xf32>
    %cst_124 = arith.constant 1.000000e+00 : f32
    %396 = vector.broadcast %cst_124 : f32 to vector<2x32xf32>
    %397 = arith.addf %396, %395 : vector<2x32xf32>
    %398 = arith.divf %396, %397 : vector<2x32xf32>
    %399 = vector.extract_strided_slice %379 {offsets = [0, 64], sizes = [2, 32], strides = [1, 1]} : vector<2x128xf32> to vector<2x32xf32>
    %400 = math.tanh %399 : vector<2x32xf32>
    %401 = vector.extract_strided_slice %379 {offsets = [0, 96], sizes = [2, 32], strides = [1, 1]} : vector<2x128xf32> to vector<2x32xf32>
    %402 = arith.negf %401 : vector<2x32xf32>
    %403 = math.exp %402 : vector<2x32xf32>
    %cst_125 = arith.constant 1.000000e+00 : f32
    %404 = vector.broadcast %cst_125 : f32 to vector<2x32xf32>
    %405 = arith.addf %404, %403 : vector<2x32xf32>
    %406 = arith.divf %404, %405 : vector<2x32xf32>
    %407 = arith.mulf %398, %336 : vector<2x32xf32>
    %408 = arith.mulf %392, %400 : vector<2x32xf32>
    %409 = arith.addf %407, %408 : vector<2x32xf32>
    %410 = math.tanh %409 : vector<2x32xf32>
    %411 = arith.mulf %406, %410 : vector<2x32xf32>
    %412 = vector.extract_strided_slice %386 {offsets = [0, 0], sizes = [2, 32], strides = [1, 1]} : vector<2x128xf32> to vector<2x32xf32>
    %413 = arith.negf %412 : vector<2x32xf32>
    %414 = math.exp %413 : vector<2x32xf32>
    %cst_126 = arith.constant 1.000000e+00 : f32
    %415 = vector.broadcast %cst_126 : f32 to vector<2x32xf32>
    %416 = arith.addf %415, %414 : vector<2x32xf32>
    %417 = arith.divf %415, %416 : vector<2x32xf32>
    %418 = vector.extract_strided_slice %386 {offsets = [0, 32], sizes = [2, 32], strides = [1, 1]} : vector<2x128xf32> to vector<2x32xf32>
    %419 = arith.negf %418 : vector<2x32xf32>
    %420 = math.exp %419 : vector<2x32xf32>
    %cst_127 = arith.constant 1.000000e+00 : f32
    %421 = vector.broadcast %cst_127 : f32 to vector<2x32xf32>
    %422 = arith.addf %421, %420 : vector<2x32xf32>
    %423 = arith.divf %421, %422 : vector<2x32xf32>
    %424 = vector.extract_strided_slice %386 {offsets = [0, 64], sizes = [2, 32], strides = [1, 1]} : vector<2x128xf32> to vector<2x32xf32>
    %425 = math.tanh %424 : vector<2x32xf32>
    %426 = vector.extract_strided_slice %386 {offsets = [0, 96], sizes = [2, 32], strides = [1, 1]} : vector<2x128xf32> to vector<2x32xf32>
    %427 = arith.negf %426 : vector<2x32xf32>
    %428 = math.exp %427 : vector<2x32xf32>
    %cst_128 = arith.constant 1.000000e+00 : f32
    %429 = vector.broadcast %cst_128 : f32 to vector<2x32xf32>
    %430 = arith.addf %429, %428 : vector<2x32xf32>
    %431 = arith.divf %429, %430 : vector<2x32xf32>
    %432 = arith.mulf %423, %361 : vector<2x32xf32>
    %433 = arith.mulf %417, %425 : vector<2x32xf32>
    %434 = arith.addf %432, %433 : vector<2x32xf32>
    %435 = math.tanh %434 : vector<2x32xf32>
    %436 = arith.mulf %431, %435 : vector<2x32xf32>
    %437 = vector.shape_cast %411 : vector<2x32xf32> to vector<1x2x32xf32>
    %438 = arith.truncf %437 : vector<1x2x32xf32> to vector<1x2x32xbf16>
    %439 = arith.index_cast %c5_i32 : i32 to index
    %c0_129 = arith.constant 0 : index
    %c0_130 = arith.constant 0 : index
    %440 = vector.load %arg5[%439, %c0_129, %c0_130] : memref<8x2x32xbf16, #tpu.memory_space<vmem>>, vector<1x2x32xbf16>
    tpu.vector_store %arg5[%439, %c0_129, %c0_130], %438 {strides = array<i32>} : memref<8x2x32xbf16, #tpu.memory_space<vmem>>, vector<1x2x32xbf16>,
    %441 = vector.shape_cast %436 : vector<2x32xf32> to vector<1x2x32xf32>
    %442 = arith.truncf %441 : vector<1x2x32xf32> to vector<1x2x32xbf16>
    %443 = arith.index_cast %372 : i32 to index
    %c0_131 = arith.constant 0 : index
    %c0_132 = arith.constant 0 : index
    %444 = vector.load %arg6[%443, %c0_131, %c0_132] : memref<8x2x32xbf16, #tpu.memory_space<vmem>>, vector<1x2x32xbf16>
    tpu.vector_store %arg6[%443, %c0_131, %c0_132], %442 {strides = array<i32>} : memref<8x2x32xbf16, #tpu.memory_space<vmem>>, vector<1x2x32xbf16>,
    %c6_i32 = arith.constant 6 : i32
    %c7_i32_133 = arith.constant 7 : i32
    %445 = arith.subi %c7_i32_133, %c6_i32 : i32
    %446 = arith.index_cast %c6_i32 : i32 to index
    %c0_134 = arith.constant 0 : index
    %c0_135 = arith.constant 0 : index
    %447 = vector.load %arg1[%446, %c0_134, %c0_135] : memref<8x2x128xf32, #tpu.memory_space<vmem>>, vector<1x2x128xf32>
    %448 = vector.shape_cast %447 : vector<1x2x128xf32> to vector<2x128xf32>
    %449 = arith.truncf %411 : vector<2x32xf32> to vector<2x32xbf16>
    %c0_136 = arith.constant 0 : index
    %c0_137 = arith.constant 0 : index
    %450 = vector.load %arg3[%c0_136, %c0_137] : memref<32x128xbf16, #tpu.memory_space<vmem>>, vector<32x128xbf16>
    %cst_138 = arith.constant dense<0.000000e+00> : vector<2x128xf32>
    %451 = tpu.matmul %449, %450, %cst_138 {dimension_numbers = #tpu.dot_dimension_numbers<[1], [0], [0], [1], [0, 0, 1, 1], [], []>} : vector<2x32xbf16>, vector<32x128xbf16>, vector<2x128xf32> -> vector<2x128xf32>
    %452 = arith.addf %448, %451 : vector<2x128xf32>
    %453 = arith.index_cast %445 : i32 to index
    %c0_139 = arith.constant 0 : index
    %c0_140 = arith.constant 0 : index
    %454 = vector.load %arg2[%453, %c0_139, %c0_140] : memref<8x2x128xf32, #tpu.memory_space<vmem>>, vector<1x2x128xf32>
    %455 = vector.shape_cast %454 : vector<1x2x128xf32> to vector<2x128xf32>
    %456 = arith.truncf %436 : vector<2x32xf32> to vector<2x32xbf16>
    %c0_141 = arith.constant 0 : index
    %c0_142 = arith.constant 0 : index
    %457 = vector.load %arg4[%c0_141, %c0_142] : memref<32x128xbf16, #tpu.memory_space<vmem>>, vector<32x128xbf16>
    %cst_143 = arith.constant dense<0.000000e+00> : vector<2x128xf32>
    %458 = tpu.matmul %456, %457, %cst_143 {dimension_numbers = #tpu.dot_dimension_numbers<[1], [0], [0], [1], [0, 0, 1, 1], [], []>} : vector<2x32xbf16>, vector<32x128xbf16>, vector<2x128xf32> -> vector<2x128xf32>
    %459 = arith.addf %455, %458 : vector<2x128xf32>
    %460 = vector.extract_strided_slice %452 {offsets = [0, 0], sizes = [2, 32], strides = [1, 1]} : vector<2x128xf32> to vector<2x32xf32>
    %461 = arith.negf %460 : vector<2x32xf32>
    %462 = math.exp %461 : vector<2x32xf32>
    %cst_144 = arith.constant 1.000000e+00 : f32
    %463 = vector.broadcast %cst_144 : f32 to vector<2x32xf32>
    %464 = arith.addf %463, %462 : vector<2x32xf32>
    %465 = arith.divf %463, %464 : vector<2x32xf32>
    %466 = vector.extract_strided_slice %452 {offsets = [0, 32], sizes = [2, 32], strides = [1, 1]} : vector<2x128xf32> to vector<2x32xf32>
    %467 = arith.negf %466 : vector<2x32xf32>
    %468 = math.exp %467 : vector<2x32xf32>
    %cst_145 = arith.constant 1.000000e+00 : f32
    %469 = vector.broadcast %cst_145 : f32 to vector<2x32xf32>
    %470 = arith.addf %469, %468 : vector<2x32xf32>
    %471 = arith.divf %469, %470 : vector<2x32xf32>
    %472 = vector.extract_strided_slice %452 {offsets = [0, 64], sizes = [2, 32], strides = [1, 1]} : vector<2x128xf32> to vector<2x32xf32>
    %473 = math.tanh %472 : vector<2x32xf32>
    %474 = vector.extract_strided_slice %452 {offsets = [0, 96], sizes = [2, 32], strides = [1, 1]} : vector<2x128xf32> to vector<2x32xf32>
    %475 = arith.negf %474 : vector<2x32xf32>
    %476 = math.exp %475 : vector<2x32xf32>
    %cst_146 = arith.constant 1.000000e+00 : f32
    %477 = vector.broadcast %cst_146 : f32 to vector<2x32xf32>
    %478 = arith.addf %477, %476 : vector<2x32xf32>
    %479 = arith.divf %477, %478 : vector<2x32xf32>
    %480 = arith.mulf %471, %409 : vector<2x32xf32>
    %481 = arith.mulf %465, %473 : vector<2x32xf32>
    %482 = arith.addf %480, %481 : vector<2x32xf32>
    %483 = math.tanh %482 : vector<2x32xf32>
    %484 = arith.mulf %479, %483 : vector<2x32xf32>
    %485 = vector.extract_strided_slice %459 {offsets = [0, 0], sizes = [2, 32], strides = [1, 1]} : vector<2x128xf32> to vector<2x32xf32>
    %486 = arith.negf %485 : vector<2x32xf32>
    %487 = math.exp %486 : vector<2x32xf32>
    %cst_147 = arith.constant 1.000000e+00 : f32
    %488 = vector.broadcast %cst_147 : f32 to vector<2x32xf32>
    %489 = arith.addf %488, %487 : vector<2x32xf32>
    %490 = arith.divf %488, %489 : vector<2x32xf32>
    %491 = vector.extract_strided_slice %459 {offsets = [0, 32], sizes = [2, 32], strides = [1, 1]} : vector<2x128xf32> to vector<2x32xf32>
    %492 = arith.negf %491 : vector<2x32xf32>
    %493 = math.exp %492 : vector<2x32xf32>
    %cst_148 = arith.constant 1.000000e+00 : f32
    %494 = vector.broadcast %cst_148 : f32 to vector<2x32xf32>
    %495 = arith.addf %494, %493 : vector<2x32xf32>
    %496 = arith.divf %494, %495 : vector<2x32xf32>
    %497 = vector.extract_strided_slice %459 {offsets = [0, 64], sizes = [2, 32], strides = [1, 1]} : vector<2x128xf32> to vector<2x32xf32>
    %498 = math.tanh %497 : vector<2x32xf32>
    %499 = vector.extract_strided_slice %459 {offsets = [0, 96], sizes = [2, 32], strides = [1, 1]} : vector<2x128xf32> to vector<2x32xf32>
    %500 = arith.negf %499 : vector<2x32xf32>
    %501 = math.exp %500 : vector<2x32xf32>
    %cst_149 = arith.constant 1.000000e+00 : f32
    %502 = vector.broadcast %cst_149 : f32 to vector<2x32xf32>
    %503 = arith.addf %502, %501 : vector<2x32xf32>
    %504 = arith.divf %502, %503 : vector<2x32xf32>
    %505 = arith.mulf %496, %434 : vector<2x32xf32>
    %506 = arith.mulf %490, %498 : vector<2x32xf32>
    %507 = arith.addf %505, %506 : vector<2x32xf32>
    %508 = math.tanh %507 : vector<2x32xf32>
    %509 = arith.mulf %504, %508 : vector<2x32xf32>
    %510 = vector.shape_cast %484 : vector<2x32xf32> to vector<1x2x32xf32>
    %511 = arith.truncf %510 : vector<1x2x32xf32> to vector<1x2x32xbf16>
    %512 = arith.index_cast %c6_i32 : i32 to index
    %c0_150 = arith.constant 0 : index
    %c0_151 = arith.constant 0 : index
    %513 = vector.load %arg5[%512, %c0_150, %c0_151] : memref<8x2x32xbf16, #tpu.memory_space<vmem>>, vector<1x2x32xbf16>
    tpu.vector_store %arg5[%512, %c0_150, %c0_151], %511 {strides = array<i32>} : memref<8x2x32xbf16, #tpu.memory_space<vmem>>, vector<1x2x32xbf16>,
    %514 = vector.shape_cast %509 : vector<2x32xf32> to vector<1x2x32xf32>
    %515 = arith.truncf %514 : vector<1x2x32xf32> to vector<1x2x32xbf16>
    %516 = arith.index_cast %445 : i32 to index
    %c0_152 = arith.constant 0 : index
    %c0_153 = arith.constant 0 : index
    %517 = vector.load %arg6[%516, %c0_152, %c0_153] : memref<8x2x32xbf16, #tpu.memory_space<vmem>>, vector<1x2x32xbf16>
    tpu.vector_store %arg6[%516, %c0_152, %c0_153], %515 {strides = array<i32>} : memref<8x2x32xbf16, #tpu.memory_space<vmem>>, vector<1x2x32xbf16>,
    %c7_i32_154 = arith.constant 7 : i32
    %c7_i32_155 = arith.constant 7 : i32
    %518 = arith.subi %c7_i32_155, %c7_i32_154 : i32
    %519 = arith.index_cast %c7_i32_154 : i32 to index
    %c0_156 = arith.constant 0 : index
    %c0_157 = arith.constant 0 : index
    %520 = vector.load %arg1[%519, %c0_156, %c0_157] : memref<8x2x128xf32, #tpu.memory_space<vmem>>, vector<1x2x128xf32>
    %521 = vector.shape_cast %520 : vector<1x2x128xf32> to vector<2x128xf32>
    %522 = arith.truncf %484 : vector<2x32xf32> to vector<2x32xbf16>
    %c0_158 = arith.constant 0 : index
    %c0_159 = arith.constant 0 : index
    %523 = vector.load %arg3[%c0_158, %c0_159] : memref<32x128xbf16, #tpu.memory_space<vmem>>, vector<32x128xbf16>
    %cst_160 = arith.constant dense<0.000000e+00> : vector<2x128xf32>
    %524 = tpu.matmul %522, %523, %cst_160 {dimension_numbers = #tpu.dot_dimension_numbers<[1], [0], [0], [1], [0, 0, 1, 1], [], []>} : vector<2x32xbf16>, vector<32x128xbf16>, vector<2x128xf32> -> vector<2x128xf32>
    %525 = arith.addf %521, %524 : vector<2x128xf32>
    %526 = arith.index_cast %518 : i32 to index
    %c0_161 = arith.constant 0 : index
    %c0_162 = arith.constant 0 : index
    %527 = vector.load %arg2[%526, %c0_161, %c0_162] : memref<8x2x128xf32, #tpu.memory_space<vmem>>, vector<1x2x128xf32>
    %528 = vector.shape_cast %527 : vector<1x2x128xf32> to vector<2x128xf32>
    %529 = arith.truncf %509 : vector<2x32xf32> to vector<2x32xbf16>
    %c0_163 = arith.constant 0 : index
    %c0_164 = arith.constant 0 : index
    %530 = vector.load %arg4[%c0_163, %c0_164] : memref<32x128xbf16, #tpu.memory_space<vmem>>, vector<32x128xbf16>
    %cst_165 = arith.constant dense<0.000000e+00> : vector<2x128xf32>
    %531 = tpu.matmul %529, %530, %cst_165 {dimension_numbers = #tpu.dot_dimension_numbers<[1], [0], [0], [1], [0, 0, 1, 1], [], []>} : vector<2x32xbf16>, vector<32x128xbf16>, vector<2x128xf32> -> vector<2x128xf32>
    %532 = arith.addf %528, %531 : vector<2x128xf32>
    %533 = vector.extract_strided_slice %525 {offsets = [0, 0], sizes = [2, 32], strides = [1, 1]} : vector<2x128xf32> to vector<2x32xf32>
    %534 = arith.negf %533 : vector<2x32xf32>
    %535 = math.exp %534 : vector<2x32xf32>
    %cst_166 = arith.constant 1.000000e+00 : f32
    %536 = vector.broadcast %cst_166 : f32 to vector<2x32xf32>
    %537 = arith.addf %536, %535 : vector<2x32xf32>
    %538 = arith.divf %536, %537 : vector<2x32xf32>
    %539 = vector.extract_strided_slice %525 {offsets = [0, 32], sizes = [2, 32], strides = [1, 1]} : vector<2x128xf32> to vector<2x32xf32>
    %540 = arith.negf %539 : vector<2x32xf32>
    %541 = math.exp %540 : vector<2x32xf32>
    %cst_167 = arith.constant 1.000000e+00 : f32
    %542 = vector.broadcast %cst_167 : f32 to vector<2x32xf32>
    %543 = arith.addf %542, %541 : vector<2x32xf32>
    %544 = arith.divf %542, %543 : vector<2x32xf32>
    %545 = vector.extract_strided_slice %525 {offsets = [0, 64], sizes = [2, 32], strides = [1, 1]} : vector<2x128xf32> to vector<2x32xf32>
    %546 = math.tanh %545 : vector<2x32xf32>
    %547 = vector.extract_strided_slice %525 {offsets = [0, 96], sizes = [2, 32], strides = [1, 1]} : vector<2x128xf32> to vector<2x32xf32>
    %548 = arith.negf %547 : vector<2x32xf32>
    %549 = math.exp %548 : vector<2x32xf32>
    %cst_168 = arith.constant 1.000000e+00 : f32
    %550 = vector.broadcast %cst_168 : f32 to vector<2x32xf32>
    %551 = arith.addf %550, %549 : vector<2x32xf32>
    %552 = arith.divf %550, %551 : vector<2x32xf32>
    %553 = arith.mulf %544, %482 : vector<2x32xf32>
    %554 = arith.mulf %538, %546 : vector<2x32xf32>
    %555 = arith.addf %553, %554 : vector<2x32xf32>
    %556 = math.tanh %555 : vector<2x32xf32>
    %557 = arith.mulf %552, %556 : vector<2x32xf32>
    %558 = vector.extract_strided_slice %532 {offsets = [0, 0], sizes = [2, 32], strides = [1, 1]} : vector<2x128xf32> to vector<2x32xf32>
    %559 = arith.negf %558 : vector<2x32xf32>
    %560 = math.exp %559 : vector<2x32xf32>
    %cst_169 = arith.constant 1.000000e+00 : f32
    %561 = vector.broadcast %cst_169 : f32 to vector<2x32xf32>
    %562 = arith.addf %561, %560 : vector<2x32xf32>
    %563 = arith.divf %561, %562 : vector<2x32xf32>
    %564 = vector.extract_strided_slice %532 {offsets = [0, 32], sizes = [2, 32], strides = [1, 1]} : vector<2x128xf32> to vector<2x32xf32>
    %565 = arith.negf %564 : vector<2x32xf32>
    %566 = math.exp %565 : vector<2x32xf32>
    %cst_170 = arith.constant 1.000000e+00 : f32
    %567 = vector.broadcast %cst_170 : f32 to vector<2x32xf32>
    %568 = arith.addf %567, %566 : vector<2x32xf32>
    %569 = arith.divf %567, %568 : vector<2x32xf32>
    %570 = vector.extract_strided_slice %532 {offsets = [0, 64], sizes = [2, 32], strides = [1, 1]} : vector<2x128xf32> to vector<2x32xf32>
    %571 = math.tanh %570 : vector<2x32xf32>
    %572 = vector.extract_strided_slice %532 {offsets = [0, 96], sizes = [2, 32], strides = [1, 1]} : vector<2x128xf32> to vector<2x32xf32>
    %573 = arith.negf %572 : vector<2x32xf32>
    %574 = math.exp %573 : vector<2x32xf32>
    %cst_171 = arith.constant 1.000000e+00 : f32
    %575 = vector.broadcast %cst_171 : f32 to vector<2x32xf32>
    %576 = arith.addf %575, %574 : vector<2x32xf32>
    %577 = arith.divf %575, %576 : vector<2x32xf32>
    %578 = arith.mulf %569, %507 : vector<2x32xf32>
    %579 = arith.mulf %563, %571 : vector<2x32xf32>
    %580 = arith.addf %578, %579 : vector<2x32xf32>
    %581 = math.tanh %580 : vector<2x32xf32>
    %582 = arith.mulf %577, %581 : vector<2x32xf32>
    %583 = vector.shape_cast %557 : vector<2x32xf32> to vector<1x2x32xf32>
    %584 = arith.truncf %583 : vector<1x2x32xf32> to vector<1x2x32xbf16>
    %585 = arith.index_cast %c7_i32_154 : i32 to index
    %c0_172 = arith.constant 0 : index
    %c0_173 = arith.constant 0 : index
    %586 = vector.load %arg5[%585, %c0_172, %c0_173] : memref<8x2x32xbf16, #tpu.memory_space<vmem>>, vector<1x2x32xbf16>
    tpu.vector_store %arg5[%585, %c0_172, %c0_173], %584 {strides = array<i32>} : memref<8x2x32xbf16, #tpu.memory_space<vmem>>, vector<1x2x32xbf16>,
    %587 = vector.shape_cast %582 : vector<2x32xf32> to vector<1x2x32xf32>
    %588 = arith.truncf %587 : vector<1x2x32xf32> to vector<1x2x32xbf16>
    %589 = arith.index_cast %518 : i32 to index
    %c0_174 = arith.constant 0 : index
    %c0_175 = arith.constant 0 : index
    %590 = vector.load %arg6[%589, %c0_174, %c0_175] : memref<8x2x32xbf16, #tpu.memory_space<vmem>>, vector<1x2x32xbf16>
    tpu.vector_store %arg6[%589, %c0_174, %c0_175], %588 {strides = array<i32>} : memref<8x2x32xbf16, #tpu.memory_space<vmem>>, vector<1x2x32xbf16>,
    %c8_i32 = arith.constant 8 : i32
    %c0_176 = arith.constant 0 : index
    %c0_177 = arith.constant 0 : index
    %591 = vector.load %arg7[%c0_176, %c0_177] : memref<2x32xf32, #tpu.memory_space<vmem>>, vector<2x32xf32>
    tpu.vector_store %arg7[%c0_176, %c0_177], %557 {strides = array<i32>} : memref<2x32xf32, #tpu.memory_space<vmem>>, vector<2x32xf32>,
    %c0_178 = arith.constant 0 : index
    %c0_179 = arith.constant 0 : index
    %592 = vector.load %arg8[%c0_178, %c0_179] : memref<2x32xf32, #tpu.memory_space<vmem>>, vector<2x32xf32>
    tpu.vector_store %arg8[%c0_178, %c0_179], %555 {strides = array<i32>} : memref<2x32xf32, #tpu.memory_space<vmem>>, vector<2x32xf32>,
    %c0_180 = arith.constant 0 : index
    %c0_181 = arith.constant 0 : index
    %593 = vector.load %arg9[%c0_180, %c0_181] : memref<2x32xf32, #tpu.memory_space<vmem>>, vector<2x32xf32>
    tpu.vector_store %arg9[%c0_180, %c0_181], %582 {strides = array<i32>} : memref<2x32xf32, #tpu.memory_space<vmem>>, vector<2x32xf32>,
    %c0_182 = arith.constant 0 : index
    %c0_183 = arith.constant 0 : index
    %594 = vector.load %arg10[%c0_182, %c0_183] : memref<2x32xf32, #tpu.memory_space<vmem>>, vector<2x32xf32>
    tpu.vector_store %arg10[%c0_182, %c0_183], %580 {strides = array<i32>} : memref<2x32xf32, #tpu.memory_space<vmem>>, vector<2x32xf32>,
    return
  }
  func.func @transform_0(%arg0: i32) -> (i32, i32, i32) {
    %c0_i32 = arith.constant 0 : i32
    %c0_i32_0 = arith.constant 0 : i32
    %c0_i32_1 = arith.constant 0 : i32
    return %arg0, %c0_i32, %c0_i32_0 : i32, i32, i32
  }
  func.func @transform_1(%arg0: i32) -> (i32, i32, i32) {
    %c0_i32 = arith.constant 0 : i32
    %0 = arith.subi %c0_i32, %arg0 : i32
    %c0_i32_0 = arith.constant 0 : i32
    %c0_i32_1 = arith.constant 0 : i32
    %c0_i32_2 = arith.constant 0 : i32
    return %0, %c0_i32_0, %c0_i32_1 : i32, i32, i32
  }
  func.func @transform_2(%arg0: i32) -> (i32, i32) {
    %c0_i32 = arith.constant 0 : i32
    %c0_i32_0 = arith.constant 0 : i32
    %c0_i32_1 = arith.constant 0 : i32
    return %c0_i32, %c0_i32_0 : i32, i32
  }
  func.func @transform_3(%arg0: i32) -> (i32, i32) {
    %c0_i32 = arith.constant 0 : i32
    %c0_i32_0 = arith.constant 0 : i32
    %c0_i32_1 = arith.constant 0 : i32
    return %c0_i32, %c0_i32_0 : i32, i32
  }
  func.func @transform_4(%arg0: i32) -> (i32, i32, i32) {
    %c0_i32 = arith.constant 0 : i32
    %c0_i32_0 = arith.constant 0 : i32
    %c0_i32_1 = arith.constant 0 : i32
    return %arg0, %c0_i32, %c0_i32_0 : i32, i32, i32
  }
  func.func @transform_5(%arg0: i32) -> (i32, i32, i32) {
    %c0_i32 = arith.constant 0 : i32
    %0 = arith.subi %c0_i32, %arg0 : i32
    %c0_i32_0 = arith.constant 0 : i32
    %c0_i32_1 = arith.constant 0 : i32
    %c0_i32_2 = arith.constant 0 : i32
    return %0, %c0_i32_0, %c0_i32_1 : i32, i32, i32
  }
}

module attributes {stable_mosaic.version = 11 : i64} {
  func.func @_gates1_kernel(%arg0: i32, %arg1: memref<16x32xbf16, #tpu.memory_space<vmem>>, %arg2: memref<16x32xbf16, #tpu.memory_space<vmem>>, %arg3: memref<32x128xbf16, #tpu.memory_space<vmem>>, %arg4: memref<32x128xbf16, #tpu.memory_space<vmem>>, %arg5: memref<32x128xbf16, #tpu.memory_space<vmem>>, %arg6: memref<32x128xbf16, #tpu.memory_space<vmem>>, %arg7: memref<1x128xf32, #tpu.memory_space<vmem>>, %arg8: memref<1x128xf32, #tpu.memory_space<vmem>>, %arg9: memref<16x128xf32, #tpu.memory_space<vmem>>, %arg10: memref<16x128xf32, #tpu.memory_space<vmem>>) attributes {dimension_semantics = [#tpu.dimension_semantics<parallel>], iteration_bounds = array<i64: 1>, scalar_prefetch = 0 : i64, scratch_operands = 0 : i64, tpu.core_type = #tpu.core_type<tc>, window_params = [{transform_indices = @transform_0, window_bounds = array<i64: 16, 32>}, {transform_indices = @transform_1, window_bounds = array<i64: 16, 32>}, {pipeline_mode = #tpu.pipeline_mode<synchronous>, transform_indices = @transform_2, window_bounds = array<i64: 32, 128>}, {pipeline_mode = #tpu.pipeline_mode<synchronous>, transform_indices = @transform_3, window_bounds = array<i64: 32, 128>}, {pipeline_mode = #tpu.pipeline_mode<synchronous>, transform_indices = @transform_4, window_bounds = array<i64: 32, 128>}, {pipeline_mode = #tpu.pipeline_mode<synchronous>, transform_indices = @transform_5, window_bounds = array<i64: 32, 128>}, {pipeline_mode = #tpu.pipeline_mode<synchronous>, transform_indices = @transform_6, window_bounds = array<i64: 1, 128>}, {pipeline_mode = #tpu.pipeline_mode<synchronous>, transform_indices = @transform_7, window_bounds = array<i64: 1, 128>}, {transform_indices = @transform_8, window_bounds = array<i64: 16, 128>}, {transform_indices = @transform_9, window_bounds = array<i64: 16, 128>}]} {
    %c0 = arith.constant 0 : index
    %c0_0 = arith.constant 0 : index
    %0 = vector.load %arg1[%c0, %c0_0] : memref<16x32xbf16, #tpu.memory_space<vmem>>, vector<16x32xbf16>
    %c0_1 = arith.constant 0 : index
    %c0_2 = arith.constant 0 : index
    %1 = vector.load %arg2[%c0_1, %c0_2] : memref<16x32xbf16, #tpu.memory_space<vmem>>, vector<16x32xbf16>
    %c0_3 = arith.constant 0 : index
    %c0_4 = arith.constant 0 : index
    %2 = vector.load %arg3[%c0_3, %c0_4] : memref<32x128xbf16, #tpu.memory_space<vmem>>, vector<32x128xbf16>
    %cst = arith.constant dense<0.000000e+00> : vector<16x128xf32>
    %3 = tpu.matmul %0, %2, %cst {dimension_numbers = #tpu.dot_dimension_numbers<[1], [0], [0], [1], [0, 0, 1, 1], [], []>} : vector<16x32xbf16>, vector<32x128xbf16>, vector<16x128xf32> -> vector<16x128xf32>
    %c0_5 = arith.constant 0 : index
    %c0_6 = arith.constant 0 : index
    %4 = vector.load %arg4[%c0_5, %c0_6] : memref<32x128xbf16, #tpu.memory_space<vmem>>, vector<32x128xbf16>
    %cst_7 = arith.constant dense<0.000000e+00> : vector<16x128xf32>
    %5 = tpu.matmul %1, %4, %cst_7 {dimension_numbers = #tpu.dot_dimension_numbers<[1], [0], [0], [1], [0, 0, 1, 1], [], []>} : vector<16x32xbf16>, vector<32x128xbf16>, vector<16x128xf32> -> vector<16x128xf32>
    %6 = arith.addf %3, %5 : vector<16x128xf32>
    %c0_8 = arith.constant 0 : index
    %c0_9 = arith.constant 0 : index
    %7 = vector.load %arg7[%c0_8, %c0_9] : memref<1x128xf32, #tpu.memory_space<vmem>>, vector<1x128xf32>
    %8 = vector.broadcast %7 : vector<1x128xf32> to vector<16x128xf32>
    %9 = arith.addf %6, %8 : vector<16x128xf32>
    %c0_10 = arith.constant 0 : index
    %c0_11 = arith.constant 0 : index
    %10 = vector.load %arg9[%c0_10, %c0_11] : memref<16x128xf32, #tpu.memory_space<vmem>>, vector<16x128xf32>
    tpu.vector_store %arg9[%c0_10, %c0_11], %9 {strides = array<i32>} : memref<16x128xf32, #tpu.memory_space<vmem>>, vector<16x128xf32>,
    %c0_12 = arith.constant 0 : index
    %c0_13 = arith.constant 0 : index
    %11 = vector.load %arg5[%c0_12, %c0_13] : memref<32x128xbf16, #tpu.memory_space<vmem>>, vector<32x128xbf16>
    %cst_14 = arith.constant dense<0.000000e+00> : vector<16x128xf32>
    %12 = tpu.matmul %0, %11, %cst_14 {dimension_numbers = #tpu.dot_dimension_numbers<[1], [0], [0], [1], [0, 0, 1, 1], [], []>} : vector<16x32xbf16>, vector<32x128xbf16>, vector<16x128xf32> -> vector<16x128xf32>
    %c0_15 = arith.constant 0 : index
    %c0_16 = arith.constant 0 : index
    %13 = vector.load %arg6[%c0_15, %c0_16] : memref<32x128xbf16, #tpu.memory_space<vmem>>, vector<32x128xbf16>
    %cst_17 = arith.constant dense<0.000000e+00> : vector<16x128xf32>
    %14 = tpu.matmul %1, %13, %cst_17 {dimension_numbers = #tpu.dot_dimension_numbers<[1], [0], [0], [1], [0, 0, 1, 1], [], []>} : vector<16x32xbf16>, vector<32x128xbf16>, vector<16x128xf32> -> vector<16x128xf32>
    %15 = arith.addf %12, %14 : vector<16x128xf32>
    %c0_18 = arith.constant 0 : index
    %c0_19 = arith.constant 0 : index
    %16 = vector.load %arg8[%c0_18, %c0_19] : memref<1x128xf32, #tpu.memory_space<vmem>>, vector<1x128xf32>
    %17 = vector.broadcast %16 : vector<1x128xf32> to vector<16x128xf32>
    %18 = arith.addf %15, %17 : vector<16x128xf32>
    %c0_20 = arith.constant 0 : index
    %c0_21 = arith.constant 0 : index
    %19 = vector.load %arg10[%c0_20, %c0_21] : memref<16x128xf32, #tpu.memory_space<vmem>>, vector<16x128xf32>
    tpu.vector_store %arg10[%c0_20, %c0_21], %18 {strides = array<i32>} : memref<16x128xf32, #tpu.memory_space<vmem>>, vector<16x128xf32>,
    return
  }
  func.func @transform_0(%arg0: i32) -> (i32, i32) {
    %c0_i32 = arith.constant 0 : i32
    %c0_i32_0 = arith.constant 0 : i32
    return %arg0, %c0_i32 : i32, i32
  }
  func.func @transform_1(%arg0: i32) -> (i32, i32) {
    %c0_i32 = arith.constant 0 : i32
    %c0_i32_0 = arith.constant 0 : i32
    return %arg0, %c0_i32 : i32, i32
  }
  func.func @transform_2(%arg0: i32) -> (i32, i32) {
    %c0_i32 = arith.constant 0 : i32
    %c0_i32_0 = arith.constant 0 : i32
    %c0_i32_1 = arith.constant 0 : i32
    return %c0_i32, %c0_i32_0 : i32, i32
  }
  func.func @transform_3(%arg0: i32) -> (i32, i32) {
    %c0_i32 = arith.constant 0 : i32
    %c0_i32_0 = arith.constant 0 : i32
    %c0_i32_1 = arith.constant 0 : i32
    return %c0_i32, %c0_i32_0 : i32, i32
  }
  func.func @transform_4(%arg0: i32) -> (i32, i32) {
    %c0_i32 = arith.constant 0 : i32
    %c0_i32_0 = arith.constant 0 : i32
    %c0_i32_1 = arith.constant 0 : i32
    return %c0_i32, %c0_i32_0 : i32, i32
  }
  func.func @transform_5(%arg0: i32) -> (i32, i32) {
    %c0_i32 = arith.constant 0 : i32
    %c0_i32_0 = arith.constant 0 : i32
    %c0_i32_1 = arith.constant 0 : i32
    return %c0_i32, %c0_i32_0 : i32, i32
  }
  func.func @transform_6(%arg0: i32) -> (i32, i32) {
    %c0_i32 = arith.constant 0 : i32
    %c0_i32_0 = arith.constant 0 : i32
    %c0_i32_1 = arith.constant 0 : i32
    return %c0_i32, %c0_i32_0 : i32, i32
  }
  func.func @transform_7(%arg0: i32) -> (i32, i32) {
    %c0_i32 = arith.constant 0 : i32
    %c0_i32_0 = arith.constant 0 : i32
    %c0_i32_1 = arith.constant 0 : i32
    return %c0_i32, %c0_i32_0 : i32, i32
  }
  func.func @transform_8(%arg0: i32) -> (i32, i32) {
    %c0_i32 = arith.constant 0 : i32
    %c0_i32_0 = arith.constant 0 : i32
    return %arg0, %c0_i32 : i32, i32
  }
  func.func @transform_9(%arg0: i32) -> (i32, i32) {
    %c0_i32 = arith.constant 0 : i32
    %c0_i32_0 = arith.constant 0 : i32
    return %arg0, %c0_i32 : i32, i32
  }
}

module attributes {stable_mosaic.version = 11 : i64} {
  func.func @_fc23_mask_kernel(%arg0: i32, %arg1: memref<16x64xbf16, #tpu.memory_space<vmem>>, %arg2: memref<16x32xbf16, #tpu.memory_space<vmem>>, %arg3: memref<16x32xbf16, #tpu.memory_space<vmem>>, %arg4: memref<16x128xbf16, #tpu.memory_space<vmem>>, %arg5: memref<64x64xbf16, #tpu.memory_space<vmem>>, %arg6: memref<32x64xbf16, #tpu.memory_space<vmem>>, %arg7: memref<32x64xbf16, #tpu.memory_space<vmem>>, %arg8: memref<1x64xf32, #tpu.memory_space<vmem>>, %arg9: memref<1x64xf32, #tpu.memory_space<vmem>>, %arg10: memref<64x128xbf16, #tpu.memory_space<vmem>>, %arg11: memref<1x128xf32, #tpu.memory_space<vmem>>, %arg12: memref<1x128xf32, #tpu.memory_space<vmem>>, %arg13: memref<16x128xf32, #tpu.memory_space<vmem>>) attributes {dimension_semantics = [#tpu.dimension_semantics<parallel>], iteration_bounds = array<i64: 1>, scalar_prefetch = 0 : i64, scratch_operands = 0 : i64, tpu.core_type = #tpu.core_type<tc>, window_params = [{transform_indices = @transform_0, window_bounds = array<i64: 16, 64>}, {transform_indices = @transform_1, window_bounds = array<i64: 16, 32>}, {transform_indices = @transform_2, window_bounds = array<i64: 16, 32>}, {transform_indices = @transform_3, window_bounds = array<i64: 16, 128>}, {pipeline_mode = #tpu.pipeline_mode<synchronous>, transform_indices = @transform_4, window_bounds = array<i64: 64, 64>}, {pipeline_mode = #tpu.pipeline_mode<synchronous>, transform_indices = @transform_5, window_bounds = array<i64: 32, 64>}, {pipeline_mode = #tpu.pipeline_mode<synchronous>, transform_indices = @transform_6, window_bounds = array<i64: 32, 64>}, {pipeline_mode = #tpu.pipeline_mode<synchronous>, transform_indices = @transform_7, window_bounds = array<i64: 1, 64>}, {pipeline_mode = #tpu.pipeline_mode<synchronous>, transform_indices = @transform_8, window_bounds = array<i64: 1, 64>}, {pipeline_mode = #tpu.pipeline_mode<synchronous>, transform_indices = @transform_9, window_bounds = array<i64: 64, 128>}, {pipeline_mode = #tpu.pipeline_mode<synchronous>, transform_indices = @transform_10, window_bounds = array<i64: 1, 128>}, {pipeline_mode = #tpu.pipeline_mode<synchronous>, transform_indices = @transform_11, window_bounds = array<i64: 1, 128>}, {transform_indices = @transform_12, window_bounds = array<i64: 16, 128>}]} {
    %c0 = arith.constant 0 : index
    %c0_0 = arith.constant 0 : index
    %0 = vector.load %arg1[%c0, %c0_0] : memref<16x64xbf16, #tpu.memory_space<vmem>>, vector<16x64xbf16>
    %c0_1 = arith.constant 0 : index
    %c0_2 = arith.constant 0 : index
    %1 = vector.load %arg5[%c0_1, %c0_2] : memref<64x64xbf16, #tpu.memory_space<vmem>>, vector<64x64xbf16>
    %cst = arith.constant dense<0.000000e+00> : vector<16x64xf32>
    %2 = tpu.matmul %0, %1, %cst {dimension_numbers = #tpu.dot_dimension_numbers<[1], [0], [0], [1], [0, 0, 1, 1], [], []>} : vector<16x64xbf16>, vector<64x64xbf16>, vector<16x64xf32> -> vector<16x64xf32>
    %c0_3 = arith.constant 0 : index
    %c0_4 = arith.constant 0 : index
    %3 = vector.load %arg2[%c0_3, %c0_4] : memref<16x32xbf16, #tpu.memory_space<vmem>>, vector<16x32xbf16>
    %c0_5 = arith.constant 0 : index
    %c0_6 = arith.constant 0 : index
    %4 = vector.load %arg6[%c0_5, %c0_6] : memref<32x64xbf16, #tpu.memory_space<vmem>>, vector<32x64xbf16>
    %cst_7 = arith.constant dense<0.000000e+00> : vector<16x64xf32>
    %5 = tpu.matmul %3, %4, %cst_7 {dimension_numbers = #tpu.dot_dimension_numbers<[1], [0], [0], [1], [0, 0, 1, 1], [], []>} : vector<16x32xbf16>, vector<32x64xbf16>, vector<16x64xf32> -> vector<16x64xf32>
    %6 = arith.addf %2, %5 : vector<16x64xf32>
    %c0_8 = arith.constant 0 : index
    %c0_9 = arith.constant 0 : index
    %7 = vector.load %arg3[%c0_8, %c0_9] : memref<16x32xbf16, #tpu.memory_space<vmem>>, vector<16x32xbf16>
    %c0_10 = arith.constant 0 : index
    %c0_11 = arith.constant 0 : index
    %8 = vector.load %arg7[%c0_10, %c0_11] : memref<32x64xbf16, #tpu.memory_space<vmem>>, vector<32x64xbf16>
    %cst_12 = arith.constant dense<0.000000e+00> : vector<16x64xf32>
    %9 = tpu.matmul %7, %8, %cst_12 {dimension_numbers = #tpu.dot_dimension_numbers<[1], [0], [0], [1], [0, 0, 1, 1], [], []>} : vector<16x32xbf16>, vector<32x64xbf16>, vector<16x64xf32> -> vector<16x64xf32>
    %10 = arith.addf %6, %9 : vector<16x64xf32>
    %c0_13 = arith.constant 0 : index
    %c0_14 = arith.constant 0 : index
    %11 = vector.load %arg8[%c0_13, %c0_14] : memref<1x64xf32, #tpu.memory_space<vmem>>, vector<1x64xf32>
    %12 = vector.broadcast %11 : vector<1x64xf32> to vector<16x64xf32>
    %13 = arith.mulf %10, %12 : vector<16x64xf32>
    %c0_15 = arith.constant 0 : index
    %c0_16 = arith.constant 0 : index
    %14 = vector.load %arg9[%c0_15, %c0_16] : memref<1x64xf32, #tpu.memory_space<vmem>>, vector<1x64xf32>
    %15 = vector.broadcast %14 : vector<1x64xf32> to vector<16x64xf32>
    %16 = arith.addf %13, %15 : vector<16x64xf32>
    %cst_17 = arith.constant 0.000000e+00 : f32
    %17 = vector.broadcast %cst_17 : f32 to vector<16x64xf32>
    %18 = arith.maximumf %16, %17 : vector<16x64xf32>
    %19 = arith.truncf %18 : vector<16x64xf32> to vector<16x64xbf16>
    %c0_18 = arith.constant 0 : index
    %c0_19 = arith.constant 0 : index
    %20 = vector.load %arg10[%c0_18, %c0_19] : memref<64x128xbf16, #tpu.memory_space<vmem>>, vector<64x128xbf16>
    %cst_20 = arith.constant dense<0.000000e+00> : vector<16x128xf32>
    %21 = tpu.matmul %19, %20, %cst_20 {dimension_numbers = #tpu.dot_dimension_numbers<[1], [0], [0], [1], [0, 0, 1, 1], [], []>} : vector<16x64xbf16>, vector<64x128xbf16>, vector<16x128xf32> -> vector<16x128xf32>
    %c0_21 = arith.constant 0 : index
    %c0_22 = arith.constant 0 : index
    %22 = vector.load %arg11[%c0_21, %c0_22] : memref<1x128xf32, #tpu.memory_space<vmem>>, vector<1x128xf32>
    %23 = vector.broadcast %22 : vector<1x128xf32> to vector<16x128xf32>
    %24 = arith.mulf %21, %23 : vector<16x128xf32>
    %c0_23 = arith.constant 0 : index
    %c0_24 = arith.constant 0 : index
    %25 = vector.load %arg12[%c0_23, %c0_24] : memref<1x128xf32, #tpu.memory_space<vmem>>, vector<1x128xf32>
    %26 = vector.broadcast %25 : vector<1x128xf32> to vector<16x128xf32>
    %27 = arith.addf %24, %26 : vector<16x128xf32>
    %cst_25 = arith.constant 0.000000e+00 : f32
    %28 = vector.broadcast %cst_25 : f32 to vector<16x128xf32>
    %29 = arith.maximumf %27, %28 : vector<16x128xf32>
    %c0_26 = arith.constant 0 : index
    %c0_27 = arith.constant 0 : index
    %30 = vector.load %arg4[%c0_26, %c0_27] : memref<16x128xbf16, #tpu.memory_space<vmem>>, vector<16x128xbf16>
    %31 = arith.extf %30 : vector<16x128xbf16> to vector<16x128xf32>
    %32 = arith.mulf %29, %31 : vector<16x128xf32>
    %c0_28 = arith.constant 0 : index
    %c0_29 = arith.constant 0 : index
    %33 = vector.load %arg13[%c0_28, %c0_29] : memref<16x128xf32, #tpu.memory_space<vmem>>, vector<16x128xf32>
    tpu.vector_store %arg13[%c0_28, %c0_29], %32 {strides = array<i32>} : memref<16x128xf32, #tpu.memory_space<vmem>>, vector<16x128xf32>,
    return
  }
  func.func @transform_0(%arg0: i32) -> (i32, i32) {
    %c0_i32 = arith.constant 0 : i32
    %c0_i32_0 = arith.constant 0 : i32
    return %arg0, %c0_i32 : i32, i32
  }
  func.func @transform_1(%arg0: i32) -> (i32, i32) {
    %c0_i32 = arith.constant 0 : i32
    %c0_i32_0 = arith.constant 0 : i32
    return %arg0, %c0_i32 : i32, i32
  }
  func.func @transform_2(%arg0: i32) -> (i32, i32) {
    %c0_i32 = arith.constant 0 : i32
    %c0_i32_0 = arith.constant 0 : i32
    return %arg0, %c0_i32 : i32, i32
  }
  func.func @transform_3(%arg0: i32) -> (i32, i32) {
    %c0_i32 = arith.constant 0 : i32
    %c0_i32_0 = arith.constant 0 : i32
    return %arg0, %c0_i32 : i32, i32
  }
  func.func @transform_4(%arg0: i32) -> (i32, i32) {
    %c0_i32 = arith.constant 0 : i32
    %c0_i32_0 = arith.constant 0 : i32
    %c0_i32_1 = arith.constant 0 : i32
    return %c0_i32, %c0_i32_0 : i32, i32
  }
  func.func @transform_5(%arg0: i32) -> (i32, i32) {
    %c0_i32 = arith.constant 0 : i32
    %c0_i32_0 = arith.constant 0 : i32
    %c0_i32_1 = arith.constant 0 : i32
    return %c0_i32, %c0_i32_0 : i32, i32
  }
  func.func @transform_6(%arg0: i32) -> (i32, i32) {
    %c0_i32 = arith.constant 0 : i32
    %c0_i32_0 = arith.constant 0 : i32
    %c0_i32_1 = arith.constant 0 : i32
    return %c0_i32, %c0_i32_0 : i32, i32
  }
  func.func @transform_7(%arg0: i32) -> (i32, i32) {
    %c0_i32 = arith.constant 0 : i32
    %c0_i32_0 = arith.constant 0 : i32
    %c0_i32_1 = arith.constant 0 : i32
    return %c0_i32, %c0_i32_0 : i32, i32
  }
  func.func @transform_8(%arg0: i32) -> (i32, i32) {
    %c0_i32 = arith.constant 0 : i32
    %c0_i32_0 = arith.constant 0 : i32
    %c0_i32_1 = arith.constant 0 : i32
    return %c0_i32, %c0_i32_0 : i32, i32
  }
  func.func @transform_9(%arg0: i32) -> (i32, i32) {
    %c0_i32 = arith.constant 0 : i32
    %c0_i32_0 = arith.constant 0 : i32
    %c0_i32_1 = arith.constant 0 : i32
    return %c0_i32, %c0_i32_0 : i32, i32
  }
  func.func @transform_10(%arg0: i32) -> (i32, i32) {
    %c0_i32 = arith.constant 0 : i32
    %c0_i32_0 = arith.constant 0 : i32
    %c0_i32_1 = arith.constant 0 : i32
    return %c0_i32, %c0_i32_0 : i32, i32
  }
  func.func @transform_11(%arg0: i32) -> (i32, i32) {
    %c0_i32 = arith.constant 0 : i32
    %c0_i32_0 = arith.constant 0 : i32
    %c0_i32_1 = arith.constant 0 : i32
    return %c0_i32, %c0_i32_0 : i32, i32
  }
  func.func @transform_12(%arg0: i32) -> (i32, i32) {
    %c0_i32 = arith.constant 0 : i32
    %c0_i32_0 = arith.constant 0 : i32
    return %arg0, %c0_i32 : i32, i32
  }
}

</mosaic_0001>

<bundles_post_ra>
// kernel: openunmix_forward.8
= control target key start
LH: loop header
LB: loop body
LE: loop exit
PB: predicated region body
PF: predicated region fallthrough
CT: control target
= control target key end

     0   :  { %v151_v0 = vmov 0.0   ;;  %vm152_vm0 = vmmov 0   ;;  %vm41_vm1 = vcmask 261120   ;;  %vm114_vm2 = vcmask 519168   ;;  %s199_s1 = inlined_call_operand.vmem [shape: bf16[32,64], index: 1, kind: input, shape index: {}]   ;;  %s200_s0 = inlined_call_operand.vmem [shape: bf16[16,32], index: 0, kind: input, shape index: {}]   ;;  %s201_s2 = inlined_call_operand.vmem [shape: f32[1,64], index: 2, kind: input, shape index: {}]   ;;  %s202_s3 = inlined_call_operand.vmem [shape: f32[1,64], index: 3, kind: input, shape index: {}]   ;;  %s203_s4 = inlined_call_operand.vmem [shape: bf16[16,64], index: 4, kind: output, shape index: {}]  }
   0x1   :  { %134 = vmatprep.subr.bf16.mxu0 %v151_v0  ;;  %v144_v1 = vld [vmem:[%s199_s1 + $0x8] sm:$0xff]   ;;  %138 = vmatprep.mubr.msk.bf16.mxu0 %vm152_vm0, %v151_v0  ;;  %v145_v2 = vld [vmem:[%s199_s1] sm:$0xff]  }
   0x2   :  { %135 = vmatpush3.bf16.msra.mxu0 %v144_v1  ;;  %v146_v3 = vld [vmem:[%s200_s0] sm:$0xff]  }
   0x3   :  { %136 = vmatprep.subr.bf16.mxu0 %v151_v0  ;;  %v125_v4 = vld [vmem:[%s201_s2] ss:$0 sm:$0xff] }
   0x4   :  { %v126_v6 = vld [vmem:[%s202_s3] ss:$0 sm:$0xff] }
   0x6   :  { %137 = vmatpush3.bf16.msra.mxu0 %v145_v2 }
   0x9   :  { %139 = vmatmul.mubr.msk.bf16.vlgmr.msra.gmra.mxu0 %vm41_vm1, %v146_v3 }
  0xc9   :  { %v79_v5 = vpop.f32.mrf.mxu0 }
  0xca   :  { %v93_v7 = vmul.f32 %v125_v4, %v79_v5 }
  0xcb   :  { %v140_v8 = vpop.f32.mrf.mxu0 }
  0xcc   :  { %v102_v9 = vadd.f32 %v126_v6, %v93_v7 }
  0xcd   :  { %v82_v10 = vpop.f32.mrf.mxu0 }
  0xce   :  { %147 = vtanh.f32 %v102_v9  ;;  %v94_v11 = vmul.f32 %v125_v4, %v82_v10 }
  0xcf   :  { %v141_v12 = vpop.f32.mrf.mxu0 }
  0xd0   :  { %v103_v13 = vadd.f32 %v126_v6, %v94_v11 }
  0xd2   :  { %149 = vtanh.f32 %v103_v13 }
  0xdb   :  { %v148_v14 = vpop.eup %147 }
  0xdc   :  { %v129_v15 = vpack.c.bf16 %v148_v14, %v148_v14 }
  0xde   :  { %115 = vst.msk [vmem:[%s203_s4] sm:$0xf] %vm114_vm2, %v129_v15 }
  0xdf   :  { %v150_v16 = vpop.eup %149 }
  0xe0   :  { %v130_v17 = vpack.c.bf16 %v150_v16, %v150_v16 }
  0xe2   :  { %116 = vst.msk [vmem:[%s203_s4 + $0x4] sm:$0xf] %vm114_vm2, %v130_v17 }

// kernel: openunmix_forward.9
= control target key start
LH: loop header
LB: loop body
LE: loop exit
PB: predicated region body
PF: predicated region fallthrough
CT: control target
= control target key end

     0   :  { %v264_v0 = vmov 0.0   ;;  %vm265_vm0 = vmmov 0   ;;  %vm69_vm1 = vcmask 523264   ;;  %s346_s1 = inlined_call_operand.vmem [shape: bf16[64,128], index: 1, kind: input, shape index: {}]   ;;  %s347_s2 = inlined_call_operand.vmem [shape: bf16[64,128], index: 2, kind: input, shape index: {}]   ;;  %s348_s0 = inlined_call_operand.vmem [shape: bf16[16,64], index: 0, kind: input, shape index: {}]   ;;  %s349_s3 = inlined_call_operand.vmem [shape: f32[1,128], index: 3, kind: input, shape index: {}]   ;;  %s350_s4 = inlined_call_operand.vmem [shape: f32[1,128], index: 4, kind: input, shape index: {}]   ;;  %s351_s5 = inlined_call_operand.vmem [shape: f32[16,128], index: 5, kind: output, shape index: {0}]   ;;  %s352_s6 = inlined_call_operand.vmem [shape: f32[16,128], index: 6, kind: output, shape index: {1}]  }
   0x1   :  { %229 = vmatprep.subr.bf16.mxu0 %v264_v0  ;;  %241 = vmatprep.subr.bf16.mxu1 %v264_v0  ;;  %v255_v1 = vld [vmem:[%s346_s1 + $0x18] sm:$0xff]   ;;  %v257_v3 = vld [vmem:[%s346_s1 + $0x10] sm:$0xff]   ;;  %v259_v5 = vld [vmem:[%s346_s1 + $0x8] sm:$0xff]  }
   0x2   :  { %v256_v2 = vld [vmem:[%s347_s2 + $0x18] sm:$0xff]   ;;  %237 = vmatprep.mubr.msk.bf16.mxu0 %vm265_vm0, %v264_v0  ;;  %249 = vmatprep.mubr.msk.bf16.mxu1 %vm265_vm0, %v264_v0  ;;  %v258_v4 = vld [vmem:[%s347_s2 + $0x10] sm:$0xff]   ;;  %v260_v6 = vld [vmem:[%s347_s2 + $0x8] sm:$0xff]  }
   0x3   :  { %230 = vmatpush3.bf16.msra.mxu0 %v255_v1  ;;  %242 = vmatpush3.bf16.msra.mxu1 %v256_v2  ;;  %v261_v7 = vld [vmem:[%s346_s1] sm:$0xff]  }
   0x4   :  { %231 = vmatprep.subr.bf16.mxu0 %v264_v0  ;;  %243 = vmatprep.subr.bf16.mxu1 %v264_v0  ;;  %v262_v8 = vld [vmem:[%s347_s2] sm:$0xff]  }
   0x5   :  { %v263_v9 = vld [vmem:[%s348_s0] sm:$0xff]  }
   0x6   :  { %v206_v10 = vld [vmem:[%s349_s3] ss:$0 sm:$0xff] }
   0x7   :  { %232 = vmatpush3.bf16.msra.mxu0 %v257_v3  ;;  %244 = vmatpush3.bf16.msra.mxu1 %v258_v4  ;;  %v213_v11 = vld [vmem:[%s350_s4] ss:$0 sm:$0xff] }
   0x8   :  { %233 = vmatprep.subr.bf16.mxu0 %v264_v0  ;;  %245 = vmatprep.subr.bf16.mxu1 %v264_v0 }
   0xb   :  { %234 = vmatpush3.bf16.msra.mxu0 %v259_v5  ;;  %246 = vmatpush3.bf16.msra.mxu1 %v260_v6 }
   0xc   :  { %235 = vmatprep.subr.bf16.mxu0 %v264_v0  ;;  %247 = vmatprep.subr.bf16.mxu1 %v264_v0 }
   0xf   :  { %236 = vmatpush3.bf16.msra.mxu0 %v261_v7  ;;  %248 = vmatpush3.bf16.msra.mxu1 %v262_v8 }
  0x12   :  { %238 = vmatmul.mubr.msk.bf16.vlgmr.msra.gmra.mxu0 %vm69_vm1, %v263_v9  ;;  %250 = vmatmul.mubr.msk.bf16.vlgmr.msra.gmra.mxu1 %vm69_vm1, %v263_v9 }
  0xd2   :  { %v107_v12 = vpop.f32.mrf.mxu0  ;;  %v189_v14 = vpop.f32.mrf.mxu1 }
  0xd3   :  { %v108_v13 = vadd.f32 %v206_v10, %v107_v12  ;;  %v190_v15 = vadd.f32 %v213_v11, %v189_v14 }
  0xd4   :  { %v239_v16 = vpop.f32.mrf.mxu0  ;;  %v251_v17 = vpop.f32.mrf.mxu1 }
  0xd5   :  { %114 = vst [vmem:[%s351_s5] sm:$0xff] %v108_v13  ;;  %196 = vst [vmem:[%s352_s6] sm:$0xff] %v190_v15 }
  0xd6   :  { %v110_v18 = vpop.f32.mrf.mxu0  ;;  %v192_v20 = vpop.f32.mrf.mxu1 }
  0xd7   :  { %v111_v19 = vadd.f32 %v206_v10, %v110_v18  ;;  %v193_v21 = vadd.f32 %v213_v11, %v192_v20 }
  0xd8   :  { %v240_v22 = vpop.f32.mrf.mxu0  ;;  %v252_v23 = vpop.f32.mrf.mxu1 }
  0xd9   :  { %115 = vst [vmem:[%s351_s5 + $0x8] sm:$0xff] %v111_v19  ;;  %197 = vst [vmem:[%s352_s6 + $0x8] sm:$0xff] %v193_v21 }

// kernel: openunmix_forward.11
= control target key start
LH: loop header
LB: loop body
LE: loop exit
PB: predicated region body
PF: predicated region fallthrough
CT: control target
= control target key end

     0   :  { %v383_v0 = vmov 0.0   ;;  %vm384_vm0 = vmmov 0   ;;  %vm61_vm1 = vcmask 261120   ;;  %s491_s3 = inlined_call_operand.vmem [shape: bf16[32,128], index: 3, kind: input, shape index: {}]   ;;  %s492_s2 = inlined_call_operand.vmem [shape: bf16[32,128], index: 2, kind: input, shape index: {}]   ;;  %s493_s1 = inlined_call_operand.vmem [shape: bf16[16,32], index: 1, kind: input, shape index: {}]   ;;  %s494_s0 = inlined_call_operand.vmem [shape: bf16[16,32], index: 0, kind: input, shape index: {}]   ;;  %s495_s5 = inlined_call_operand.vmem [shape: bf16[32,128], index: 5, kind: input, shape index: {}]   ;;  %s496_s4 = inlined_call_operand.vmem [shape: bf16[32,128], index: 4, kind: input, shape index: {}]   ;;  %s497_s6 = inlined_call_operand.vmem [shape: f32[1,128], index: 6, kind: input, shape index: {}]   ;;  %s498_s8 = inlined_call_operand.vmem [shape: f32[16,128], index: 8, kind: output, shape index: {0}]   ;;  %s499_s7 = inlined_call_operand.vmem [shape: f32[1,128], index: 7, kind: input, shape index: {}]   ;;  %s500_s9 = inlined_call_operand.vmem [shape: f32[16,128], index: 9, kind: output, shape index: {1}]  }
   0x1   :  { %339 = vmatprep.subr.bf16.mxu0 %v383_v0  ;;  %347 = vmatprep.subr.bf16.mxu1 %v383_v0  ;;  %v373_v1 = vld [vmem:[%s491_s3 + $0x8] sm:$0xff]   ;;  %v375_v3 = vld [vmem:[%s491_s3] sm:$0xff]  }
   0x2   :  { %v374_v2 = vld [vmem:[%s492_s2 + $0x8] sm:$0xff]   ;;  %343 = vmatprep.mubr.msk.bf16.mxu0 %vm384_vm0, %v383_v0  ;;  %351 = vmatprep.mubr.msk.bf16.mxu1 %vm384_vm0, %v383_v0  ;;  %v376_v4 = vld [vmem:[%s492_s2] sm:$0xff]  }
   0x3   :  { %340 = vmatpush3.bf16.msra.mxu0 %v373_v1  ;;  %348 = vmatpush3.bf16.msra.mxu1 %v374_v2  ;;  %v377_v5 = vld [vmem:[%s493_s1] sm:$0xff]   ;;  %v379_v7 = vld [vmem:[%s495_s5 + $0x8] sm:$0xff]  }
   0x4   :  { %341 = vmatprep.subr.bf16.mxu0 %v383_v0  ;;  %349 = vmatprep.subr.bf16.mxu1 %v383_v0  ;;  %v378_v6 = vld [vmem:[%s494_s0] sm:$0xff]   ;;  %v380_v8 = vld [vmem:[%s496_s4 + $0x8] sm:$0xff]  }
   0x5   :  { %v381_v9 = vld [vmem:[%s495_s5] sm:$0xff]  }
   0x6   :  { %v382_v10 = vld [vmem:[%s496_s4] sm:$0xff]  }
   0x7   :  { %342 = vmatpush3.bf16.msra.mxu0 %v375_v3  ;;  %350 = vmatpush3.bf16.msra.mxu1 %v376_v4  ;;  %v319_v13 = vld [vmem:[%s497_s6] ss:$0 sm:$0xff] }
   0x8   :  { %355 = vmatprep.subr.bf16.mxu0 %v383_v0  ;;  %363 = vmatprep.subr.bf16.mxu1 %v383_v0  ;;  %v326_v26 = vld [vmem:[%s499_s7] ss:$0 sm:$0xff] }
   0xa   :  { %344 = vmatmul.mubr.msk.bf16.vlgmr.msra.gmra.mxu0 %vm61_vm1, %v377_v5  ;;  %352 = vmatmul.mubr.msk.bf16.vlgmr.msra.gmra.mxu1 %vm61_vm1, %v378_v6 }
   0xb   :  { %356 = vmatpush3.bf16.msra.mxu0 %v379_v7  ;;  %364 = vmatpush3.bf16.msra.mxu1 %v380_v8 }
   0xc   :  { %357 = vmatprep.subr.bf16.mxu0 %v383_v0  ;;  %365 = vmatprep.subr.bf16.mxu1 %v383_v0 }
   0xd   :  { %359 = vmatprep.mubr.msk.bf16.mxu0 %vm384_vm0, %v383_v0  ;;  %367 = vmatprep.mubr.msk.bf16.mxu1 %vm384_vm0, %v383_v0 }
   0xf   :  { %358 = vmatpush3.bf16.msra.mxu0 %v381_v9  ;;  %366 = vmatpush3.bf16.msra.mxu1 %v382_v10 }
  0x12   :  { %360 = vmatmul.mubr.msk.bf16.vlgmr.msra.gmra.mxu0 %vm61_vm1, %v377_v5  ;;  %368 = vmatmul.mubr.msk.bf16.vlgmr.msra.gmra.mxu1 %vm61_vm1, %v378_v6 }
  0xca   :  { %v99_v11 = vpop.f32.mrf.mxu0  ;;  %v160_v12 = vpop.f32.mrf.mxu1 }
  0xcb   :  { %v161_v14 = vadd.f32 %v160_v12, %v99_v11 }
  0xcc   :  { %v345_v15 = vpop.f32.mrf.mxu0  ;;  %v353_v16 = vpop.f32.mrf.mxu1 }
  0xcd   :  { %v174_v17 = vadd.f32 %v319_v13, %v161_v14 }
  0xce   :  { %v102_v18 = vpop.f32.mrf.mxu0  ;;  %v163_v19 = vpop.f32.mrf.mxu1 }
  0xcf   :  { %176 = vst [vmem:[%s498_s8] sm:$0xff] %v174_v17  ;;  %v164_v20 = vadd.f32 %v163_v19, %v102_v18 }
  0xd0   :  { %v346_v21 = vpop.f32.mrf.mxu0  ;;  %v354_v22 = vpop.f32.mrf.mxu1 }
  0xd1   :  { %v175_v23 = vadd.f32 %v319_v13, %v164_v20 }
  0xd2   :  { %v232_v24 = vpop.f32.mrf.mxu0  ;;  %v285_v25 = vpop.f32.mrf.mxu1 }
  0xd3   :  { %177 = vst [vmem:[%s498_s8 + $0x8] sm:$0xff] %v175_v23  ;;  %v286_v27 = vadd.f32 %v285_v25, %v232_v24 }
  0xd4   :  { %v361_v28 = vpop.f32.mrf.mxu0  ;;  %v369_v29 = vpop.f32.mrf.mxu1 }
  0xd5   :  { %v299_v30 = vadd.f32 %v326_v26, %v286_v27 }
  0xd6   :  { %v235_v31 = vpop.f32.mrf.mxu0  ;;  %v288_v32 = vpop.f32.mrf.mxu1 }
  0xd7   :  { %301 = vst [vmem:[%s500_s9] sm:$0xff] %v299_v30  ;;  %v289_v33 = vadd.f32 %v288_v32, %v235_v31 }
  0xd8   :  { %v362_v34 = vpop.f32.mrf.mxu0  ;;  %v370_v35 = vpop.f32.mrf.mxu1 }
  0xd9   :  { %v300_v36 = vadd.f32 %v326_v26, %v289_v33 }
  0xdb   :  { %302 = vst [vmem:[%s500_s9 + $0x8] sm:$0xff] %v300_v36 }

// kernel: openunmix_forward.15
= control target key start
LH: loop header
LB: loop body
LE: loop exit
PB: predicated region body
PF: predicated region fallthrough
CT: control target
= control target key end

     0   :  { %v492_v0 = vmov 0.0   ;;  %vm493_vm0 = vmmov 0   ;;  %vm75_vm1 = vcmask 261120   ;;  %vm149_vm2 = vcmask 523264   ;;  %s633_s5 = inlined_call_operand.vmem [shape: bf16[32,64], index: 5, kind: input, shape index: {}]   ;;  %s634_s1 = inlined_call_operand.vmem [shape: bf16[16,32], index: 1, kind: input, shape index: {}]   ;;  %s635_s4 = inlined_call_operand.vmem [shape: bf16[64,64], index: 4, kind: input, shape index: {}]   ;;  %s636_s6 = inlined_call_operand.vmem [shape: bf16[32,64], index: 6, kind: input, shape index: {}]   ;;  %s637_s2 = inlined_call_operand.vmem [shape: bf16[16,32], index: 2, kind: input, shape index: {}]   ;;  %s638_s0 = inlined_call_operand.vmem [shape: bf16[16,64], index: 0, kind: input, shape index: {}]   ;;  %s639_s9 = inlined_call_operand.vmem [shape: bf16[64,128], index: 9, kind: input, shape index: {}]   ;;  %s640_s7 = inlined_call_operand.vmem [shape: f32[1,64], index: 7, kind: input, shape index: {}]   ;;  %s641_s8 = inlined_call_operand.vmem [shape: f32[1,64], index: 8, kind: input, shape index: {}]   ;;  %s642_s10 = inlined_call_operand.vmem [shape: f32[1,128], index: 10, kind: input, shape index: {}]   ;;  %s643_s3 = inlined_call_operand.vmem [shape: bf16[16,128], index: 3, kind: input, shape index: {}]   ;;  %s644_s11 = inlined_call_operand.vmem [shape: f32[1,128], index: 11, kind: input, shape index: {}]   ;;  %s645_s12 = inlined_call_operand.vmem [shape: f32[16,128], index: 12, kind: output, shape index: {}]  }
   0x1   :  { %435 = vmatprep.subr.bf16.mxu1 %v492_v0  ;;  %v477_v1 = vld [vmem:[%s633_s5 + $0x8] sm:$0xff]   ;;  %439 = vmatprep.mubr.msk.bf16.mxu1 %vm493_vm0, %v492_v0  ;;  %v478_v2 = vld [vmem:[%s633_s5] sm:$0xff]   ;;  %v480_v5 = vld [vmem:[%s635_s4 + $0x18] sm:$0xff]  }
   0x2   :  { %455 = vmatprep.subr.bf16.mxu0 %v492_v0  ;;  %459 = vmatprep.mubr.msk.bf16.mxu0 %vm493_vm0, %v492_v0  ;;  %v479_v3 = vld [vmem:[%s634_s1] sm:$0xff]   ;;  %v482_v4 = vld [vmem:[%s636_s6 + $0x8] sm:$0xff]   ;;  %v481_v7 = vld [vmem:[%s635_s4 + $0x10] sm:$0xff]  }
   0x3   :  { %436 = vmatpush3.bf16.msra.mxu1 %v477_v1  ;;  %456 = vmatpush3.bf16.msra.mxu0 %v482_v4  ;;  %v484_v6 = vld [vmem:[%s636_s6] sm:$0xff]   ;;  %v483_v9 = vld [vmem:[%s635_s4 + $0x8] sm:$0xff]   ;;  %v488_v12 = vld [vmem:[%s639_s9 + $0x18] sm:$0xff]  }
   0x4   :  { %437 = vmatprep.subr.bf16.mxu1 %v492_v0  ;;  %457 = vmatprep.subr.bf16.mxu0 %v492_v0  ;;  %v485_v8 = vld [vmem:[%s637_s2] sm:$0xff]   ;;  %v489_v13 = vld [vmem:[%s639_s9 + $0x10] sm:$0xff]   ;;  %v490_v14 = vld [vmem:[%s639_s9 + $0x8] sm:$0xff]  }
   0x5   :  { %v486_v10 = vld [vmem:[%s635_s4] sm:$0xff]  }
   0x6   :  { %v487_v11 = vld [vmem:[%s638_s0] sm:$0xff]  }
   0x7   :  { %438 = vmatpush3.bf16.msra.mxu1 %v478_v2  ;;  %458 = vmatpush3.bf16.msra.mxu0 %v484_v6  ;;  %v491_v15 = vld [vmem:[%s639_s9] sm:$0xff]  }
   0x8   :  { %443 = vmatprep.subr.bf16.mxu1 %v492_v0  ;;  %463 = vmatprep.subr.bf16.mxu0 %v492_v0  ;;  %v406_v26 = vld [vmem:[%s640_s7] ss:$0 sm:$0xff] }
   0x9   :  { %v407_v32 = vld [vmem:[%s641_s8] ss:$0 sm:$0xff] }
   0xa   :  { %440 = vmatmul.mubr.msk.bf16.vlgmr.msra.gmra.mxu1 %vm75_vm1, %v479_v3  ;;  %460 = vmatmul.mubr.msk.bf16.vlgmr.msra.gmra.mxu0 %vm75_vm1, %v485_v8  ;;  %v413_v41 = vld [vmem:[%s642_s10] ss:$0 sm:$0xff] }
   0xb   :  { %444 = vmatpush3.bf16.msra.mxu1 %v480_v5  ;;  %451 = vmatprep.mubr.msk.bf16.mxu1 %vm493_vm0, %v492_v0  ;;  %v414_v43 = vld [vmem:[%s644_s11] ss:$0 sm:$0xff] }
   0xc   :  { %445 = vmatprep.subr.bf16.mxu1 %v492_v0  ;;  %471 = vmatprep.mubr.msk.bf16.mxu0 %vm493_vm0, %v492_v0  ;;  %v416_v44 = vld [vmem:[%s643_s3] sm:$0xff]  }
   0xd   :  { %464 = vmatpush3.bf16.msra.mxu0 %v488_v12  ;;  %v417_v48 = vunpack.c.l.bf16 %v416_v44  ;;  %v418_v55 = vunpack.c.h.bf16 %v416_v44 }
   0xe   :  { %465 = vmatprep.subr.bf16.mxu0 %v492_v0 }
   0xf   :  { %446 = vmatpush3.bf16.msra.mxu1 %v481_v7 }
  0x10   :  { %447 = vmatprep.subr.bf16.mxu1 %v492_v0 }
  0x11   :  { %466 = vmatpush3.bf16.msra.mxu0 %v489_v13 }
  0x12   :  { %467 = vmatprep.subr.bf16.mxu0 %v492_v0 }
  0x13   :  { %448 = vmatpush3.bf16.msra.mxu1 %v483_v9 }
  0x14   :  { %449 = vmatprep.subr.bf16.mxu1 %v492_v0 }
  0x15   :  { %468 = vmatpush3.bf16.msra.mxu0 %v490_v14 }
  0x16   :  { %469 = vmatprep.subr.bf16.mxu0 %v492_v0 }
  0x17   :  { %450 = vmatpush3.bf16.msra.mxu1 %v486_v10 }
  0x19   :  { %470 = vmatpush3.bf16.msra.mxu0 %v491_v15 }
  0x1a   :  { %452 = vmatmul.mubr.msk.bf16.vlgmr.msra.gmra.mxu1 %vm149_vm2, %v487_v11 }
  0xca   :  { %v113_v16 = vpop.f32.mrf.mxu1  ;;  %v254_v19 = vpop.f32.mrf.mxu0 }
  0xcc   :  { %v441_v17 = vpop.f32.mrf.mxu1  ;;  %v461_v21 = vpop.f32.mrf.mxu0 }
  0xce   :  { %v116_v18 = vpop.f32.mrf.mxu1  ;;  %v257_v22 = vpop.f32.mrf.mxu0 }
  0xd0   :  { %v442_v20 = vpop.f32.mrf.mxu1  ;;  %v462_v23 = vpop.f32.mrf.mxu0 }
  0xda   :  { %v187_v24 = vpop.f32.mrf.mxu1 }
  0xdb   :  { %v188_v25 = vadd.f32 %v187_v24, %v113_v16 }
  0xdc   :  { %v453_v27 = vpop.f32.mrf.mxu1 }
  0xdd   :  { %v261_v28 = vadd.f32 %v254_v19, %v188_v25 }
  0xde   :  { %v190_v29 = vpop.f32.mrf.mxu1 }
  0xdf   :  { %v270_v30 = vmul.f32 %v406_v26, %v261_v28  ;;  %v191_v31 = vadd.f32 %v190_v29, %v116_v18 }
  0xe0   :  { %v454_v33 = vpop.f32.mrf.mxu1 }
  0xe1   :  { %v262_v34 = vadd.f32 %v257_v22, %v191_v31  ;;  %v279_v35 = vadd.f32 %v407_v32, %v270_v30 }
  0xe3   :  { %v271_v36 = vmul.f32 %v406_v26, %v262_v34  ;;  %v281_v38 = vmax.f32 %v279_v35, 0.0 }
  0xe5   :  { %v280_v37 = vadd.f32 %v407_v32, %v271_v36 }
  0xe7   :  { %v282_v39 = vmax.f32 %v280_v37, 0.0 }
  0xe9   :  { %v283_v40 = vpack.c.bf16 %v282_v39, %v281_v38 }
  0xeb   :  { %472 = vmatmul.mubr.msk.bf16.vlgmr.msra.gmra.mxu0 %vm149_vm2, %v283_v40 }
 0x1ab   :  { %v353_v42 = vpop.f32.mrf.mxu0 }
 0x1ac   :  { %v367_v45 = vmul.f32 %v413_v41, %v353_v42 }
 0x1ad   :  { %v473_v46 = vpop.f32.mrf.mxu0 }
 0x1ae   :  { %v376_v47 = vadd.f32 %v414_v43, %v367_v45 }
 0x1af   :  { %v356_v49 = vpop.f32.mrf.mxu0 }
 0x1b0   :  { %v378_v50 = vmax.f32 %v376_v47, 0.0  ;;  %v368_v51 = vmul.f32 %v413_v41, %v356_v49 }
 0x1b1   :  { %v474_v52 = vpop.f32.mrf.mxu0 }
 0x1b2   :  { %v384_v53 = vmul.f32 %v417_v48, %v378_v50  ;;  %v377_v54 = vadd.f32 %v414_v43, %v368_v51 }
 0x1b4   :  { %386 = vst [vmem:[%s645_s12] sm:$0xff] %v384_v53  ;;  %v379_v56 = vmax.f32 %v377_v54, 0.0 }
 0x1b6   :  { %v385_v57 = vmul.f32 %v418_v55, %v379_v56 }
 0x1b8   :  { %387 = vst [vmem:[%s645_s12 + $0x8] sm:$0xff] %v385_v57 }

// kernel: openunmix_forward.10
= control target key start
LH: loop header
LB: loop body
LE: loop exit
PB: predicated region body
PF: predicated region fallthrough
CT: control target
= control target key end

     0   :  { %vm58_vm0 = vcmask 254976   ;;  %v2300_v0 = vmov 0.0   ;;  %vm2301_vm1 = vmmov 0   ;;  %vm85_vm2 = vcmask 261120   ;;  %s2302_s26 = smov 32   ;;  %s2303_s6 = smov 64   ;;  %s2880_s2 = inlined_call_operand.vmem [shape: bf16[32,128], index: 2, kind: input, shape index: {}]   ;;  %s2881_s3 = inlined_call_operand.vmem [shape: bf16[32,128], index: 3, kind: input, shape index: {}]   ;;  %s2882_s0 = inlined_call_operand.vmem [shape: f32[8,2,128], index: 0, kind: input, shape index: {}]   ;;  %s2883_s1 = inlined_call_operand.vmem [shape: f32[8,2,128], index: 1, kind: input, shape index: {}]   ;;  %s2884_s4 = inlined_call_operand.vmem [shape: bf16[8,2,32], index: 4, kind: output, shape index: {0}]   ;;  %s2885_s5 = inlined_call_operand.vmem [shape: bf16[8,2,32], index: 5, kind: output, shape index: {1}]  }
   0x1   :  { %2006 = vmatprep.subr.bf16.mxu0 %v2300_v0  ;;  %2014 = vmatprep.subr.bf16.mxu1 %v2300_v0  ;;  %v2140_v1 = vld [vmem:[%s2880_s2 + $0x8] sm:$0xff]   ;;  %59 = vst.msk [vmem:[#allocation2] sm:$0x3] %vm58_vm0, %v2300_v0  ;;  %60 = vst.msk [vmem:[#allocation3] sm:$0x3] %vm58_vm0, %v2300_v0  ;;  %v2142_v3 = vld [vmem:[%s2880_s2] sm:$0xff]  }
   0x2   :  { %61 = vst.msk [vmem:[#allocation4] sm:$0x3] %vm58_vm0, %v2300_v0  ;;  %62 = vst.msk [vmem:[#allocation5] sm:$0x3] %vm58_vm0, %v2300_v0  ;;  %v2141_v2 = vld [vmem:[%s2881_s3 + $0x8] sm:$0xff]   ;;  %2010 = vmatprep.mubr.msk.bf16.mxu0 %vm2301_vm1, %v2300_v0  ;;  %2018 = vmatprep.mubr.msk.bf16.mxu1 %vm2301_vm1, %v2300_v0  ;;  %v2143_v4 = vld [vmem:[%s2881_s3] sm:$0xff]  }
   0x3   :  { %2007 = vmatpush3.bf16.msra.mxu0 %v2140_v1  ;;  %2015 = vmatpush3.bf16.msra.mxu1 %v2141_v2  ;;  %v67_v11 = vld [vmem:[%s2882_s0] sm:$0x3]  ;;  %v1869_v12 = vld [vmem:[%s2883_s1 + $0xe] sm:$0x3]  ;;  %v1876_v59 = vld [vmem:[%s2882_s0 + $0x2] sm:$0x3] }
   0x4   :  { %2008 = vmatprep.subr.bf16.mxu0 %v2300_v0  ;;  %2016 = vmatprep.subr.bf16.mxu1 %v2300_v0  ;;  %v2144_v45 = vld [vmem:[%s2880_s2 + $0x8] sm:$0xff]   ;;  %v2146_v47 = vld [vmem:[%s2880_s2] sm:$0xff]   ;;  %vm268_vm3 = vcmask 253952  }
   0x5   :  { %v2145_v46 = vld [vmem:[%s2881_s3 + $0x8] sm:$0xff]   ;;  %v2147_v50 = vld [vmem:[%s2881_s3] sm:$0xff]  }
   0x6   :  { %v1880_v63 = vld [vmem:[%s2883_s1 + $0xc] sm:$0x3] }
   0x7   :  { %2009 = vmatpush3.bf16.msra.mxu0 %v2142_v3  ;;  %2017 = vmatpush3.bf16.msra.mxu1 %v2143_v4 }
   0x8   :  { %v63_v5 = vld [vmem:[#allocation2] sm:$0x3]  ;;  %v64_v7 = vld [vmem:[#allocation3] sm:$0x3]  ;;  %2022 = vmatprep.subr.bf16.mxu0 %v2300_v0  ;;  %2030 = vmatprep.subr.bf16.mxu1 %v2300_v0 }
   0x9   :  { %v65_v6 = vld [vmem:[#allocation4] sm:$0x3]  ;;  %v68_v8 = vpack.c.bf16 %v63_v5, %v63_v5  ;;  %201 = vrot.lane.b32.xlu1 %v64_v7, %s2302_s26  ;;  %v66_v10 = vld [vmem:[#allocation5] sm:$0x3] }
   0xa   :  { %v132_v9 = vpack.c.bf16 %v65_v6, %v65_v6 }
   0xb   :  { %2011 = vmatmul.mubr.msk.bf16.vlgmr.msra.gmra.mxu0 %vm85_vm2, %v68_v8 }
   0xc   :  { %2019 = vmatmul.mubr.msk.bf16.vlgmr.msra.gmra.mxu1 %vm85_vm2, %v132_v9  ;;  %2026 = vmatprep.mubr.msk.bf16.mxu0 %vm2301_vm1, %v2300_v0 }
   0xd   :  { %2034 = vmatprep.mubr.msk.bf16.mxu1 %vm2301_vm1, %v2300_v0  ;;  %229 = vrot.lane.b32.xlu1 %v66_v10, %s2302_s26 }
   0xe   :  { %2023 = vmatpush3.bf16.msra.mxu0 %v2144_v45  ;;  %2031 = vmatpush3.bf16.msra.mxu1 %v2145_v46  ;;  %v1892_v46 = vld [vmem:[%s2883_s1 + $0xa] sm:$0x3] }
   0xf   :  { %2024 = vmatprep.subr.bf16.mxu0 %v2300_v0  ;;  %2032 = vmatprep.subr.bf16.mxu1 %v2300_v0 }
  0x12   :  { %2025 = vmatpush3.bf16.msra.mxu0 %v2146_v47  ;;  %2033 = vmatpush3.bf16.msra.mxu1 %v2147_v50 }
  0x13   :  { %2038 = vmatprep.subr.bf16.mxu0 %v2300_v0  ;;  %2046 = vmatprep.subr.bf16.mxu1 %v2300_v0 }
  0x7b   :  { %v202_v37 = vpop.permute.xlu1 %201 }
  0x7f   :  { %v230_v39 = vpop.permute.xlu1 %229 }
  0xcb   :  { %v123_v13 = vpop.f32.mrf.mxu0 }
  0xcc   :  { %v186_v14 = vpop.f32.mrf.mxu1  ;;  %v129_v15 = vadd.f32 %v123_v13, %v67_v11 }
  0xcd   :  { %v192_v16 = vadd.f32 %v1869_v12, %v186_v14  ;;  %v2012_v17 = vpop.f32.mrf.mxu0 }
  0xce   :  { %v2020_v18 = vpop.f32.mrf.mxu1  ;;  %2172 = vtanh.f32 %v129_v15  ;;  %v1873_v25 = vmul.f32 -1.442695, %v129_v15 }
  0xcf   :  { %v126_v19 = vpop.f32.mrf.mxu0  ;;  %2174 = vtanh.f32 %v192_v16  ;;  %v1874_v26 = vmul.f32 -1.442695, %v192_v16 }
  0xd0   :  { %v189_v20 = vpop.f32.mrf.mxu1  ;;  %2176 = vpow2.f32 %v1873_v25 }
  0xd1   :  { %v2013_v21 = vpop.f32.mrf.mxu0  ;;  %2178 = vpow2.f32 %v1874_v26 }
  0xd2   :  { %v2021_v22 = vpop.f32.mrf.mxu1 }
  0xdb   :  { %v2173_v23 = vpop.eup %2172 }
  0xdc   :  { %206 = vrot.lane.b32.xlu0 %v2173_v23, %s2303_s6  ;;  %v2175_v24 = vpop.eup %2174 }
  0xdd   :  { %v2177_v27 = vpop.eup %2176 }
  0xde   :  { %v196_v28 = vadd.f32 1.0, %v2177_v27  ;;  %v2179_v29 = vpop.eup %2178 }
  0xdf   :  { %v224_v30 = vadd.f32 1.0, %v2179_v29  ;;  %v2149_v29 = vld [vmem:[%s2881_s3 + $0x8] sm:$0xff]  }
  0xe0   :  { %234 = vrot.lane.b32.xlu0 %v2175_v24, %s2303_s6  ;;  %2180 = vrcp.f32 %v196_v28  ;;  %v2148_v28 = vld [vmem:[%s2880_s2 + $0x8] sm:$0xff]  }
  0xe1   :  { %2182 = vrcp.f32 %v224_v30  ;;  %v2150_v30 = vld [vmem:[%s2880_s2] sm:$0xff]  }
  0xed   :  { %v2181_v31 = vpop.eup %2180 }
  0xee   :  { %v2183_v34 = vpop.eup %2182  ;;  %v204_v38 = vmul.f32 %v2181_v31, %v202_v37 }
  0xef   :  { %v232_v42 = vmul.f32 %v2183_v34, %v230_v39 }
 0x14e   :  { %v207_v32 = vpop.permute.xlu0 %206 }
 0x14f   :  { %v209_v33 = vmul.f32 %v2181_v31, %v207_v32 }
 0x151   :  { %211 = vrot.lane.b32.xlu0 %v209_v33, %s2302_s26  ;;  %v2151_v33 = vld [vmem:[%s2881_s3] sm:$0xff]  }
 0x152   :  { %v235_v35 = vpop.permute.xlu0 %234 }
 0x153   :  { %v237_v36 = vmul.f32 %v2183_v34, %v235_v35 }
 0x155   :  { %239 = vrot.lane.b32.xlu1 %v237_v36, %s2302_s26 }
 0x1c3   :  { %v212_v40 = vpop.permute.xlu0 %211 }
 0x1c4   :  { %v2384_v41 = vadd.f32 %v212_v40, %v204_v38 }
 0x1c6   :  { %2184 = vtanh.f32 %v2384_v41 }
 0x1c7   :  { %v240_v43 = vpop.permute.xlu1 %239 }
 0x1c8   :  { %v2387_v44 = vadd.f32 %v240_v43, %v232_v42  ;;  %v1888_v42 = vld [vmem:[%s2882_s0 + $0x4] sm:$0x3] }
 0x1ca   :  { %2186 = vtanh.f32 %v2387_v44 }
 0x1d3   :  { %v2185_v48 = vpop.eup %2184 }
 0x1d4   :  { %217 = vrot.lane.b32.xlu0 %v2185_v48, %s2303_s6 }
 0x1d7   :  { %v2187_v49 = vpop.eup %2186 }
 0x1d8   :  { %245 = vrot.lane.b32.xlu1 %v2187_v49, %s2303_s6 }
 0x246   :  { %v218_v51 = vpop.permute.xlu0 %217 }
 0x247   :  { %v220_v52 = vmul.f32 %v2181_v31, %v218_v51 }
 0x249   :  { %v2408_v53 = vpack.c.bf16 %v220_v52, %v220_v52 }
 0x24a   :  { %v246_v54 = vpop.permute.xlu1 %245 }
 0x24b   :  { %v248_v55 = vmul.f32 %v2183_v34, %v246_v54  ;;  %297 = vrot.lane.b32.xlu0 %v2408_v53, %s2302_s26 }
 0x24d   :  { %v2412_v56 = vpack.c.bf16 %v248_v55, %v248_v55 }
 0x24f   :  { %361 = vrot.lane.b32.xlu1 %v2412_v56, %s2302_s26 }
 0x2bd   :  { %v298_v57 = vpop.permute.xlu0 %297 }
 0x2be   :  { %2027 = vmatmul.mubr.msk.bf16.vlgmr.msra.gmra.mxu0 %vm85_vm2, %v298_v57 }
 0x2bf   :  { %2042 = vmatprep.mubr.msk.bf16.mxu0 %vm2301_vm1, %v2300_v0  ;;  %2039 = vmatpush3.bf16.msra.mxu0 %v2148_v28 }
 0x2c0   :  { %2040 = vmatprep.subr.bf16.mxu0 %v2300_v0 }
 0x2c1   :  { %v362_v58 = vpop.permute.xlu1 %361 }
 0x2c2   :  { %2035 = vmatmul.mubr.msk.bf16.vlgmr.msra.gmra.mxu1 %vm85_vm2, %v362_v58 }
 0x2c3   :  { %2050 = vmatprep.mubr.msk.bf16.mxu1 %vm2301_vm1, %v2300_v0  ;;  %2047 = vmatpush3.bf16.msra.mxu1 %v2149_v29 }
 0x2c4   :  { %2048 = vmatprep.subr.bf16.mxu1 %v2300_v0  ;;  %2041 = vmatpush3.bf16.msra.mxu0 %v2150_v30 }
 0x2c5   :  { %2054 = vmatprep.subr.bf16.mxu0 %v2300_v0 }
 0x2c7   :  { %2049 = vmatpush3.bf16.msra.mxu1 %v2151_v33 }
 0x2c8   :  { %2062 = vmatprep.subr.bf16.mxu1 %v2300_v0 }
 0x37e   :  { %v348_v60 = vpop.f32.mrf.mxu0 }
 0x37f   :  { %v354_v61 = vadd.f32 %v1876_v59, %v348_v60 }
 0x380   :  { %v2028_v62 = vpop.f32.mrf.mxu0 }
 0x381   :  { %2188 = vtanh.f32 %v354_v61  ;;  %v1884_v10 = vmul.f32 -1.442695, %v354_v61 }
 0x382   :  { %v351_v1 = vpop.f32.mrf.mxu0  ;;  %v412_v2 = vpop.f32.mrf.mxu1 }
 0x383   :  { %v418_v3 = vadd.f32 %v1880_v63, %v412_v2 }
 0x384   :  { %v2029_v4 = vpop.f32.mrf.mxu0  ;;  %v2036_v5 = vpop.f32.mrf.mxu1 }
 0x385   :  { %2190 = vtanh.f32 %v418_v3  ;;  %v1885_v11 = vmul.f32 -1.442695, %v418_v3 }
 0x386   :  { %v415_v6 = vpop.f32.mrf.mxu1  ;;  %2192 = vpow2.f32 %v1884_v10 }
 0x387   :  { %2194 = vpow2.f32 %v1885_v11 }
 0x388   :  { %v2037_v7 = vpop.f32.mrf.mxu1 }
 0x38e   :  { %v2189_v8 = vpop.eup %2188 }
 0x38f   :  { %428 = vrot.lane.b32.xlu0 %v2189_v8, %s2303_s6 }
 0x392   :  { %v2191_v9 = vpop.eup %2190 }
 0x393   :  { %452 = vrot.lane.b32.xlu1 %v2191_v9, %s2303_s6  ;;  %v2193_v12 = vpop.eup %2192 }
 0x394   :  { %v422_v13 = vadd.f32 1.0, %v2193_v12  ;;  %v2195_v14 = vpop.eup %2194 }
 0x395   :  { %v446_v15 = vadd.f32 1.0, %v2195_v14  ;;  %v2153_v14 = vld [vmem:[%s2881_s3 + $0x8] sm:$0xff]  }
 0x396   :  { %2196 = vrcp.f32 %v422_v13  ;;  %v2152_v13 = vld [vmem:[%s2880_s2 + $0x8] sm:$0xff]  }
 0x397   :  { %2198 = vrcp.f32 %v446_v15  ;;  %v2154_v15 = vld [vmem:[%s2880_s2] sm:$0xff]  }
 0x3a3   :  { %v2197_v16 = vpop.eup %2196 }
 0x3a4   :  { %v2199_v19 = vpop.eup %2198  ;;  %v426_v22 = vmul.f32 %v2197_v16, %v2384_v41 }
 0x3a5   :  { %v450_v25 = vmul.f32 %v2199_v19, %v2387_v44 }
 0x401   :  { %v429_v17 = vpop.permute.xlu0 %428 }
 0x402   :  { %v431_v18 = vmul.f32 %v2197_v16, %v429_v17 }
 0x404   :  { %433 = vrot.lane.b32.xlu0 %v431_v18, %s2302_s26  ;;  %v2155_v18 = vld [vmem:[%s2881_s3] sm:$0xff]  }
 0x405   :  { %v453_v20 = vpop.permute.xlu1 %452 }
 0x406   :  { %v455_v21 = vmul.f32 %v2199_v19, %v453_v20 }
 0x408   :  { %457 = vrot.lane.b32.xlu1 %v455_v21, %s2302_s26 }
 0x476   :  { %v434_v23 = vpop.permute.xlu0 %433 }
 0x477   :  { %v2433_v24 = vadd.f32 %v434_v23, %v426_v22 }
 0x479   :  { %2200 = vtanh.f32 %v2433_v24 }
 0x47a   :  { %v458_v26 = vpop.permute.xlu1 %457 }
 0x47b   :  { %v2437_v27 = vadd.f32 %v458_v26, %v450_v25 }
 0x47d   :  { %2202 = vtanh.f32 %v2437_v27 }
 0x486   :  { %v2201_v31 = vpop.eup %2200 }
 0x487   :  { %439 = vrot.lane.b32.xlu0 %v2201_v31, %s2303_s6  ;;  %v1904_v31 = vld [vmem:[%s2883_s1 + $0x8] sm:$0x3] }
 0x48a   :  { %v2203_v32 = vpop.eup %2202 }
 0x48b   :  { %463 = vrot.lane.b32.xlu1 %v2203_v32, %s2303_s6 }
 0x4f9   :  { %v440_v34 = vpop.permute.xlu0 %439 }
 0x4fa   :  { %v442_v35 = vmul.f32 %v2197_v16, %v440_v34 }
 0x4fc   :  { %v2458_v36 = vpack.c.bf16 %v442_v35, %v442_v35 }
 0x4fd   :  { %v464_v37 = vpop.permute.xlu1 %463 }
 0x4fe   :  { %v466_v38 = vmul.f32 %v2199_v19, %v464_v37  ;;  %515 = vrot.lane.b32.xlu0 %v2458_v36, %s2302_s26 }
 0x500   :  { %v2462_v39 = vpack.c.bf16 %v466_v38, %v466_v38 }
 0x502   :  { %579 = vrot.lane.b32.xlu1 %v2462_v39, %s2302_s26 }
 0x570   :  { %v516_v40 = vpop.permute.xlu0 %515 }
 0x571   :  { %2043 = vmatmul.mubr.msk.bf16.vlgmr.msra.gmra.mxu0 %vm85_vm2, %v516_v40 }
 0x572   :  { %2058 = vmatprep.mubr.msk.bf16.mxu0 %vm2301_vm1, %v2300_v0  ;;  %2055 = vmatpush3.bf16.msra.mxu0 %v2152_v13 }
 0x573   :  { %2056 = vmatprep.subr.bf16.mxu0 %v2300_v0 }
 0x574   :  { %v580_v41 = vpop.permute.xlu1 %579 }
 0x575   :  { %2051 = vmatmul.mubr.msk.bf16.vlgmr.msra.gmra.mxu1 %vm85_vm2, %v580_v41 }
 0x576   :  { %2066 = vmatprep.mubr.msk.bf16.mxu1 %vm2301_vm1, %v2300_v0  ;;  %2063 = vmatpush3.bf16.msra.mxu1 %v2153_v14  ;;  %v1912_v14 = vld [vmem:[%s2882_s0 + $0x8] sm:$0x3] }
 0x577   :  { %2064 = vmatprep.subr.bf16.mxu1 %v2300_v0  ;;  %2057 = vmatpush3.bf16.msra.mxu0 %v2154_v15 }
 0x578   :  { %2070 = vmatprep.subr.bf16.mxu0 %v2300_v0 }
 0x57a   :  { %2065 = vmatpush3.bf16.msra.mxu1 %v2155_v18  ;;  %v1916_v18 = vld [vmem:[%s2883_s1 + $0x6] sm:$0x3] }
 0x57b   :  { %2078 = vmatprep.subr.bf16.mxu1 %v2300_v0 }
 0x631   :  { %v566_v43 = vpop.f32.mrf.mxu0 }
 0x632   :  { %v572_v44 = vadd.f32 %v1888_v42, %v566_v43 }
 0x633   :  { %v2044_v45 = vpop.f32.mrf.mxu0 }
 0x634   :  { %2204 = vtanh.f32 %v572_v44  ;;  %v1896_v58 = vmul.f32 -1.442695, %v572_v44 }
 0x635   :  { %v569_v47 = vpop.f32.mrf.mxu0  ;;  %v630_v48 = vpop.f32.mrf.mxu1 }
 0x636   :  { %v636_v49 = vadd.f32 %v1892_v46, %v630_v48 }
 0x637   :  { %v2045_v50 = vpop.f32.mrf.mxu0  ;;  %v2052_v51 = vpop.f32.mrf.mxu1 }
 0x638   :  { %2206 = vtanh.f32 %v636_v49  ;;  %v1897_v59 = vmul.f32 -1.442695, %v636_v49 }
 0x639   :  { %v633_v52 = vpop.f32.mrf.mxu1  ;;  %2208 = vpow2.f32 %v1896_v58 }
 0x63a   :  { %2210 = vpow2.f32 %v1897_v59 }
 0x63b   :  { %v2053_v54 = vpop.f32.mrf.mxu1 }
 0x641   :  { %v2205_v55 = vpop.eup %2204 }
 0x642   :  { %646 = vrot.lane.b32.xlu0 %v2205_v55, %s2303_s6 }
 0x645   :  { %v2207_v57 = vpop.eup %2206 }
 0x646   :  { %670 = vrot.lane.b32.xlu1 %v2207_v57, %s2303_s6  ;;  %v2209_v60 = vpop.eup %2208 }
 0x647   :  { %v640_v61 = vadd.f32 1.0, %v2209_v60  ;;  %v2211_v62 = vpop.eup %2210 }
 0x648   :  { %v664_v63 = vadd.f32 1.0, %v2211_v62 }
 0x649   :  { %2212 = vrcp.f32 %v640_v61 }
 0x64a   :  { %2214 = vrcp.f32 %v664_v63  ;;  %v2156_v63 = vld [vmem:[%s2880_s2 + $0x8] sm:$0xff]  }
 0x656   :  { %v2213_v1 = vpop.eup %2212 }
 0x657   :  { %v2215_v4 = vpop.eup %2214  ;;  %v644_v7 = vmul.f32 %v2213_v1, %v2433_v24 }
 0x658   :  { %v668_v10 = vmul.f32 %v2215_v4, %v2437_v27  ;;  %v1900_v27 = vld [vmem:[%s2882_s0 + $0x6] sm:$0x3] }
 0x6b4   :  { %v647_v2 = vpop.permute.xlu0 %646 }
 0x6b5   :  { %v649_v3 = vmul.f32 %v2213_v1, %v647_v2  ;;  %v2158_v2 = vld [vmem:[%s2880_s2] sm:$0xff]  }
 0x6b7   :  { %651 = vrot.lane.b32.xlu0 %v649_v3, %s2302_s26 }
 0x6b8   :  { %v671_v5 = vpop.permute.xlu1 %670 }
 0x6b9   :  { %v673_v6 = vmul.f32 %v2215_v4, %v671_v5  ;;  %v2159_v5 = vld [vmem:[%s2881_s3] sm:$0xff]  }
 0x6bb   :  { %675 = vrot.lane.b32.xlu1 %v673_v6, %s2302_s26 }
 0x729   :  { %v652_v8 = vpop.permute.xlu0 %651 }
 0x72a   :  { %v2483_v9 = vadd.f32 %v652_v8, %v644_v7 }
 0x72c   :  { %2216 = vtanh.f32 %v2483_v9 }
 0x72d   :  { %v676_v11 = vpop.permute.xlu1 %675 }
 0x72e   :  { %v2487_v12 = vadd.f32 %v676_v11, %v668_v10 }
 0x730   :  { %2218 = vtanh.f32 %v2487_v12 }
 0x739   :  { %v2217_v16 = vpop.eup %2216 }
 0x73a   :  { %657 = vrot.lane.b32.xlu0 %v2217_v16, %s2303_s6 }
 0x73d   :  { %v2219_v17 = vpop.eup %2218 }
 0x73e   :  { %681 = vrot.lane.b32.xlu1 %v2219_v17, %s2303_s6 }
 0x7ac   :  { %v658_v19 = vpop.permute.xlu0 %657 }
 0x7ad   :  { %v660_v20 = vmul.f32 %v2213_v1, %v658_v19  ;;  %v2157_v1 = vld [vmem:[%s2881_s3 + $0x8] sm:$0xff]  }
 0x7af   :  { %v2508_v21 = vpack.c.bf16 %v660_v20, %v660_v20 }
 0x7b0   :  { %v682_v22 = vpop.permute.xlu1 %681 }
 0x7b1   :  { %v684_v23 = vmul.f32 %v2215_v4, %v682_v22  ;;  %733 = vrot.lane.b32.xlu0 %v2508_v21, %s2302_s26 }
 0x7b3   :  { %v2512_v24 = vpack.c.bf16 %v684_v23, %v684_v23 }
 0x7b5   :  { %797 = vrot.lane.b32.xlu1 %v2512_v24, %s2302_s26 }
 0x823   :  { %v734_v25 = vpop.permute.xlu0 %733 }
 0x824   :  { %2059 = vmatmul.mubr.msk.bf16.vlgmr.msra.gmra.mxu0 %vm85_vm2, %v734_v25 }
 0x825   :  { %2074 = vmatprep.mubr.msk.bf16.mxu0 %vm2301_vm1, %v2300_v0  ;;  %2071 = vmatpush3.bf16.msra.mxu0 %v2156_v63 }
 0x826   :  { %2072 = vmatprep.subr.bf16.mxu0 %v2300_v0 }
 0x827   :  { %v798_v26 = vpop.permute.xlu1 %797 }
 0x828   :  { %2067 = vmatmul.mubr.msk.bf16.vlgmr.msra.gmra.mxu1 %vm85_vm2, %v798_v26 }
 0x829   :  { %2082 = vmatprep.mubr.msk.bf16.mxu1 %vm2301_vm1, %v2300_v0  ;;  %2079 = vmatpush3.bf16.msra.mxu1 %v2157_v1 }
 0x82a   :  { %2080 = vmatprep.subr.bf16.mxu1 %v2300_v0  ;;  %2073 = vmatpush3.bf16.msra.mxu0 %v2158_v2 }
 0x82b   :  { %2086 = vmatprep.subr.bf16.mxu0 %v2300_v0 }
 0x82d   :  { %2081 = vmatpush3.bf16.msra.mxu1 %v2159_v5 }
 0x82e   :  { %2094 = vmatprep.subr.bf16.mxu1 %v2300_v0 }
 0x8e4   :  { %v784_v28 = vpop.f32.mrf.mxu0 }
 0x8e5   :  { %v790_v29 = vadd.f32 %v1900_v27, %v784_v28 }
 0x8e6   :  { %v2060_v30 = vpop.f32.mrf.mxu0 }
 0x8e7   :  { %2220 = vtanh.f32 %v790_v29  ;;  %v1908_v43 = vmul.f32 -1.442695, %v790_v29 }
 0x8e8   :  { %v787_v32 = vpop.f32.mrf.mxu0  ;;  %v848_v33 = vpop.f32.mrf.mxu1 }
 0x8e9   :  { %v854_v34 = vadd.f32 %v1904_v31, %v848_v33 }
 0x8ea   :  { %v2061_v35 = vpop.f32.mrf.mxu0  ;;  %v2068_v37 = vpop.f32.mrf.mxu1 }
 0x8eb   :  { %2222 = vtanh.f32 %v854_v34  ;;  %v1909_v44 = vmul.f32 -1.442695, %v854_v34 }
 0x8ec   :  { %v851_v38 = vpop.f32.mrf.mxu1  ;;  %2224 = vpow2.f32 %v1908_v43 }
 0x8ed   :  { %2226 = vpow2.f32 %v1909_v44 }
 0x8ee   :  { %v2069_v40 = vpop.f32.mrf.mxu1 }
 0x8f4   :  { %v2221_v41 = vpop.eup %2220 }
 0x8f5   :  { %864 = vrot.lane.b32.xlu0 %v2221_v41, %s2303_s6 }
 0x8f8   :  { %v2223_v42 = vpop.eup %2222 }
 0x8f9   :  { %888 = vrot.lane.b32.xlu1 %v2223_v42, %s2303_s6  ;;  %v2225_v45 = vpop.eup %2224 }
 0x8fa   :  { %v858_v46 = vadd.f32 1.0, %v2225_v45  ;;  %v2227_v47 = vpop.eup %2226 }
 0x8fb   :  { %v882_v48 = vadd.f32 1.0, %v2227_v47 }
 0x8fc   :  { %2228 = vrcp.f32 %v858_v46 }
 0x8fd   :  { %2230 = vrcp.f32 %v882_v48 }
 0x909   :  { %v2229_v49 = vpop.eup %2228 }
 0x90a   :  { %v2231_v52 = vpop.eup %2230  ;;  %v862_v57 = vmul.f32 %v2229_v49, %v2483_v9 }
 0x90b   :  { %v886_v60 = vmul.f32 %v2231_v52, %v2487_v12 }
 0x967   :  { %v865_v50 = vpop.permute.xlu0 %864 }
 0x968   :  { %v867_v51 = vmul.f32 %v2229_v49, %v865_v50  ;;  %v2160_v50 = vld [vmem:[%s2880_s2 + $0x8] sm:$0xff]  }
 0x96a   :  { %869 = vrot.lane.b32.xlu0 %v867_v51, %s2302_s26  ;;  %v2161_v51 = vld [vmem:[%s2881_s3 + $0x8] sm:$0xff]  }
 0x96b   :  { %v889_v54 = vpop.permute.xlu1 %888 }
 0x96c   :  { %v891_v55 = vmul.f32 %v2231_v52, %v889_v54 }
 0x96e   :  { %893 = vrot.lane.b32.xlu1 %v891_v55, %s2302_s26 }
 0x9dc   :  { %v870_v58 = vpop.permute.xlu0 %869 }
 0x9dd   :  { %v2533_v59 = vadd.f32 %v870_v58, %v862_v57  ;;  %v2163_v57 = vld [vmem:[%s2881_s3] sm:$0xff]  }
 0x9df   :  { %2232 = vtanh.f32 %v2533_v59 }
 0x9e0   :  { %v894_v61 = vpop.permute.xlu1 %893 }
 0x9e1   :  { %v2537_v62 = vadd.f32 %v894_v61, %v886_v60 }
 0x9e3   :  { %2234 = vtanh.f32 %v2537_v62 }
 0x9ec   :  { %v2233_v3 = vpop.eup %2232 }
 0x9ed   :  { %875 = vrot.lane.b32.xlu0 %v2233_v3, %s2303_s6  ;;  %v1924_v3 = vld [vmem:[%s2882_s0 + $0xa] sm:$0x3] }
 0x9f0   :  { %v2235_v4 = vpop.eup %2234 }
 0x9f1   :  { %899 = vrot.lane.b32.xlu1 %v2235_v4, %s2303_s6 }
 0xa5f   :  { %v876_v6 = vpop.permute.xlu0 %875 }
 0xa60   :  { %v878_v7 = vmul.f32 %v2229_v49, %v876_v6 }
 0xa62   :  { %v2558_v8 = vpack.c.bf16 %v878_v7, %v878_v7  ;;  %v1928_v7 = vld [vmem:[%s2883_s1 + $0x4] sm:$0x3] }
 0xa63   :  { %v900_v9 = vpop.permute.xlu1 %899 }
 0xa64   :  { %v902_v10 = vmul.f32 %v2231_v52, %v900_v9  ;;  %951 = vrot.lane.b32.xlu0 %v2558_v8, %s2302_s26  ;;  %v2162_v52 = vld [vmem:[%s2880_s2] sm:$0xff]  }
 0xa66   :  { %v2562_v11 = vpack.c.bf16 %v902_v10, %v902_v10 }
 0xa68   :  { %1015 = vrot.lane.b32.xlu1 %v2562_v11, %s2302_s26 }
 0xad6   :  { %v952_v12 = vpop.permute.xlu0 %951 }
 0xad7   :  { %2075 = vmatmul.mubr.msk.bf16.vlgmr.msra.gmra.mxu0 %vm85_vm2, %v952_v12 }
 0xad8   :  { %2090 = vmatprep.mubr.msk.bf16.mxu0 %vm2301_vm1, %v2300_v0  ;;  %2087 = vmatpush3.bf16.msra.mxu0 %v2160_v50 }
 0xad9   :  { %2088 = vmatprep.subr.bf16.mxu0 %v2300_v0 }
 0xada   :  { %v1016_v13 = vpop.permute.xlu1 %1015 }
 0xadb   :  { %2083 = vmatmul.mubr.msk.bf16.vlgmr.msra.gmra.mxu1 %vm85_vm2, %v1016_v13 }
 0xadc   :  { %2098 = vmatprep.mubr.msk.bf16.mxu1 %vm2301_vm1, %v2300_v0  ;;  %2095 = vmatpush3.bf16.msra.mxu1 %v2161_v51 }
 0xadd   :  { %2096 = vmatprep.subr.bf16.mxu1 %v2300_v0  ;;  %2089 = vmatpush3.bf16.msra.mxu0 %v2162_v52 }
 0xade   :  { %2102 = vmatprep.subr.bf16.mxu0 %v2300_v0 }
 0xae0   :  { %2097 = vmatpush3.bf16.msra.mxu1 %v2163_v57  ;;  %v1936_v57 = vld [vmem:[%s2882_s0 + $0xc] sm:$0x3] }
 0xae1   :  { %2110 = vmatprep.subr.bf16.mxu1 %v2300_v0 }
 0xb97   :  { %v1002_v15 = vpop.f32.mrf.mxu0 }
 0xb98   :  { %v1008_v16 = vadd.f32 %v1912_v14, %v1002_v15 }
 0xb99   :  { %v2076_v17 = vpop.f32.mrf.mxu0 }
 0xb9a   :  { %2236 = vtanh.f32 %v1008_v16  ;;  %v1920_v30 = vmul.f32 -1.442695, %v1008_v16 }
 0xb9b   :  { %v1005_v19 = vpop.f32.mrf.mxu0  ;;  %v1066_v20 = vpop.f32.mrf.mxu1 }
 0xb9c   :  { %v1072_v22 = vadd.f32 %v1916_v18, %v1066_v20 }
 0xb9d   :  { %v2077_v23 = vpop.f32.mrf.mxu0  ;;  %v2084_v25 = vpop.f32.mrf.mxu1 }
 0xb9e   :  { %2238 = vtanh.f32 %v1072_v22  ;;  %v1921_v31 = vmul.f32 -1.442695, %v1072_v22 }
 0xb9f   :  { %v1069_v26 = vpop.f32.mrf.mxu1  ;;  %2240 = vpow2.f32 %v1920_v30 }
 0xba0   :  { %2242 = vpow2.f32 %v1921_v31 }
 0xba1   :  { %v2085_v27 = vpop.f32.mrf.mxu1 }
 0xba7   :  { %v2237_v28 = vpop.eup %2236 }
 0xba8   :  { %1082 = vrot.lane.b32.xlu0 %v2237_v28, %s2303_s6 }
 0xbab   :  { %v2239_v29 = vpop.eup %2238 }
 0xbac   :  { %1106 = vrot.lane.b32.xlu1 %v2239_v29, %s2303_s6  ;;  %v2241_v32 = vpop.eup %2240 }
 0xbad   :  { %v1076_v33 = vadd.f32 1.0, %v2241_v32  ;;  %v2243_v34 = vpop.eup %2242 }
 0xbae   :  { %v1100_v35 = vadd.f32 1.0, %v2243_v34 }
 0xbaf   :  { %2244 = vrcp.f32 %v1076_v33 }
 0xbb0   :  { %2246 = vrcp.f32 %v1100_v35 }
 0xbbc   :  { %v2245_v37 = vpop.eup %2244 }
 0xbbd   :  { %v2247_v41 = vpop.eup %2246  ;;  %v1080_v44 = vmul.f32 %v2245_v37, %v2533_v59 }
 0xbbe   :  { %v1104_v47 = vmul.f32 %v2247_v41, %v2537_v62 }
 0xc1a   :  { %v1083_v38 = vpop.permute.xlu0 %1082 }
 0xc1b   :  { %v1085_v40 = vmul.f32 %v2245_v37, %v1083_v38 }
 0xc1d   :  { %1087 = vrot.lane.b32.xlu0 %v1085_v40, %s2302_s26 }
 0xc1e   :  { %v1107_v42 = vpop.permute.xlu1 %1106 }
 0xc1f   :  { %v1109_v43 = vmul.f32 %v2247_v41, %v1107_v42  ;;  %v2165_v42 = vld [vmem:[%s2881_s3 + $0x8] sm:$0xff]  }
 0xc21   :  { %1111 = vrot.lane.b32.xlu1 %v1109_v43, %s2302_s26  ;;  %v2166_v43 = vld [vmem:[%s2880_s2] sm:$0xff]  }
 0xc8f   :  { %v1088_v45 = vpop.permute.xlu0 %1087 }
 0xc90   :  { %v2583_v46 = vadd.f32 %v1088_v45, %v1080_v44 }
 0xc92   :  { %2248 = vtanh.f32 %v2583_v46 }
 0xc93   :  { %v1112_v48 = vpop.permute.xlu1 %1111 }
 0xc94   :  { %v2587_v49 = vadd.f32 %v1112_v48, %v1104_v47 }
 0xc96   :  { %2250 = vtanh.f32 %v2587_v49 }
 0xc9f   :  { %v2249_v54 = vpop.eup %2248 }
 0xca0   :  { %1093 = vrot.lane.b32.xlu0 %v2249_v54, %s2303_s6 }
 0xca3   :  { %v2251_v55 = vpop.eup %2250 }
 0xca4   :  { %1117 = vrot.lane.b32.xlu1 %v2251_v55, %s2303_s6 }
 0xd12   :  { %v1094_v58 = vpop.permute.xlu0 %1093 }
 0xd13   :  { %v1096_v59 = vmul.f32 %v2245_v37, %v1094_v58 }
 0xd15   :  { %v2608_v60 = vpack.c.bf16 %v1096_v59, %v1096_v59 }
 0xd16   :  { %v1118_v61 = vpop.permute.xlu1 %1117 }
 0xd17   :  { %v1120_v62 = vmul.f32 %v2247_v41, %v1118_v61  ;;  %1169 = vrot.lane.b32.xlu0 %v2608_v60, %s2302_s26  ;;  %v2164_v41 = vld [vmem:[%s2880_s2 + $0x8] sm:$0xff]  }
 0xd19   :  { %v2612_v63 = vpack.c.bf16 %v1120_v62, %v1120_v62  ;;  %v1940_v62 = vld [vmem:[%s2883_s1 + $0x2] sm:$0x3] }
 0xd1b   :  { %1233 = vrot.lane.b32.xlu1 %v2612_v63, %s2302_s26 }
 0xd89   :  { %v1170_v1 = vpop.permute.xlu0 %1169 }
 0xd8a   :  { %2091 = vmatmul.mubr.msk.bf16.vlgmr.msra.gmra.mxu0 %vm85_vm2, %v1170_v1 }
 0xd8b   :  { %2106 = vmatprep.mubr.msk.bf16.mxu0 %vm2301_vm1, %v2300_v0  ;;  %2103 = vmatpush3.bf16.msra.mxu0 %v2164_v41 }
 0xd8c   :  { %2104 = vmatprep.subr.bf16.mxu0 %v2300_v0 }
 0xd8d   :  { %v1234_v2 = vpop.permute.xlu1 %1233 }
 0xd8e   :  { %2099 = vmatmul.mubr.msk.bf16.vlgmr.msra.gmra.mxu1 %vm85_vm2, %v1234_v2 }
 0xd8f   :  { %2114 = vmatprep.mubr.msk.bf16.mxu1 %vm2301_vm1, %v2300_v0  ;;  %2111 = vmatpush3.bf16.msra.mxu1 %v2165_v42 }
 0xd90   :  { %2112 = vmatprep.subr.bf16.mxu1 %v2300_v0  ;;  %2105 = vmatpush3.bf16.msra.mxu0 %v2166_v43 }
 0xd91   :  { %2118 = vmatprep.subr.bf16.mxu0 %v2300_v0 }
 0xe4a   :  { %v1220_v4 = vpop.f32.mrf.mxu0 }
 0xe4b   :  { %v1226_v5 = vadd.f32 %v1924_v3, %v1220_v4 }
 0xe4c   :  { %v2092_v6 = vpop.f32.mrf.mxu0 }
 0xe4d   :  { %2252 = vtanh.f32 %v1226_v5  ;;  %v1932_v19 = vmul.f32 -1.442695, %v1226_v5 }
 0xe4e   :  { %v1223_v9 = vpop.f32.mrf.mxu0  ;;  %v1284_v10 = vpop.f32.mrf.mxu1 }
 0xe4f   :  { %v1290_v12 = vadd.f32 %v1928_v7, %v1284_v10 }
 0xe50   :  { %v2093_v13 = vpop.f32.mrf.mxu0  ;;  %v2100_v14 = vpop.f32.mrf.mxu1 }
 0xe51   :  { %2254 = vtanh.f32 %v1290_v12  ;;  %v1933_v20 = vmul.f32 -1.442695, %v1290_v12 }
 0xe52   :  { %v1287_v15 = vpop.f32.mrf.mxu1  ;;  %2256 = vpow2.f32 %v1932_v19 }
 0xe53   :  { %2258 = vpow2.f32 %v1933_v20 }
 0xe54   :  { %v2101_v16 = vpop.f32.mrf.mxu1 }
 0xe5a   :  { %v2253_v17 = vpop.eup %2252 }
 0xe5b   :  { %1300 = vrot.lane.b32.xlu0 %v2253_v17, %s2303_s6 }
 0xe5e   :  { %v2255_v18 = vpop.eup %2254 }
 0xe5f   :  { %1324 = vrot.lane.b32.xlu1 %v2255_v18, %s2303_s6  ;;  %v2257_v22 = vpop.eup %2256 }
 0xe60   :  { %v1294_v23 = vadd.f32 1.0, %v2257_v22  ;;  %v2259_v25 = vpop.eup %2258 }
 0xe61   :  { %v1318_v26 = vadd.f32 1.0, %v2259_v25 }
 0xe62   :  { %2260 = vrcp.f32 %v1294_v23 }
 0xe63   :  { %2262 = vrcp.f32 %v1318_v26 }
 0xe6f   :  { %v2261_v27 = vpop.eup %2260 }
 0xe70   :  { %v2263_v30 = vpop.eup %2262  ;;  %v1298_v33 = vmul.f32 %v2261_v27, %v2583_v46  ;;  %v2167_v46 = vld [vmem:[%s2881_s3] sm:$0xff]  }
 0xe71   :  { %v1322_v37 = vmul.f32 %v2263_v30, %v2587_v49  ;;  %2113 = vmatpush3.bf16.msra.mxu1 %v2167_v46 }
 0xe72   :  { %2126 = vmatprep.subr.bf16.mxu1 %v2300_v0 }
 0xecd   :  { %v1301_v28 = vpop.permute.xlu0 %1300 }
 0xece   :  { %v1303_v29 = vmul.f32 %v2261_v27, %v1301_v28 }
 0xed0   :  { %1305 = vrot.lane.b32.xlu0 %v1303_v29, %s2302_s26 }
 0xed1   :  { %v1325_v31 = vpop.permute.xlu1 %1324 }
 0xed2   :  { %v1327_v32 = vmul.f32 %v2263_v30, %v1325_v31 }
 0xed4   :  { %1329 = vrot.lane.b32.xlu1 %v1327_v32, %s2302_s26  ;;  %v2168_v32 = vld [vmem:[%s2880_s2 + $0x8] sm:$0xff]  }
 0xf42   :  { %v1306_v34 = vpop.permute.xlu0 %1305 }
 0xf43   :  { %v2633_v35 = vadd.f32 %v1306_v34, %v1298_v33  ;;  %v2169_v33 = vld [vmem:[%s2881_s3 + $0x8] sm:$0xff]   ;;  %v2170_v34 = vld [vmem:[%s2880_s2] sm:$0xff]  }
 0xf45   :  { %2264 = vtanh.f32 %v2633_v35 }
 0xf46   :  { %v1330_v38 = vpop.permute.xlu1 %1329 }
 0xf47   :  { %v2637_v40 = vadd.f32 %v1330_v38, %v1322_v37  ;;  %v2171_v38 = vld [vmem:[%s2881_s3] sm:$0xff]  }
 0xf49   :  { %2266 = vtanh.f32 %v2637_v40 }
 0xf52   :  { %v2265_v44 = vpop.eup %2264 }
 0xf53   :  { %1311 = vrot.lane.b32.xlu0 %v2265_v44, %s2303_s6 }
 0xf56   :  { %v2267_v45 = vpop.eup %2266 }
 0xf57   :  { %1335 = vrot.lane.b32.xlu1 %v2267_v45, %s2303_s6 }
 0xfc5   :  { %v1312_v47 = vpop.permute.xlu0 %1311 }
 0xfc6   :  { %v1314_v48 = vmul.f32 %v2261_v27, %v1312_v47  ;;  %v1948_v47 = vld [vmem:[%s2882_s0 + $0xe] sm:$0x3]  ;;  %s2305_s0 = smov 96  }
 0xfc8   :  { %v2658_v49 = vpack.c.bf16 %v1314_v48, %v1314_v48 }
 0xfc9   :  { %v1336_v50 = vpop.permute.xlu1 %1335 }
 0xfca   :  { %v1338_v51 = vmul.f32 %v2263_v30, %v1336_v50  ;;  %1387 = vrot.lane.b32.xlu0 %v2658_v49, %s2302_s26 }
 0xfcc   :  { %v2662_v52 = vpack.c.bf16 %v1338_v51, %v1338_v51 }
 0xfce   :  { %1451 = vrot.lane.b32.xlu1 %v2662_v52, %s2302_s26 }
0x103c   :  { %v1388_v54 = vpop.permute.xlu0 %1387 }
0x103d   :  { %2107 = vmatmul.mubr.msk.bf16.vlgmr.msra.gmra.mxu0 %vm85_vm2, %v1388_v54  ;;  %v1663_v54 = vld [vmem:[%s2883_s1] sm:$0x3] }
0x103e   :  { %2122 = vmatprep.mubr.msk.bf16.mxu0 %vm2301_vm1, %v2300_v0  ;;  %2119 = vmatpush3.bf16.msra.mxu0 %v2168_v32 }
0x103f   :  { %2120 = vmatprep.subr.bf16.mxu0 %v2300_v0 }
0x1040   :  { %v1452_v55 = vpop.permute.xlu1 %1451 }
0x1041   :  { %2115 = vmatmul.mubr.msk.bf16.vlgmr.msra.gmra.mxu1 %vm85_vm2, %v1452_v55 }
0x1042   :  { %2130 = vmatprep.mubr.msk.bf16.mxu1 %vm2301_vm1, %v2300_v0  ;;  %2127 = vmatpush3.bf16.msra.mxu1 %v2169_v33 }
0x1043   :  { %2128 = vmatprep.subr.bf16.mxu1 %v2300_v0  ;;  %2121 = vmatpush3.bf16.msra.mxu0 %v2170_v34 }
0x1046   :  { %2129 = vmatpush3.bf16.msra.mxu1 %v2171_v38 }
0x10fd   :  { %v1438_v58 = vpop.f32.mrf.mxu0 }
0x10fe   :  { %v1444_v59 = vadd.f32 %v1936_v57, %v1438_v58 }
0x10ff   :  { %v2108_v61 = vpop.f32.mrf.mxu0 }
0x1100   :  { %2268 = vtanh.f32 %v1444_v59  ;;  %v1944_v12 = vmul.f32 -1.442695, %v1444_v59 }
0x1101   :  { %v1441_v1 = vpop.f32.mrf.mxu0  ;;  %v1502_v2 = vpop.f32.mrf.mxu1 }
0x1102   :  { %v1508_v3 = vadd.f32 %v1940_v62, %v1502_v2 }
0x1103   :  { %v2109_v4 = vpop.f32.mrf.mxu0  ;;  %v2116_v5 = vpop.f32.mrf.mxu1 }
0x1104   :  { %2270 = vtanh.f32 %v1508_v3  ;;  %v1945_v13 = vmul.f32 -1.442695, %v1508_v3 }
0x1105   :  { %v1505_v6 = vpop.f32.mrf.mxu1  ;;  %2272 = vpow2.f32 %v1944_v12 }
0x1106   :  { %2274 = vpow2.f32 %v1945_v13 }
0x1107   :  { %v2117_v7 = vpop.f32.mrf.mxu1 }
0x110d   :  { %v2269_v9 = vpop.eup %2268 }
0x110e   :  { %1518 = vrot.lane.b32.xlu0 %v2269_v9, %s2303_s6 }
0x1111   :  { %v2271_v10 = vpop.eup %2270 }
0x1112   :  { %1542 = vrot.lane.b32.xlu1 %v2271_v10, %s2303_s6  ;;  %v2273_v14 = vpop.eup %2272 }
0x1113   :  { %v1512_v15 = vadd.f32 1.0, %v2273_v14  ;;  %v2275_v16 = vpop.eup %2274 }
0x1114   :  { %v1536_v17 = vadd.f32 1.0, %v2275_v16 }
0x1115   :  { %2276 = vrcp.f32 %v1512_v15 }
0x1116   :  { %2278 = vrcp.f32 %v1536_v17 }
0x1122   :  { %v2277_v18 = vpop.eup %2276 }
0x1123   :  { %v2279_v22 = vpop.eup %2278  ;;  %v1516_v26 = vmul.f32 %v2277_v18, %v2633_v35 }
0x1124   :  { %v1540_v29 = vmul.f32 %v2279_v22, %v2637_v40 }
0x1180   :  { %v1519_v19 = vpop.permute.xlu0 %1518 }
0x1181   :  { %v1521_v20 = vmul.f32 %v2277_v18, %v1519_v19 }
0x1183   :  { %1523 = vrot.lane.b32.xlu0 %v1521_v20, %s2302_s26 }
0x1184   :  { %v1543_v23 = vpop.permute.xlu1 %1542 }
0x1185   :  { %v1545_v25 = vmul.f32 %v2279_v22, %v1543_v23 }
0x1187   :  { %1547 = vrot.lane.b32.xlu1 %v1545_v25, %s2302_s26  ;;  %v254_v25 = vlaneseq }
0x1189   :  { %v255_v32 = vshrl.u32 %v254_v25, 7 }
0x11f5   :  { %v1524_v27 = vpop.permute.xlu0 %1523 }
0x11f6   :  { %v2683_v28 = vadd.f32 %v1524_v27, %v1516_v26 }
0x11f8   :  { %2280 = vtanh.f32 %v2683_v28 }
0x11f9   :  { %v1548_v30 = vpop.permute.xlu1 %1547 }
0x11fa   :  { %v2687_v31 = vadd.f32 %v1548_v30, %v1540_v29 }
0x11fc   :  { %2282 = vtanh.f32 %v2687_v31 }
0x1205   :  { %v2281_v35 = vpop.eup %2280 }
0x1206   :  { %1529 = vrot.lane.b32.xlu0 %v2281_v35, %s2303_s6 }
0x1209   :  { %v2283_v37 = vpop.eup %2282 }
0x120a   :  { %1553 = vrot.lane.b32.xlu1 %v2283_v37, %s2303_s6 }
0x1278   :  { %v1530_v40 = vpop.permute.xlu0 %1529 }
0x1279   :  { %v1532_v41 = vmul.f32 %v2277_v18, %v1530_v40 }
0x127b   :  { %v2706_v42 = vpack.c.bf16 %v1532_v41, %v1532_v41 }
0x127c   :  { %v1554_v43 = vpop.permute.xlu1 %1553 }
0x127d   :  { %v1556_v44 = vmul.f32 %v2279_v22, %v1554_v43  ;;  %1605 = vrot.lane.b32.xlu0 %v2706_v42, %s2302_s26  ;;  %v2304_v22 = vmov 1966171168  }
0x127e   :  { %v252_v23 = vunpack.c.l.s4 %v2304_v22 }
0x127f   :  { %v2710_v0 = vpack.c.bf16 %v1556_v44, %v1556_v44 }
0x1280   :  { %v253_v30 = vunpack.c.0.s8 %v252_v23 }
0x1281   :  { %1668 = vrot.lane.b32.xlu1 %v2710_v0, %s2302_s26 }
0x1282   :  { %v2739_v33 = vsub.s32 %v253_v30, %v255_v32 }
0x1284   :  { %v278_v35 = vrot.slane %v2412_v56, %v2739_v33  ;;  %v496_v40 = vrot.slane %v2462_v39, %v2739_v33  ;;  %v911_v43 = vrot.slane %v2558_v8, %v2739_v33  ;;  %v1150_v8 = vrot.slane %v2612_v63, %v2739_v33 }
0x1286   :  { %v285_v41 = vrot.slane %v278_v35, %v2739_v33  ;;  %v503_v44 = vrot.slane %v496_v40, %v2739_v33 }
0x12ef   :  { %v1606_v45 = vpop.permute.xlu0 %1605 }
0x12f0   :  { %2123 = vmatmul.mubr.msk.bf16.vlgmr.msra.gmra.mxu0 %vm85_vm2, %v1606_v45  ;;  %v1129_v45 = vrot.slane %v2608_v60, %v2739_v33  ;;  %v1368_v60 = vrot.slane %v2662_v52, %v2739_v33 }
0x12f3   :  { %v1669_v46 = vpop.permute.xlu1 %1668 }
0x12f4   :  { %2131 = vmatmul.mubr.msk.bf16.vlgmr.msra.gmra.mxu1 %vm85_vm2, %v1669_v46 }
0x13b0   :  { %v1656_v48 = vpop.f32.mrf.mxu0 }
0x13b1   :  { %v1662_v50 = vadd.f32 %v1948_v47, %v1656_v48  ;;  %v1347_v47 = vrot.slane %v2658_v49, %v2739_v33  ;;  %v1586_v49 = vrot.slane %v2710_v0, %v2739_v33 }
0x13b2   :  { %v2124_v51 = vpop.f32.mrf.mxu0 }
0x13b3   :  { %2284 = vtanh.f32 %v1662_v50  ;;  %v1955_v4 = vmul.f32 -1.442695, %v1662_v50  ;;  %v1565_v50 = vrot.slane %v2706_v42, %v2739_v33  ;;  %v1157_v51 = vrot.slane %v1150_v8, %v2739_v33 }
0x13b4   :  { %v1659_v55 = vpop.f32.mrf.mxu0  ;;  %v1719_v57 = vpop.f32.mrf.mxu1  ;;  %v1354_v63 = vrot.slane %v1347_v47, %v2739_v33  ;;  %v1593_v52 = vrot.slane %v1586_v49, %v2739_v33 }
0x13b5   :  { %v1725_v58 = vadd.f32 %v1719_v57, %v1663_v54  ;;  %v1375_v54 = vrot.slane %v1368_v60, %v2739_v33  ;;  %v1572_v55 = vrot.slane %v1565_v50, %v2739_v33 }
0x13b6   :  { %v2125_v59 = vpop.f32.mrf.mxu0  ;;  %v2132_v61 = vpop.f32.mrf.mxu1 }
0x13b7   :  { %2286 = vtanh.f32 %v1725_v58  ;;  %v1956_v5 = vmul.f32 -1.442695, %v1725_v58 }
0x13b8   :  { %v1722_v62 = vpop.f32.mrf.mxu1  ;;  %2288 = vpow2.f32 %v1955_v4 }
0x13b9   :  { %2290 = vpow2.f32 %v1956_v5 }
0x13ba   :  { %v2133_v1 = vpop.f32.mrf.mxu1 }
0x13c0   :  { %v2285_v2 = vpop.eup %2284 }
0x13c1   :  { %1735 = vrot.lane.b32.xlu0 %v2285_v2, %s2303_s6 }
0x13c4   :  { %v2287_v3 = vpop.eup %2286 }
0x13c5   :  { %1759 = vrot.lane.b32.xlu1 %v2287_v3, %s2303_s6  ;;  %v2289_v6 = vpop.eup %2288 }
0x13c6   :  { %v1729_v7 = vadd.f32 1.0, %v2289_v6  ;;  %v2291_v9 = vpop.eup %2290 }
0x13c7   :  { %v1753_v10 = vadd.f32 1.0, %v2291_v9 }
0x13c8   :  { %2292 = vrcp.f32 %v1729_v7 }
0x13c9   :  { %2294 = vrcp.f32 %v1753_v10 }
0x13d5   :  { %v2724_v12 = vpop.eup %2292 }
0x13d6   :  { %v2728_v15 = vpop.eup %2294  ;;  %v1733_v18 = vmul.f32 %v2724_v12, %v2683_v28  ;;  %v257_v28 = vrot.slane %v2408_v53, %v2739_v33  ;;  %v693_v53 = vrot.slane %v2508_v21, %v2739_v33  ;;  %v932_v21 = vrot.slane %v2562_v11, %v2739_v33 }
0x13d7   :  { %v1757_v26 = vmul.f32 %v2728_v15, %v2687_v31  ;;  %v475_v31 = vrot.slane %v2458_v36, %v2739_v33  ;;  %v714_v36 = vrot.slane %v2512_v24, %v2739_v33  ;;  %v918_v24 = vrot.slane %v911_v43, %v2739_v33 }
0x13d8   :  { %v264_v37 = vrot.slane %v257_v28, %v2739_v33  ;;  %v700_v39 = vrot.slane %v693_v53, %v2739_v33  ;;  %v939_v48 = vrot.slane %v932_v21, %v2739_v33  ;;  %v1136_v11 = vrot.slane %v1129_v45, %v2739_v33 }
0x13d9   :  { %v482_v56 = vrot.slane %v475_v31, %v2739_v33  ;;  %v721_v46 = vrot.slane %v714_v36, %v2739_v33 }
0x1433   :  { %v1736_v13 = vpop.permute.xlu0 %1735 }
0x1434   :  { %v1738_v14 = vmul.f32 %v2724_v12, %v1736_v13 }
0x1436   :  { %1740 = vrot.lane.b32.xlu0 %v1738_v14, %s2302_s26 }
0x1437   :  { %v1760_v16 = vpop.permute.xlu1 %1759 }
0x1438   :  { %v1762_v17 = vmul.f32 %v2728_v15, %v1760_v16 }
0x143a   :  { %1764 = vrot.lane.b32.xlu1 %v1762_v17, %s2302_s26 }
0x14a8   :  { %v1741_v19 = vpop.permute.xlu0 %1740 }
0x14a9   :  { %v1743_v20 = vadd.f32 %v1741_v19, %v1733_v18 }
0x14ab   :  { %2296 = vtanh.f32 %v1743_v20 }
0x14ac   :  { %v1765_v27 = vpop.permute.xlu1 %1764 }
0x14ad   :  { %v2736_v29 = vadd.f32 %v1765_v27, %v1757_v26 }
0x14af   :  { %2298 = vtanh.f32 %v2736_v29 }
0x14b8   :  { %v2297_v34 = vpop.eup %2296 }
0x14b9   :  { %1746 = vrot.lane.b32.xlu0 %v2297_v34, %s2303_s6 }
0x14bc   :  { %v2299_v38 = vpop.eup %2298 }
0x14bd   :  { %1770 = vrot.lane.b32.xlu1 %v2299_v38, %s2303_s6  ;;  %265 = vrot.lane.b32.xlu0 %v264_v37, %s2302_s26 }
0x14c1   :  { %286 = vrot.lane.b32.xlu1 %v285_v41, %s2302_s26  ;;  %483 = vrot.lane.b32.xlu0 %v482_v56, %s2302_s26 }
0x14c5   :  { %504 = vrot.lane.b32.xlu1 %v503_v44, %s2302_s26  ;;  %701 = vrot.lane.b32.xlu0 %v700_v39, %s2302_s26 }
0x14c9   :  { %722 = vrot.lane.b32.xlu1 %v721_v46, %s2302_s26  ;;  %919 = vrot.lane.b32.xlu0 %v918_v24, %s2302_s26 }
0x14cd   :  { %940 = vrot.lane.b32.xlu1 %v939_v48, %s2302_s26  ;;  %1137 = vrot.lane.b32.xlu0 %v1136_v11, %s2302_s26 }
0x14d1   :  { %1158 = vrot.lane.b32.xlu1 %v1157_v51, %s2302_s26  ;;  %1355 = vrot.lane.b32.xlu0 %v1354_v63, %s2302_s26 }
0x14d5   :  { %1376 = vrot.lane.b32.xlu1 %v1375_v54, %s2302_s26  ;;  %1573 = vrot.lane.b32.xlu0 %v1572_v55, %s2302_s26 }
0x14d9   :  { %1594 = vrot.lane.b32.xlu1 %v1593_v52, %s2302_s26 }
0x14dd   :  { %1822 = vrot.lane.b32.xlu1 %v1743_v20, %s2305_s0 }
0x152b   :  { %v1747_v42 = vpop.permute.xlu0 %1746 }
0x152c   :  { %v1749_v57 = vmul.f32 %v2724_v12, %v1747_v42 }
0x152e   :  { %v1774_v0 = vpack.c.bf16 %v1749_v57, %v1749_v57  ;;  %1816 = vrot.lane.b32.xlu0 %v1749_v57, %s2302_s26 }
0x152f   :  { %v1771_v58 = vpop.permute.xlu1 %1770  ;;  %v266_v59 = vpop.permute.xlu0 %265 }
0x1530   :  { %v1782_v61 = vrot.slane %v1774_v0, %v2739_v33  ;;  %v1773_v62 = vmul.f32 %v2728_v15, %v1771_v58  ;;  %269 = vst.msk [vmem:[%s2884_s4] sm:$0x1] %vm268_vm3, %v266_v59 }
0x1532   :  { %v1795_v1 = vpack.c.bf16 %v1773_v62, %v1773_v62  ;;  %v1789_v2 = vrot.slane %v1782_v61, %v2739_v33 }
0x1533   :  { %v287_v3 = vpop.permute.xlu1 %286  ;;  %v484_v4 = vpop.permute.xlu0 %483 }
0x1534   :  { %v1803_v5 = vrot.slane %v1795_v1, %v2739_v33  ;;  %1875 = vst.msk [vmem:[%s2885_s5 + $0x7] sm:$0x1] %vm268_vm3, %v287_v3  ;;  %1886 = vst.msk [vmem:[%s2884_s4 + $0x1] sm:$0x1] %vm268_vm3, %v484_v4  ;;  %1790 = vrot.lane.b32.xlu0 %v1789_v2, %s2302_s26 }
0x1536   :  { %v1810_v6 = vrot.slane %v1803_v5, %v2739_v33 }
0x1537   :  { %v505_v7 = vpop.permute.xlu1 %504  ;;  %v702_v9 = vpop.permute.xlu0 %701 }
0x1538   :  { %1887 = vst.msk [vmem:[%s2885_s5 + $0x6] sm:$0x1] %vm268_vm3, %v505_v7  ;;  %1898 = vst.msk [vmem:[%s2884_s4 + $0x2] sm:$0x1] %vm268_vm3, %v702_v9  ;;  %1811 = vrot.lane.b32.xlu1 %v1810_v6, %s2302_s26  ;;  %1827 = vrot.lane.b32.xlu0 %v1773_v62, %s2302_s26 }
0x153b   :  { %v723_v10 = vpop.permute.xlu1 %722  ;;  %v920_v12 = vpop.permute.xlu0 %919 }
0x153c   :  { %1899 = vst.msk [vmem:[%s2885_s5 + $0x5] sm:$0x1] %vm268_vm3, %v723_v10  ;;  %1910 = vst.msk [vmem:[%s2884_s4 + $0x3] sm:$0x1] %vm268_vm3, %v920_v12  ;;  %1832 = vrot.lane.b32.xlu1 %v2736_v29, %s2305_s0 }
0x153f   :  { %v941_v13 = vpop.permute.xlu1 %940  ;;  %v1138_v14 = vpop.permute.xlu0 %1137 }
0x1540   :  { %1911 = vst.msk [vmem:[%s2885_s5 + $0x4] sm:$0x1] %vm268_vm3, %v941_v13  ;;  %1922 = vst.msk [vmem:[%s2884_s4 + $0x4] sm:$0x1] %vm268_vm3, %v1138_v14 }
0x1543   :  { %v1159_v15 = vpop.permute.xlu1 %1158  ;;  %v1356_v16 = vpop.permute.xlu0 %1355 }
0x1544   :  { %1923 = vst.msk [vmem:[%s2885_s5 + $0x3] sm:$0x1] %vm268_vm3, %v1159_v15  ;;  %1934 = vst.msk [vmem:[%s2884_s4 + $0x5] sm:$0x1] %vm268_vm3, %v1356_v16 }
0x1547   :  { %v1377_v17 = vpop.permute.xlu1 %1376  ;;  %v1574_v18 = vpop.permute.xlu0 %1573 }
0x1548   :  { %1935 = vst.msk [vmem:[%s2885_s5 + $0x2] sm:$0x1] %vm268_vm3, %v1377_v17  ;;  %1946 = vst.msk [vmem:[%s2884_s4 + $0x6] sm:$0x1] %vm268_vm3, %v1574_v18 }
0x154b   :  { %v1595_v19 = vpop.permute.xlu1 %1594 }
0x154c   :  { %1947 = vst.msk [vmem:[%s2885_s5 + $0x1] sm:$0x1] %vm268_vm3, %v1595_v19 }
0x154f   :  { %v1823_v20 = vpop.permute.xlu1 %1822 }
0x1550   :  { %1825 = vst.msk [vmem:[#allocation3] sm:$0x3] %vm58_vm0, %v1823_v20 }
0x15a0   :  { %v1817_v22 = vpop.permute.xlu0 %1816 }
0x15a1   :  { %1820 = vst.msk [vmem:[#allocation2] sm:$0x3] %vm58_vm0, %v1817_v22 }
0x15a6   :  { %v1791_v23 = vpop.permute.xlu0 %1790 }
0x15a7   :  { %1957 = vst.msk [vmem:[%s2884_s4 + $0x7] sm:$0x1] %vm268_vm3, %v1791_v23 }
0x15aa   :  { %v1812_v25 = vpop.permute.xlu1 %1811  ;;  %v1828_v26 = vpop.permute.xlu0 %1827 }
0x15ab   :  { %1814 = vst.msk [vmem:[%s2885_s5] sm:$0x1] %vm268_vm3, %v1812_v25 }
0x15ac   :  { %1830 = vst.msk [vmem:[#allocation4] sm:$0x3] %vm58_vm0, %v1828_v26 }
0x15ae   :  { %v1833_v27 = vpop.permute.xlu1 %1832 }
0x15af   :  { %1835 = vst.msk [vmem:[#allocation5] sm:$0x3] %vm58_vm0, %v1833_v27 }

</bundles_post_ra>
